<compile_context>
chip_gen: v7x
topology: tpu7x:2x2x1
jax: 0.10.0
libtpu: 0.0.40
codegen_flags: <defaults>
</compile_context>

<pallas_src>
import numpy as np
import jax
import jax.numpy as jnp
from jax import lax
from jax.experimental import pallas as pl
from jax.experimental.pallas import tpu as pltpu


# ----------------------------------------------------------------------------
# Fused kernel: in-VMEM im2col conv + single-matmul sub-pixel transposed conv.
# One batch image per grid step.
# ----------------------------------------------------------------------------
def _make_decoder_kernel(H, W, Cin, Cmid, Cout):
    HW = H * W

    def kernel(x_ref, w1_ref, b1_ref, w2_ref, b2_ref, o_ref):
        # x_ref : (H+2, W+2, Cin)    zero-padded NHWC input image
        # w1_ref: (9*Cin, Cmid)      im2col conv weights (ky,kx,ci) x co
        # b1_ref: (1, Cmid)          f32
        # w2_ref: (4*Cmid, 4*Cout)   K-concat taps [p00|p01|p10|p11] x phases
        # b2_ref: (1, 4*Cout)        f32 (bias tiled over the 4 phases)
        # o_ref : (H*W, 4*Cout)      phase-packed output (ee, eo, oe, oo)

        # ---- stage 1: Conv2d(3x3, pad=1) + ReLU as one deep-K matmul -------
        # im2col happens here, in VMEM: 9 shifted window loads, concatenated
        # along K (tap-major, then ci) to match w1 packing.
        cols = [x_ref[ky:ky + H, kx:kx + W, :].reshape(HW, Cin)
                for ky in range(3) for kx in range(3)]
        patches = jnp.concatenate(cols, axis=-1)               # (HW, 9*Cin)
        mid = jnp.dot(patches, w1_ref[...],
                      preferred_element_type=jnp.float32)      # (HW, Cmid) f32
        mid = jnp.maximum(mid + b1_ref[...], 0.0)
        mid = mid.astype(x_ref.dtype)                          # stage-2 operand

        # ---- stage 2: ConvTranspose2d(k=3, s=2, p=1, op=1) + ReLU ----------
        # Sub-pixel decomposition: out[2m+dy, 2l+dx] depends only on
        # mid[m..m+1, l..l+1].  Build the four shifted taps with flat row
        # shifts of the (HW, Cmid) value (row index fi = m*W + l):
        #   p00 = mid[fi], p01 = mid[fi+1], p10 = mid[fi+W], p11 = mid[fi+W+1]
        # Appended zero rows give the bottom-border zeros for free; the right
        # border (l == W-1) of the +1 shifts is zeroed with one column mask.
        zc = jnp.zeros((1, Cmid), mid.dtype)
        zr = jnp.zeros((W, Cmid), mid.dtype)
        s01 = jnp.concatenate([mid[1:, :], zc], axis=0)        # mid[fi+1]
        s10 = jnp.concatenate([mid[W:, :], zr], axis=0)        # mid[fi+W]
        s11 = jnp.concatenate([mid[W + 1:, :], zr, zc], axis=0)  # mid[fi+W+1]

        col_ok = (lax.broadcasted_iota(jnp.int32, (HW, Cmid), 0) % W) != (W - 1)
        p01 = jnp.where(col_ok, s01, jnp.zeros_like(s01))
        p11 = jnp.where(col_ok, s11, jnp.zeros_like(s11))

        # K-concatenated taps -> one MXU matmul with K = 4*Cmid.
        taps = jnp.concatenate([mid, p01, s10, p11], axis=-1)  # (HW, 4*Cmid)
        acc = jnp.dot(taps, w2_ref[...],
                      preferred_element_type=jnp.float32)      # (HW, 4*Cout)

        out = jnp.maximum(acc + b2_ref[...], 0.0)
        o_ref[...] = out.astype(o_ref.dtype)

    return kernel


# ----------------------------------------------------------------------------
# DecoderBlock forward (NCHW in / NCHW out, matching the PyTorch module).
# ----------------------------------------------------------------------------
def decoder_block_forward(x_nchw, w_conv, b_conv, w_tconv, b_tconv):
    """
    w_conv : (Cmid, Cin, 3, 3)   -- nn.Conv2d weight layout
    b_conv : (Cmid,)
    w_tconv: (Cmid, Cout, 3, 3)  -- nn.ConvTranspose2d weight layout
    b_tconv: (Cout,)
    """
    n, cin, h, w = x_nchw.shape
    cmid = int(w_conv.shape[0])
    cout = int(w_tconv.shape[1])
    dt = x_nchw.dtype
    hw = h * w

    # ---- glue: NCHW -> NHWC + one-pixel zero halo (1x activation traffic) ---
    x = jnp.transpose(x_nchw, (0, 2, 3, 1))                     # (N,H,W,Cin)
    x_pad = jnp.pad(x, ((0, 0), (1, 1), (1, 1), (0, 0)))        # (N,H+2,W+2,Cin)

    # ---- weight packing -----------------------------------------------------
    # stage 1: W1[(ky*3+kx)*Cin + ci, co] = w_conv[co, ci, ky, kx]
    w1 = jnp.transpose(w_conv, (2, 3, 1, 0)).reshape(9 * cin, cmid).astype(dt)
    b1 = b_conv.reshape(1, cmid).astype(jnp.float32)

    # stage 2: sub-pixel decomposition of ConvTranspose2d(k=3, s=2, p=1, op=1):
    #   out[2m,   2l  ] = mid[m,l]  W11
    #   out[2m,   2l+1] = mid[m,l]  W12 + mid[m,l+1] W10
    #   out[2m+1, 2l  ] = mid[m,l]  W21 + mid[m+1,l] W01
    #   out[2m+1, 2l+1] = mid[m,l]  W22 + mid[m,l+1] W20
    #                   + mid[m+1,l]W02 + mid[m+1,l+1] W00
    # K-concatenated along rows as [p00|p01|p10|p11] blocks, output column
    # blocks phase-packed [ee|eo|oe|oo].  (7/16 zero blocks are accepted to
    # keep the single K=4*Cmid matmul and the lane-dense 4*Cout output.)
    wt = w_tconv.astype(dt)                                     # (Cmid,Cout,3,3)
    zblk = jnp.zeros((cmid, cout), dt)
    tap = lambda ky, kx: wt[:, :, ky, kx]
    w2 = jnp.concatenate([
        jnp.concatenate([tap(1, 1), tap(1, 2), tap(2, 1), tap(2, 2)], axis=1),  # p00
        jnp.concatenate([zblk,      tap(1, 0), zblk,      tap(2, 0)], axis=1),  # p01
        jnp.concatenate([zblk,      zblk,      tap(0, 1), tap(0, 2)], axis=1),  # p10
        jnp.concatenate([zblk,      zblk,      zblk,      tap(0, 0)], axis=1),  # p11
    ], axis=0)                                                  # (4*Cmid,4*Cout)
    b2 = jnp.tile(b_tconv.astype(jnp.float32), 4).reshape(1, 4 * cout)

    # ---- cost estimate (lets XLA schedule the wrapper transposes around us) -
    itemsize = jnp.dtype(dt).itemsize
    flops = int(2 * n * hw * (9 * cin * cmid + (4 * cmid) * (4 * cout)))
    bytes_accessed = int(
        (x_pad.size + w1.size + w2.size + n * hw * 4 * cout) * itemsize
        + (b1.size + b2.size) * 4)

    kernel = _make_decoder_kernel(h, w, cin, cmid, cout)
    out_flat = pl.pallas_call(
        kernel,
        out_shape=jax.ShapeDtypeStruct((n, hw, 4 * cout), dt),
        grid=(n,),
        in_specs=[
            pl.BlockSpec((None, h + 2, w + 2, cin), lambda i: (i, 0, 0, 0)),
            pl.BlockSpec((9 * cin, cmid), lambda i: (0, 0)),
            pl.BlockSpec((1, cmid), lambda i: (0, 0)),
            pl.BlockSpec((4 * cmid, 4 * cout), lambda i: (0, 0)),
            pl.BlockSpec((1, 4 * cout), lambda i: (0, 0)),
        ],
        out_specs=pl.BlockSpec((None, hw, 4 * cout), lambda i: (i, 0, 0)),
        compiler_params=pltpu.CompilerParams(
            dimension_semantics=("parallel",)),
        cost_estimate=pl.CostEstimate(
            flops=flops, transcendentals=0, bytes_accessed=bytes_accessed),
    )(x_pad, w1, b1, w2, b2)

    # ---- pixel shuffle (depth-to-space) + back to NCHW ----------------------
    out = out_flat.reshape(n, h, w, 2, 2, cout)                 # (N,H,W,dy,dx,Co)
    out = jnp.transpose(out, (0, 5, 1, 3, 2, 4))                # (N,Co,H,dy,W,dx)
    return out.reshape(n, cout, 2 * h, 2 * w)


# ----------------------------------------------------------------------------
# Pure-JAX reference (lax conv) for correctness checking.
# ----------------------------------------------------------------------------
def _reference_forward(x_nchw, w_conv, b_conv, w_tconv, b_tconv):
    x = jnp.transpose(x_nchw, (0, 2, 3, 1))
    dn = ('NHWC', 'HWIO', 'NHWC')
    w1_hwio = jnp.transpose(w_conv, (2, 3, 1, 0))
    y = lax.conv_general_dilated(x, w1_hwio, (1, 1), ((1, 1), (1, 1)),
                                 dimension_numbers=dn,
                                 precision=lax.Precision.HIGHEST)
    y = jnp.maximum(y + b_conv[None, None, None, :], 0.0)
    wt_hwio = jnp.transpose(w_tconv[:, :, ::-1, ::-1], (2, 3, 0, 1))
    z = lax.conv_general_dilated(y, wt_hwio, (1, 1), ((1, 2), (1, 2)),
                                 lhs_dilation=(2, 2), dimension_numbers=dn,
                                 precision=lax.Precision.HIGHEST)
    z = jnp.maximum(z + b_tconv[None, None, None, :], 0.0)
    return jnp.transpose(z, (0, 3, 1, 2))


if __name__ == "__main__":
    key = jax.random.PRNGKey(0)
    k_x, k_w1, k_b1, k_w2, k_b2 = jax.random.split(key, 5)

    # DecoderBlock(in_channels=32, middle_channels=64, out_channels=32)
    N, Cin, H, W = 2, 32, 16, 16
    Cmid, Cout = 64, 32

    x = jax.random.normal(k_x, (N, Cin, H, W), jnp.float32)
    w_conv = jax.random.normal(k_w1, (Cmid, Cin, 3, 3), jnp.float32) * 0.1
    b_conv = jax.random.normal(k_b1, (Cmid,), jnp.float32) * 0.1
    w_tconv = jax.random.normal(k_w2, (Cmid, Cout, 3, 3), jnp.float32) * 0.1
    b_tconv = jax.random.normal(k_b2, (Cout,), jnp.float32) * 0.1

    fwd = jax.jit(decoder_block_forward)

    # --- f32 path: tight check against the lax reference ---------------------
    out = jax.block_until_ready(fwd(x, w_conv, b_conv, w_tconv, b_tconv))
    assert out.shape == (N, Cout, 2 * H, 2 * W), out.shape
    ref = jax.block_until_ready(
        _reference_forward(x, w_conv, b_conv, w_tconv, b_tconv))
    np.testing.assert_allclose(np.asarray(out), np.asarray(ref),
                               rtol=1e-3, atol=2e-3)

    # --- bf16 path (preferred on v6e/v7x: MXU-native, half the HBM bytes) ----
    xb = x.astype(jnp.bfloat16)
    outb = jax.block_until_ready(
        fwd(xb, w_conv.astype(jnp.bfloat16), b_conv,
            w_tconv.astype(jnp.bfloat16), b_tconv))
    ref_b = jax.block_until_ready(_reference_forward(
        xb.astype(jnp.float32),
        w_conv.astype(jnp.bfloat16).astype(jnp.float32), b_conv,
        w_tconv.astype(jnp.bfloat16).astype(jnp.float32), b_tconv))
    np.testing.assert_allclose(np.asarray(outb.astype(jnp.float32)),
                               np.asarray(ref_b), rtol=5e-2, atol=5e-2)

    print("KERNEL_OK")
</pallas_src>

<mosaic_0001>
module attributes {stable_mosaic.version = 11 : i64} {
  func.func @kernel(%arg0: i32, %arg1: memref<1x18x18x32xf32, #tpu.memory_space<vmem>>, %arg2: memref<288x64xf32, #tpu.memory_space<vmem>>, %arg3: memref<1x64xf32, #tpu.memory_space<vmem>>, %arg4: memref<256x128xf32, #tpu.memory_space<vmem>>, %arg5: memref<1x128xf32, #tpu.memory_space<vmem>>, %arg6: memref<1x256x128xf32, #tpu.memory_space<vmem>>) attributes {dimension_semantics = [#tpu.dimension_semantics<parallel>], iteration_bounds = array<i64: 2>, scalar_prefetch = 0 : i64, scratch_operands = 0 : i64, tpu.core_type = #tpu.core_type<tc>, window_params = [{transform_indices = @transform_0, window_bounds = array<i64: 1, 18, 18, 32>}, {pipeline_mode = #tpu.pipeline_mode<synchronous>, transform_indices = @transform_1, window_bounds = array<i64: 288, 64>}, {pipeline_mode = #tpu.pipeline_mode<synchronous>, transform_indices = @transform_2, window_bounds = array<i64: 1, 64>}, {pipeline_mode = #tpu.pipeline_mode<synchronous>, transform_indices = @transform_3, window_bounds = array<i64: 256, 128>}, {pipeline_mode = #tpu.pipeline_mode<synchronous>, transform_indices = @transform_4, window_bounds = array<i64: 1, 128>}, {transform_indices = @transform_5, window_bounds = array<i64: 1, 256, 128>}]} {
    %c0 = arith.constant 0 : index
    %c0_0 = arith.constant 0 : index
    %c0_1 = arith.constant 0 : index
    %c0_2 = arith.constant 0 : index
    %0 = vector.load %arg1[%c0, %c0_0, %c0_1, %c0_2] : memref<1x18x18x32xf32, #tpu.memory_space<vmem>>, vector<1x16x16x32xf32>
    %1 = vector.shape_cast %0 : vector<1x16x16x32xf32> to vector<16x16x32xf32>
    %2 = vector.shape_cast %1 : vector<16x16x32xf32> to vector<256x32xf32>
    %c0_3 = arith.constant 0 : index
    %c0_4 = arith.constant 0 : index
    %c1 = arith.constant 1 : index
    %c0_5 = arith.constant 0 : index
    %3 = vector.load %arg1[%c0_3, %c0_4, %c1, %c0_5] : memref<1x18x18x32xf32, #tpu.memory_space<vmem>>, vector<1x16x16x32xf32>
    %4 = vector.shape_cast %3 : vector<1x16x16x32xf32> to vector<16x16x32xf32>
    %5 = vector.shape_cast %4 : vector<16x16x32xf32> to vector<256x32xf32>
    %c0_6 = arith.constant 0 : index
    %c0_7 = arith.constant 0 : index
    %c2 = arith.constant 2 : index
    %c0_8 = arith.constant 0 : index
    %6 = vector.load %arg1[%c0_6, %c0_7, %c2, %c0_8] : memref<1x18x18x32xf32, #tpu.memory_space<vmem>>, vector<1x16x16x32xf32>
    %7 = vector.shape_cast %6 : vector<1x16x16x32xf32> to vector<16x16x32xf32>
    %8 = vector.shape_cast %7 : vector<16x16x32xf32> to vector<256x32xf32>
    %c0_9 = arith.constant 0 : index
    %c1_10 = arith.constant 1 : index
    %c0_11 = arith.constant 0 : index
    %c0_12 = arith.constant 0 : index
    %9 = vector.load %arg1[%c0_9, %c1_10, %c0_11, %c0_12] : memref<1x18x18x32xf32, #tpu.memory_space<vmem>>, vector<1x16x16x32xf32>
    %10 = vector.shape_cast %9 : vector<1x16x16x32xf32> to vector<16x16x32xf32>
    %11 = vector.shape_cast %10 : vector<16x16x32xf32> to vector<256x32xf32>
    %c0_13 = arith.constant 0 : index
    %c1_14 = arith.constant 1 : index
    %c1_15 = arith.constant 1 : index
    %c0_16 = arith.constant 0 : index
    %12 = vector.load %arg1[%c0_13, %c1_14, %c1_15, %c0_16] : memref<1x18x18x32xf32, #tpu.memory_space<vmem>>, vector<1x16x16x32xf32>
    %13 = vector.shape_cast %12 : vector<1x16x16x32xf32> to vector<16x16x32xf32>
    %14 = vector.shape_cast %13 : vector<16x16x32xf32> to vector<256x32xf32>
    %c0_17 = arith.constant 0 : index
    %c1_18 = arith.constant 1 : index
    %c2_19 = arith.constant 2 : index
    %c0_20 = arith.constant 0 : index
    %15 = vector.load %arg1[%c0_17, %c1_18, %c2_19, %c0_20] : memref<1x18x18x32xf32, #tpu.memory_space<vmem>>, vector<1x16x16x32xf32>
    %16 = vector.shape_cast %15 : vector<1x16x16x32xf32> to vector<16x16x32xf32>
    %17 = vector.shape_cast %16 : vector<16x16x32xf32> to vector<256x32xf32>
    %c0_21 = arith.constant 0 : index
    %c2_22 = arith.constant 2 : index
    %c0_23 = arith.constant 0 : index
    %c0_24 = arith.constant 0 : index
    %18 = vector.load %arg1[%c0_21, %c2_22, %c0_23, %c0_24] : memref<1x18x18x32xf32, #tpu.memory_space<vmem>>, vector<1x16x16x32xf32>
    %19 = vector.shape_cast %18 : vector<1x16x16x32xf32> to vector<16x16x32xf32>
    %20 = vector.shape_cast %19 : vector<16x16x32xf32> to vector<256x32xf32>
    %c0_25 = arith.constant 0 : index
    %c2_26 = arith.constant 2 : index
    %c1_27 = arith.constant 1 : index
    %c0_28 = arith.constant 0 : index
    %21 = vector.load %arg1[%c0_25, %c2_26, %c1_27, %c0_28] : memref<1x18x18x32xf32, #tpu.memory_space<vmem>>, vector<1x16x16x32xf32>
    %22 = vector.shape_cast %21 : vector<1x16x16x32xf32> to vector<16x16x32xf32>
    %23 = vector.shape_cast %22 : vector<16x16x32xf32> to vector<256x32xf32>
    %c0_29 = arith.constant 0 : index
    %c2_30 = arith.constant 2 : index
    %c2_31 = arith.constant 2 : index
    %c0_32 = arith.constant 0 : index
    %24 = vector.load %arg1[%c0_29, %c2_30, %c2_31, %c0_32] : memref<1x18x18x32xf32, #tpu.memory_space<vmem>>, vector<1x16x16x32xf32>
    %25 = vector.shape_cast %24 : vector<1x16x16x32xf32> to vector<16x16x32xf32>
    %26 = vector.shape_cast %25 : vector<16x16x32xf32> to vector<256x32xf32>
    %27 = tpu.concatenate %2, %5, %8, %11, %14, %17, %20, %23, %26 in 1 : vector<256x32xf32>, vector<256x32xf32>, vector<256x32xf32>, vector<256x32xf32>, vector<256x32xf32>, vector<256x32xf32>, vector<256x32xf32>, vector<256x32xf32>, vector<256x32xf32> -> vector<256x288xf32>
    %c0_33 = arith.constant 0 : index
    %c0_34 = arith.constant 0 : index
    %28 = vector.load %arg2[%c0_33, %c0_34] : memref<288x64xf32, #tpu.memory_space<vmem>>, vector<288x64xf32>
    %cst = arith.constant dense<0.000000e+00> : vector<256x64xf32>
    %29 = tpu.matmul %27, %28, %cst {dimension_numbers = #tpu.dot_dimension_numbers<[1], [0], [0], [1], [0, 0, 1, 1], [], []>} : vector<256x288xf32>, vector<288x64xf32>, vector<256x64xf32> -> vector<256x64xf32>
    %c0_35 = arith.constant 0 : index
    %c0_36 = arith.constant 0 : index
    %30 = vector.load %arg3[%c0_35, %c0_36] : memref<1x64xf32, #tpu.memory_space<vmem>>, vector<1x64xf32>
    %31 = vector.broadcast %30 : vector<1x64xf32> to vector<256x64xf32>
    %32 = arith.addf %29, %31 : vector<256x64xf32>
    %cst_37 = arith.constant 0.000000e+00 : f32
    %33 = vector.broadcast %cst_37 : f32 to vector<256x64xf32>
    %34 = arith.maximumf %32, %33 : vector<256x64xf32>
    %cst_38 = arith.constant 0.000000e+00 : f32
    %35 = vector.broadcast %cst_38 : f32 to vector<1x64xf32>
    %cst_39 = arith.constant 0.000000e+00 : f32
    %36 = vector.broadcast %cst_39 : f32 to vector<16x64xf32>
    %37 = vector.extract_strided_slice %34 {offsets = [1, 0], sizes = [255, 64], strides = [1, 1]} : vector<256x64xf32> to vector<255x64xf32>
    %38 = tpu.concatenate %37, %35 in 0 : vector<255x64xf32>, vector<1x64xf32> -> vector<256x64xf32>
    %39 = vector.extract_strided_slice %34 {offsets = [16, 0], sizes = [240, 64], strides = [1, 1]} : vector<256x64xf32> to vector<240x64xf32>
    %40 = tpu.concatenate %39, %36 in 0 : vector<240x64xf32>, vector<16x64xf32> -> vector<256x64xf32>
    %41 = vector.extract_strided_slice %34 {offsets = [17, 0], sizes = [239, 64], strides = [1, 1]} : vector<256x64xf32> to vector<239x64xf32>
    %42 = tpu.concatenate %41, %36, %35 in 0 : vector<239x64xf32>, vector<16x64xf32>, vector<1x64xf32> -> vector<256x64xf32>
    %43 = tpu.iota {dimensions = array<i32: 0>} : vector<256x64xi32>
    %c16_i32 = arith.constant 16 : i32
    %c0_i32 = arith.constant 0 : i32
    %44 = arith.cmpi eq, %c16_i32, %c0_i32 : i32
    %c1_i32 = arith.constant 1 : i32
    %45 = arith.select %44, %c1_i32, %c16_i32 : i32
    %46 = vector.broadcast %45 : i32 to vector<256x64xi32>
    %47 = arith.remsi %43, %46 : vector<256x64xi32>
    %c0_i32_40 = arith.constant 0 : i32
    %48 = vector.broadcast %c0_i32_40 : i32 to vector<256x64xi32>
    %49 = arith.cmpi ne, %47, %48 : vector<256x64xi32>
    %c0_i32_41 = arith.constant 0 : i32
    %50 = vector.broadcast %c0_i32_41 : i32 to vector<256x64xi32>
    %51 = arith.cmpi slt, %47, %50 : vector<256x64xi32>
    %c0_i32_42 = arith.constant 0 : i32
    %52 = arith.cmpi slt, %45, %c0_i32_42 : i32
    %53 = vector.broadcast %52 : i1 to vector<256x64xi1>
    %54 = vector.broadcast %53 : vector<256x64xi1> to vector<256x64xi1>
    %55 = arith.xori %51, %54 : vector<256x64xi1>
    %56 = arith.andi %55, %49 : vector<256x64xi1>
    %57 = vector.broadcast %45 : i32 to vector<256x64xi32>
    %58 = arith.addi %47, %57 : vector<256x64xi32>
    %59 = arith.select %56, %58, %47 : vector<256x64xi1>, vector<256x64xi32>
    %c15_i32 = arith.constant 15 : i32
    %60 = vector.broadcast %c15_i32 : i32 to vector<256x64xi32>
    %61 = arith.cmpi ne, %59, %60 : vector<256x64xi32>
    %cst_43 = arith.constant 0.000000e+00 : f32
    %62 = vector.broadcast %cst_43 : f32 to vector<256x64xf32>
    %63 = arith.select %61, %38, %62 : vector<256x64xi1>, vector<256x64xf32>
    %cst_44 = arith.constant 0.000000e+00 : f32
    %64 = vector.broadcast %cst_44 : f32 to vector<256x64xf32>
    %65 = arith.select %61, %42, %64 : vector<256x64xi1>, vector<256x64xf32>
    %66 = tpu.concatenate %34, %63, %40, %65 in 1 : vector<256x64xf32>, vector<256x64xf32>, vector<256x64xf32>, vector<256x64xf32> -> vector<256x256xf32>
    %c0_45 = arith.constant 0 : index
    %c0_46 = arith.constant 0 : index
    %67 = vector.load %arg4[%c0_45, %c0_46] : memref<256x128xf32, #tpu.memory_space<vmem>>, vector<256x128xf32>
    %cst_47 = arith.constant dense<0.000000e+00> : vector<256x128xf32>
    %68 = tpu.matmul %66, %67, %cst_47 {dimension_numbers = #tpu.dot_dimension_numbers<[1], [0], [0], [1], [0, 0, 1, 1], [], []>} : vector<256x256xf32>, vector<256x128xf32>, vector<256x128xf32> -> vector<256x128xf32>
    %c0_48 = arith.constant 0 : index
    %c0_49 = arith.constant 0 : index
    %69 = vector.load %arg5[%c0_48, %c0_49] : memref<1x128xf32, #tpu.memory_space<vmem>>, vector<1x128xf32>
    %70 = vector.broadcast %69 : vector<1x128xf32> to vector<256x128xf32>
    %71 = arith.addf %68, %70 : vector<256x128xf32>
    %cst_50 = arith.constant 0.000000e+00 : f32
    %72 = vector.broadcast %cst_50 : f32 to vector<256x128xf32>
    %73 = arith.maximumf %71, %72 : vector<256x128xf32>
    %c0_51 = arith.constant 0 : index
    %c0_52 = arith.constant 0 : index
    %c0_53 = arith.constant 0 : index
    %74 = vector.load %arg6[%c0_51, %c0_52, %c0_53] : memref<1x256x128xf32, #tpu.memory_space<vmem>>, vector<1x256x128xf32>
    %75 = vector.shape_cast %74 : vector<1x256x128xf32> to vector<256x128xf32>
    %76 = vector.shape_cast %73 : vector<256x128xf32> to vector<1x256x128xf32>
    tpu.vector_store %arg6[%c0_51, %c0_52, %c0_53], %76 {strides = array<i32>} : memref<1x256x128xf32, #tpu.memory_space<vmem>>, vector<1x256x128xf32>,
    return
  }
  func.func @transform_0(%arg0: i32) -> (i32, i32, i32, i32) {
    %c0_i32 = arith.constant 0 : i32
    %c0_i32_0 = arith.constant 0 : i32
    %c0_i32_1 = arith.constant 0 : i32
    %c0_i32_2 = arith.constant 0 : i32
    return %arg0, %c0_i32, %c0_i32_0, %c0_i32_1 : i32, i32, i32, i32
  }
  func.func @transform_1(%arg0: i32) -> (i32, i32) {
    %c0_i32 = arith.constant 0 : i32
    %c0_i32_0 = arith.constant 0 : i32
    %c0_i32_1 = arith.constant 0 : i32
    return %c0_i32, %c0_i32_0 : i32, i32
  }
  func.func @transform_2(%arg0: i32) -> (i32, i32) {
    %c0_i32 = arith.constant 0 : i32
    %c0_i32_0 = arith.constant 0 : i32
    %c0_i32_1 = arith.constant 0 : i32
    return %c0_i32, %c0_i32_0 : i32, i32
  }
  func.func @transform_3(%arg0: i32) -> (i32, i32) {
    %c0_i32 = arith.constant 0 : i32
    %c0_i32_0 = arith.constant 0 : i32
    %c0_i32_1 = arith.constant 0 : i32
    return %c0_i32, %c0_i32_0 : i32, i32
  }
  func.func @transform_4(%arg0: i32) -> (i32, i32) {
    %c0_i32 = arith.constant 0 : i32
    %c0_i32_0 = arith.constant 0 : i32
    %c0_i32_1 = arith.constant 0 : i32
    return %c0_i32, %c0_i32_0 : i32, i32
  }
  func.func @transform_5(%arg0: i32) -> (i32, i32, i32) {
    %c0_i32 = arith.constant 0 : i32
    %c0_i32_0 = arith.constant 0 : i32
    %c0_i32_1 = arith.constant 0 : i32
    return %arg0, %c0_i32, %c0_i32_0 : i32, i32, i32
  }
}

</mosaic_0001>

<bundles_post_ra>
// kernel: tile.8
= control target key start
LH: loop header
LB: loop body
LE: loop exit
PB: predicated region body
PF: predicated region fallthrough
CT: control target
= control target key end

     0   :  { %s22_s0 = inlined_call_operand.vmem [shape: f32[32], index: 0, kind: input, shape index: {}]   ;;  %s23_s1 = inlined_call_operand.vmem [shape: f32[4,32], index: 1, kind: output, shape index: {}]  }
   0x1   :  { %v4_v0 = vld [vmem:[%s22_s0] ss:$0 sm:$0xff] }
   0x2   :  { %5 = vst [vmem:[%s23_s1] sm:$0xf] %v4_v0 }

// kernel: tile.9
= control target key start
LH: loop header
LB: loop body
LE: loop exit
PB: predicated region body
PF: predicated region fallthrough
CT: control target
= control target key end

     0   :  { %vm7_vm0 = vcmask 261120   ;;  %s37_s8 = smov 32   ;;  %s38_s9 = smov 64   ;;  %vm13_vm1 = vcmask 1048320   ;;  %vm19_vm2 = vcmask 785920   ;;  %vm25_vm3 = vcmask 523520   ;;  %s55_s0 = inlined_call_operand.vmem [shape: f32[4,32], index: 0, kind: input, shape index: {}]   ;;  %s56_s1 = inlined_call_operand.vmem [shape: f32[1,128], index: 1, kind: output, shape index: {}]  }
   0x1   :  { %v4_v0 = vld [vmem:[%s55_s0] sm:$0xf]  ;;  %s36_s0 = smov 96  }
   0x2   :  { %5 = vst [vmem:[#allocation1] sm:$0xf] %v4_v0 }
   0x9   :  { %v10_v1 = vld [vmem:[#allocation1 + $0x3] sm:$0x1]   ;;  %v22_v2 = vld [vmem:[#allocation1 + $0x1] sm:$0x1]   ;;  %v6_v3 = vld [vmem:[#allocation1] sm:$0x1]  }
   0xa   :  { %11 = vrot.lane.b32.xlu0 %v10_v1, %s36_s0  ;;  %23 = vrot.lane.b32.xlu1 %v22_v2, %s37_s8  ;;  %v16_v4 = vld [vmem:[#allocation1 + $0x2] sm:$0x1]   ;;  %8 = vst.msk [vmem:[#allocation0] sm:$0x1] %vm7_vm0, %v6_v3  }
   0xe   :  { %17 = vrot.lane.b32.xlu0 %v16_v4, %s38_s9 }
  0x7c   :  { %v12_v5 = vpop.permute.xlu0 %11   ;;  %v24_v6 = vpop.permute.xlu1 %23  }
  0x7d   :  { %14 = vst.msk [vmem:[#allocation0] sm:$0x1] %vm13_vm1, %v12_v5  }
  0x80   :  { %v18_v7 = vpop.permute.xlu0 %17  }
  0x81   :  { %20 = vst.msk [vmem:[#allocation0] sm:$0x1] %vm19_vm2, %v18_v7  }
  0x82   :  { %26 = vst.msk [vmem:[#allocation0] sm:$0x1] %vm25_vm3, %v24_v6  }
  0x89   :  { %v30_v8 = vld [vmem:[#allocation0] sm:$0x1] }
  0x8a   :  { %32 = vst [vmem:[%s56_s1] sm:$0x1] %v30_v8 }

// kernel: decoder_block_forward.1
= control target key start
LH: loop header
LB: loop body
LE: loop exit
PB: predicated region body
PF: predicated region fallthrough
CT: control target
= control target key end

     0   :  { %s4598_s18 = smov 0   ;;  %s6168_s0 = inlined_call_operand.vmem [shape: f32[2,18,18,32], index: 0, kind: input, shape index: {}]   ;;  %s6169_s1 = inlined_call_operand.vmem [shape: f32[288,64], index: 1, kind: input, shape index: {}]   ;;  %s6170_s2 = inlined_call_operand.vmem [shape: f32[1,64], index: 2, kind: input, shape index: {}]   ;;  %s6171_s3 = inlined_call_operand.vmem [shape: f32[256,128], index: 3, kind: input, shape index: {}]   ;;  %s6172_s4 = inlined_call_operand.vmem [shape: f32[1,128], index: 4, kind: input, shape index: {}]   ;;  %s6173_s5 = inlined_call_operand.vmem [shape: f32[2,256,128], index: 5, kind: output, shape index: {}]  }
   0x1 LB: > { %s3437_s19 = sadd.s32 4294967295, %s4561_s18   ;;  %p3441_p0 = scmp.ge.s32.totalorder %s4561_s18, 1  ;;  %s4561_s18 = sphi %s4598_s18, %s15_s18  }
   0x2   : > { %p187_p1 = scmp.lt.s32.totalorder %s4561_s18, 3 }
   0x4   : > { %p188_p2 = pnand %p3441_p0, %p187_p1 }
   0x5   : > { %p215_p3 = scmp.lt.s32.totalorder (!%p188_p2), %s3437_s19, 1  ;;  %v1478_v0 = vld [vmem:[%s6169_s1] sm:$0xff] (!%p188_p2)  ;;  %v1479_v1 = vld [vmem:[%s6169_s1 + $0x8] sm:$0xff] (!%p188_p2)  ;;  %v1480_v2 = vld [vmem:[%s6169_s1 + $0x10] sm:$0xff] (!%p188_p2)  ;;  %v4563_v3 = vmov (!%p188_p2), 0.0|0.0   ;;  %s4564_s15 = smov (!%p188_p2), 32  }
   0x6   : > { %191 = sbr.rel (%p188_p2) target bundleno = 900 (0x384), region = 40  ;;  %3770 = vmatprep.subr.bf16.mxu0 (!%p188_p2), %v4563_v3  ;;  %v3771_v4 = vpack.c.bf16 (!%p188_p2), %v1479_v1, %v1478_v0  ;;  %v1481_v5 = vld [vmem:[%s6169_s1 + $0x18] sm:$0xff] (!%p188_p2)  ;;  %v1482_v7 = vld [vmem:[%s6169_s1 + $0x20] sm:$0xff] (!%p188_p2)  ;;  %v1483_v8 = vld [vmem:[%s6169_s1 + $0x28] sm:$0xff] (!%p188_p2)  ;;  %s4565_s20 = smov (!%p188_p2), 96   ;;  %vm1283_vm0 = vcmask (!%p188_p2), 261120  }
   0x7   : > { %v3774_v6 = vpack.c.bf16 (!%p188_p2), %v1481_v5, %v1480_v2  ;;  %v1484_v9 = vld [vmem:[%s6169_s1 + $0x30] sm:$0xff] (!%p188_p2)  ;;  %v1485_v10 = vld [vmem:[%s6169_s1 + $0x38] sm:$0xff] (!%p188_p2)  ;;  %v3777_v14 = vpack.c.bf16 (!%p188_p2), %v1483_v8, %v1482_v7  ;;  %v1486_v23 = vld [vmem:[%s6169_s1 + $0x40] sm:$0xff] (!%p188_p2)  ;;  %s4566_s23 = smov (!%p188_p2), 64   ;;  %vm1316_vm1 = vcmask (!%p188_p2), 523264   ;;  %vm1349_vm2 = vcmask (!%p188_p2), 785408  }
   0x8   : > { %3772 = vmatpush1.bf16.msra.mxu0 (!%p188_p2), %v3771_v4  ;;  %v3780_v28 = vpack.c.bf16 (!%p188_p2), %v1485_v10, %v1484_v9  ;;  %v1487_v31 = vld [vmem:[%s6169_s1 + $0x48] sm:$0xff] (!%p188_p2)  ;;  %v1488_v37 = vld [vmem:[%s6169_s1 + $0x50] sm:$0xff] (!%p188_p2)  ;;  %v1489_v38 = vld [vmem:[%s6169_s1 + $0x58] sm:$0xff] (!%p188_p2)  ;;  %vm2131_vm3 = vcmask (!%p188_p2), 1046528  }
   0x9   : > { %3773 = vmatprep.subr.bf16.mxu0 (!%p188_p2), %v4563_v3  ;;  %v3783_v35 = vpack.c.bf16 (!%p188_p2), %v1487_v31, %v1486_v23  ;;  %v3786_v42 = vpack.c.bf16 (!%p188_p2), %v1489_v38, %v1488_v37  ;;  %v1490_v43 = vld [vmem:[%s6169_s1 + $0x60] sm:$0xff] (!%p188_p2)  ;;  %v1491_v46 = vld [vmem:[%s6169_s1 + $0x68] sm:$0xff] (!%p188_p2)  ;;  %v1492_v52 = vld [vmem:[%s6169_s1 + $0x70] sm:$0xff] (!%p188_p2) }
   0xa   : > { %v3789_v50 = vpack.c.bf16 (!%p188_p2), %v1491_v46, %v1490_v43  ;;  %v1493_v53 = vld [vmem:[%s6169_s1 + $0x78] sm:$0xff] (!%p188_p2)  ;;  %v1494_v59 = vld [vmem:[%s6169_s1 + $0x80] sm:$0xff] (!%p188_p2)  ;;  %v1495_v60 = vld [vmem:[%s6169_s1 + $0x88] sm:$0xff] (!%p188_p2) }
   0xb   : > { %v3792_v57 = vpack.c.bf16 (!%p188_p2), %v1493_v53, %v1492_v52  ;;  %v3795_v0 = vpack.c.bf16 (!%p188_p2), %v1495_v60, %v1494_v59  ;;  %v1496_v1 = vld [vmem:[%s6169_s1 + $0x90] sm:$0xff] (!%p188_p2)  ;;  %v1497_v2 = vld [vmem:[%s6169_s1 + $0x98] sm:$0xff] (!%p188_p2)  ;;  %v1510_v5 = vld [vmem:[%s6169_s1 + $0x100] sm:$0xff] (!%p188_p2) }
   0xc   : > { %3775 = vmatpush1.bf16.msra.mxu0 (!%p188_p2), %v3774_v6  ;;  %v1511_v6 = vld [vmem:[%s6169_s1 + $0x108] sm:$0xff] (!%p188_p2)  ;;  %v1512_v9 = vld [vmem:[%s6169_s1 + $0x110] sm:$0xff] (!%p188_p2)  ;;  %v1513_v10 = vld [vmem:[%s6169_s1 + $0x118] sm:$0xff] (!%p188_p2) }
   0xd   : > { %s6175_s19 = smov (!%p215_p3, %s3437_s19), 1  ;;  %3776 = vmatprep.subr.bf16.mxu0 %v4563_v3  ;;  %v3818_v7 = vpack.c.bf16 %v1511_v6, %v1510_v5  ;;  %v1502_v37 = vld [vmem:[%s6169_s1 + $0xc0] sm:$0xff]  ;;  %v1503_v38 = vld [vmem:[%s6169_s1 + $0xc8] sm:$0xff] }
   0xe   : > { %s3906_s28 = smul.u32 432, %s6175_s19  ;;  %v3807_v43 = vpack.c.bf16 %v1503_v38, %v1502_v37 }
   0xf   : > { %3819 = vmatprep.subr.bf16.mxu1 %v3818_v7 }
  0x10   : > { %s4632_s10 = scalar_lea.vmem %s6168_s0, %s3906_s28  ;;  %3778 = vmatpush1.bf16.msra.mxu0 %v3777_v14  ;;  %v3798_v14 = vpack.c.bf16 %v1497_v2, %v1496_v1  ;;  %3821 = vmatpush3.bf16.msra.mxu1 %v3818_v7 }
  0x11   : > { %v257_v11 = vld [vmem:[%s4632_s10 + $0x1] sm:$0xff]  ;;  %v4643_v13 = vld [vmem:[%s4632_s10 + $0x18] sm:$0xff]  ;;  %v4650_v18 = vld [vmem:[%s4632_s10 + $0x30] sm:$0xff]  ;;  %3779 = vmatprep.subr.bf16.mxu0 %v4563_v3 }
  0x12   : > { %v3509_v12 = vld [vmem:[%s4632_s10 + $0x1a] sm:$0xff]  ;;  %v4646_v16 = vld [vmem:[%s4632_s10 + $0x31] sm:$0xff]  ;;  %v289_v17 = vld [vmem:[%s4632_s10 + $0x2] sm:$0xff] }
  0x13   : > { %v3920_v15 = vpack.i.bf16 %v257_v11, %v3509_v12  ;;  %v3930_v19 = vpack.i.bf16 %v4643_v13, %v4646_v16  ;;  %v258_v20 = vld [vmem:[%s4632_s10 + $0x9] sm:$0xff]  ;;  %v3925_v22 = vpack.i.bf16 %v289_v17, %v4650_v18  ;;  %v4668_v26 = vld [vmem:[%s4632_s10 + $0x38] sm:$0xff]  ;;  %v4674_v29 = vld [vmem:[%s4632_s10 + $0x20] sm:$0xff] }
  0x14   : > { %v4657_v21 = vld [vmem:[%s4632_s10 + $0x22] sm:$0xff]  ;;  %v290_v25 = vld [vmem:[%s4632_s10 + $0xa] sm:$0xff]  ;;  %v4671_v27 = vld [vmem:[%s4632_s10 + $0x32] sm:$0xff]  ;;  %3781 = vmatpush1.bf16.msra.mxu0 %v3780_v28 }
  0x15   : > { %3921 = vrot.lane.b32.xlu0 %v3920_v15, %s4564_s15  ;;  %3931 = vrot.lane.b32.xlu1 %v3930_v19, %s4565_s20  ;;  %v3935_v24 = vpack.i.bf16 %v258_v20, %v4657_v21  ;;  %v4677_v30 = vld [vmem:[%s4632_s10 + $0x39] sm:$0xff]  ;;  %v3940_v32 = vpack.i.bf16 %v290_v25, %v4668_v26  ;;  %v4694_v36 = vld [vmem:[%s4632_s10 + $0x48] sm:$0xff]  ;;  %v3822_v15 = vpack.c.bf16 %v1513_v10, %v1512_v9 }
  0x16   : > { %3722 = vmatprep.mubr.msk.f32.mxu1 %vm1283_vm0, %v4671_v27  ;;  %v3945_v33 = vpack.i.bf16 %v4674_v29, %v4677_v30  ;;  %v4691_v34 = vld [vmem:[%s4632_s10 + $0x19] sm:$0xff]  ;;  %3782 = vmatprep.subr.bf16.mxu0 %v4563_v3  ;;  %v3955_v40 = vpack.i.bf16 %v3509_v12, %v4694_v36  ;;  %v4709_v41 = vld [vmem:[%s4632_s10 + $0x49] sm:$0xff]  ;;  %v4715_v44 = vld [vmem:[%s4632_s10 + $0x21] sm:$0xff] }
  0x17   : > { %v3950_v39 = vpack.i.bf16 %v4691_v34, %v4671_v27  ;;  %v4718_v45 = vld [vmem:[%s4632_s10 + $0x3a] sm:$0xff]  ;;  %v3960_v47 = vpack.i.bf16 %v4650_v18, %v4709_v41  ;;  %v4731_v49 = vld [vmem:[%s4632_s10 + $0x50] sm:$0xff]  ;;  %v4800_v12 = vld [vmem:[%s4632_s10 + $0x68] sm:$0xff]  ;;  %3823 = vmatprep.subr.bf16.mxu1 %v3822_v15 }
  0x18   : > { %3784 = vmatpush1.bf16.msra.mxu0 %v3783_v35  ;;  %v3965_v48 = vpack.i.bf16 %v4715_v44, %v4718_v45  ;;  %v4734_v51 = vld [vmem:[%s4632_s10 + $0x51] sm:$0xff]  ;;  %v3970_v54 = vpack.i.bf16 %v4657_v21, %v4731_v49  ;;  %v4753_v58 = vld [vmem:[%s4632_s10 + $0x60] sm:$0xff]  ;;  %v4803_v17 = vld [vmem:[%s4632_s10 + $0x69] sm:$0xff]  ;;  %v4000_v21 = vpack.i.bf16 %v4718_v45, %v4800_v12  ;;  %3825 = vmatpush3.bf16.msra.mxu1 %v3822_v15 }
  0x19   : > { %3926 = vrot.lane.b32.xlu0 %v3925_v22, %s4566_s23  ;;  %3936 = vrot.lane.b32.xlu1 %v3935_v24, %s4564_s15  ;;  %v3975_v55 = vpack.i.bf16 %v4668_v26, %v4734_v51  ;;  %v4750_v56 = vld [vmem:[%s4632_s10 + $0x4a] sm:$0xff]  ;;  %v3985_v62 = vpack.i.bf16 %v4671_v27, %v4753_v58  ;;  %v4769_v63 = vld [vmem:[%s4632_s10 + $0x61] sm:$0xff]  ;;  %v4005_v22 = vpack.i.bf16 %v4731_v49, %v4803_v17 }
  0x1a   : > { %3785 = vmatprep.subr.bf16.mxu0 %v4563_v3  ;;  %v3980_v61 = vpack.i.bf16 %v4646_v16, %v4750_v56  ;;  %v4778_v4 = vld [vmem:[%s4632_s10 + $0x52] sm:$0xff]  ;;  %v3990_v8 = vpack.i.bf16 %v4694_v36, %v4769_v63  ;;  %v1498_v19 = vld [vmem:[%s6169_s1 + $0xa0] sm:$0xff]  ;;  %v1499_v20 = vld [vmem:[%s6169_s1 + $0xa8] sm:$0xff]  ;;  %3874 = vmatprep.subr.bf16.mxu1 %v4563_v3 }
  0x1b   : > { %v3995_v11 = vpack.i.bf16 %v4677_v30, %v4778_v4  ;;  %v4819_v23 = vld [vmem:[%s4632_s10 + $0x62] sm:$0xff]  ;;  %v3801_v24 = vpack.c.bf16 %v1499_v20, %v1498_v19  ;;  %v4822_v25 = vld [vmem:[%s4632_s10 + $0x78] sm:$0xff]  ;;  %v1500_v27 = vld [vmem:[%s6169_s1 + $0xb0] sm:$0xff]  ;;  %3723 = vmatmul.mubr.msk.f32.vlgmr.msra.gmra.mrb[0].mxu1 %vm1283_vm0, %v4718_v45 }
  0x1c   : > { %3787 = vmatpush1.bf16.msra.mxu0 %v3786_v42  ;;  %v1501_v28 = vld [vmem:[%s6169_s1 + $0xb8] sm:$0xff]  ;;  %v4010_v31 = vpack.i.bf16 %v4709_v41, %v4819_v23  ;;  %v4842_v36 = vld [vmem:[%s4632_s10 + $0x6a] sm:$0xff]  ;;  %3725 = vmatprep.mubr.msk.f32.mxu1 %vm1283_vm0, %v4750_v56  ;;  %v3548_v42 = vld [vmem:[%s4632_s10 + $0x80] sm:$0xff] }
  0x1d   : > { %3941 = vrot.lane.b32.xlu0 %v3940_v32, %s4566_s23  ;;  %3946 = vrot.lane.b32.xlu1 %v3945_v33, %s4565_s20  ;;  %v4015_v32 = vpack.i.bf16 %v4750_v56, %v4822_v25  ;;  %v4839_v33 = vld [vmem:[%s4632_s10 + $0x79] sm:$0xff]  ;;  %v3804_v35 = vpack.c.bf16 %v1501_v28, %v1500_v27  ;;  %v4863_v46 = vld [vmem:[%s4632_s10 + $0x81] sm:$0xff] }
  0x1e   : > { %3788 = vmatprep.subr.bf16.mxu0 %v4563_v3  ;;  %v1504_v45 = vld [vmem:[%s6169_s1 + $0xd0] sm:$0xff]  ;;  %v4035_v49 = vpack.i.bf16 %v4800_v12, %v4863_v46  ;;  %v3518_v59 = vld [vmem:[%s4632_s10 + $0x82] sm:$0xff]  ;;  %v3520_v5 = vld [vmem:[%s4632_s10 + $0x9a] sm:$0xff] }
  0x1f   : > { %3726 = vmatmul.mubr.msk.f32.gmra.mrb[2].mxu1 %vm1283_vm0, %v4778_v4  ;;  %v3549_v53 = vld [vmem:[%s4632_s10 + $0x90] sm:$0xff]  ;;  %v4055_v2 = vpack.i.bf16 %v4803_v17, %v3518_v59  ;;  %v3582_v7 = vld [vmem:[%s4632_s10 + $0x99] sm:$0xff]  ;;  %v3551_v10 = vld [vmem:[%s4632_s10 + $0xa8] sm:$0xff]  ;;  %v4085_v20 = vpack.i.bf16 %v4863_v46, %v3520_v5 }
  0x20   : > { %3790 = vmatpush1.bf16.msra.mxu0 %v3789_v50  ;;  %3728 = vmatprep.mubr.msk.f32.mxu1 %vm1283_vm0, %v4819_v23  ;;  %v3517_v50 = vld [vmem:[%s4632_s10 + $0x7a] sm:$0xff]  ;;  %v4065_v9 = vpack.i.bf16 %v3548_v42, %v3582_v7  ;;  %v3616_v12 = vld [vmem:[%s4632_s10 + $0xb2] sm:$0xff]  ;;  %v3583_v17 = vld [vmem:[%s4632_s10 + $0xa9] sm:$0xff] }
  0x21   : > { %3951 = vrot.lane.b32.xlu0 %v3950_v39, %s4564_s15  ;;  %3956 = vrot.lane.b32.xlu1 %v3955_v40, %s4566_s23  ;;  %v4020_v39 = vpack.i.bf16 %v4753_v58, %v4839_v33  ;;  %v4025_v40 = vpack.i.bf16 %v4734_v51, %v4842_v36  ;;  %v4040_v56 = vpack.i.bf16 %v4769_v63, %v3517_v50  ;;  %v3581_v58 = vld [vmem:[%s4632_s10 + $0x91] sm:$0xff]  ;;  %v3553_v27 = vld [vmem:[%s4632_s10 + $0xc0] sm:$0xff] }
  0x22   : > { %3791 = vmatprep.subr.bf16.mxu0 %v4563_v3  ;;  %v4050_v1 = vpack.i.bf16 %v4822_v25, %v3581_v58  ;;  %v4075_v15 = vpack.i.bf16 %v3517_v50, %v3551_v10  ;;  %v4080_v19 = vpack.i.bf16 %v3549_v53, %v3583_v17  ;;  %v3521_v25 = vld [vmem:[%s4632_s10 + $0xaa] sm:$0xff]  ;;  %v3617_v28 = vld [vmem:[%s4632_s10 + $0xc2] sm:$0xff] }
  0x23   : > { %3729 = vmatmul.mubr.msk.f32.gmra.mrb[4].mxu1 %vm1283_vm0, %v4842_v36  ;;  %v3523_v46 = vld [vmem:[%s4632_s10 + $0xc2] sm:$0xff] }
  0x24   : > { %3793 = vmatpush1.bf16.msra.mxu0 %v3792_v57  ;;  %3731 = vmatprep.mubr.msk.f32.mxu1 %vm1283_vm0, %v3517_v50  ;;  %v4045_v57 = vpack.i.bf16 %v4819_v23, %v3549_v53  ;;  %v3524_v53 = vld [vmem:[%s4632_s10 + $0xca] sm:$0xff] }
  0x25   : > { %3961 = vrot.lane.b32.xlu0 %v3960_v47, %s4565_s20  ;;  %3966 = vrot.lane.b32.xlu1 %v3965_v48, %s4564_s15  ;;  %v1505_v47 = vld [vmem:[%s6169_s1 + $0xd8] sm:$0xff]  ;;  %v4030_v48 = vpack.i.bf16 %v4778_v4, %v3548_v42 }
  0x26   : > { %3794 = vmatprep.subr.bf16.mxu0 %v4563_v3  ;;  %v3810_v52 = vpack.c.bf16 %v1505_v47, %v1504_v45  ;;  %v3550_v4 = vld [vmem:[%s4632_s10 + $0x98] sm:$0xff] }
  0x27   : > { %3732 = vmatmul.mubr.msk.f32.gmra.mrb[6].mxu1 %vm1283_vm0, %v3518_v59  ;;  %v3555_v45 = vld [vmem:[%s4632_s10 + $0xd8] sm:$0xff] }
  0x28   : > { %3796 = vmatpush1.bf16.msra.mxu0 %v3795_v0  ;;  %v1509_v0 = vld [vmem:[%s6169_s1 + $0xf8] sm:$0xff]  ;;  %v4135_v50 = vpack.i.bf16 %v3521_v25, %v3555_v45 }
  0x29   : > { %3971 = vrot.lane.b32.xlu0 %v3970_v54, %s4566_s23  ;;  %3976 = vrot.lane.b32.xlu1 %v3975_v55, %s4565_s20  ;;  %v1506_v54 = vld [vmem:[%s6169_s1 + $0xe0] sm:$0xff]  ;;  %v1507_v55 = vld [vmem:[%s6169_s1 + $0xe8] sm:$0xff] }
  0x2a   : > { %3797 = vmatprep.subr.bf16.mxu0 %v4563_v3  ;;  %v3813_v60 = vpack.c.bf16 %v1507_v55, %v1506_v54  ;;  %v3619_v47 = vld [vmem:[%s4632_s10 + $0xda] sm:$0xff] }
  0x2c   : > { %3799 = vmatpush1.bf16.msra.mxu0 %v3798_v14 }
  0x2d   : > { %3981 = vrot.lane.b32.xlu0 %v3980_v61, %s4564_s15  ;;  %3986 = vrot.lane.b32.xlu1 %v3985_v62, %s4566_s23  ;;  %v3519_v61 = vld [vmem:[%s4632_s10 + $0x92] sm:$0xff] }
  0x2e   : > { %3800 = vmatprep.subr.bf16.mxu0 %v4563_v3  ;;  %v1508_v62 = vld [vmem:[%s6169_s1 + $0xf0] sm:$0xff]  ;;  %3734 = vmatprep.mubr.msk.f32.mxu1 %vm1283_vm0, %v3519_v61  ;;  %v4070_v14 = vpack.i.bf16 %v4839_v33, %v3519_v61  ;;  %v4105_v33 = vpack.i.bf16 %v3519_v61, %v3553_v27 }
  0x2f   : > { %v3816_v6 = vpack.c.bf16 %v1509_v0, %v1508_v62  ;;  %3735 = vmatmul.mubr.msk.f32.gmra.mrb[8].mxu1 %vm1283_vm0, %v3520_v5  ;;  %v3557_v61 = vld [vmem:[%s4632_s10 + $0xf0] sm:$0xff]  ;;  %v3622_v0 = vld [vmem:[%s4632_s10 + $0xfa] sm:$0xff] }
  0x30   : > { %3802 = vmatpush1.bf16.msra.mxu0 %v3801_v24  ;;  %v3621_v62 = vld [vmem:[%s4632_s10 + $0xf2] sm:$0xff] }
  0x31   : > { %3991 = vrot.lane.b32.xlu0 %v3990_v8, %s4565_s20  ;;  %3996 = vrot.lane.b32.xlu1 %v3995_v11, %s4564_s15  ;;  %v4060_v8 = vpack.i.bf16 %v4842_v36, %v3550_v4  ;;  %v3615_v11 = vld [vmem:[%s4632_s10 + $0xaa] sm:$0xff]  ;;  %v3522_v36 = vld [vmem:[%s4632_s10 + $0xb2] sm:$0xff] }
  0x32   : > { %3803 = vmatprep.subr.bf16.mxu0 %v4563_v3  ;;  %3737 = vmatprep.mubr.msk.f32.mxu1 %vm1283_vm0, %v3615_v11  ;;  %v4115_v38 = vpack.i.bf16 %v3582_v7, %v3522_v36 }
  0x33   : > { %3738 = vmatmul.mubr.msk.f32.gmra.mrb[10].mxu1 %vm1283_vm0, %v3616_v12  ;;  %v4993_v12 = vld [vmem:[%s4632_s10 + $0xf2] sm:$0xff] }
  0x34   : > { %3805 = vmatpush1.bf16.msra.mxu0 %v3804_v35  ;;  %3740 = vmatprep.mubr.msk.f32.mxu1 %vm1283_vm0, %v3617_v28  ;;  %v3585_v35 = vld [vmem:[%s4632_s10 + $0xc1] sm:$0xff] }
  0x35   : > { %4001 = vrot.lane.b32.xlu0 %v4000_v21, %s4566_s23  ;;  %4006 = vrot.lane.b32.xlu1 %v4005_v22, %s4565_s20  ;;  %v3552_v21 = vld [vmem:[%s4632_s10 + $0xb0] sm:$0xff]  ;;  %v4110_v37 = vpack.i.bf16 %v3551_v10, %v3585_v35 }
  0x36   : > { %3806 = vmatprep.subr.bf16.mxu0 %v4563_v3  ;;  %v3584_v22 = vld [vmem:[%s4632_s10 + $0xb1] sm:$0xff]  ;;  %v4090_v23 = vpack.i.bf16 %v3518_v59, %v3552_v21 }
  0x37   : > { %v4095_v24 = vpack.i.bf16 %v3550_v4, %v3584_v22  ;;  %v4145_v55 = vpack.i.bf16 %v3584_v22, %v3524_v53  ;;  %v4979_v4 = vld [vmem:[%s4632_s10 + $0xf1] sm:$0xff]  ;;  %v5013_v22 = vld [vmem:[%s4632_s10 + $0x109] sm:$0xff] }
  0x38   : > { %3808 = vmatpush1.bf16.msra.mxu0 %v3807_v43 }
  0x39   : > { %4011 = vrot.lane.b32.xlu0 %v4010_v31, %s4564_s15  ;;  %4016 = vrot.lane.b32.xlu1 %v4015_v32, %s4566_s23  ;;  %v3618_v31 = vld [vmem:[%s4632_s10 + $0xca] sm:$0xff]  ;;  %v4100_v32 = vpack.i.bf16 %v3581_v58, %v3521_v25  ;;  %v4200_v25 = vpack.i.bf16 %v3557_v61, %v5013_v22 }
  0x3a   : > { %3809 = vmatprep.subr.bf16.mxu0 %v4563_v3  ;;  %3741 = vmatmul.mubr.msk.f32.gmra.mrb[12].mxu1 %vm1283_vm0, %v3618_v31  ;;  %v5033_v31 = vld [vmem:[%s4632_s10 + $0x110] sm:$0xff] }
  0x3b   : > { %3743 = vmatprep.mubr.msk.f32.mxu1 %vm1283_vm0, %v3619_v47 }
  0x3c   : > { %3811 = vmatpush1.bf16.msra.mxu0 %v3810_v52  ;;  %v3587_v52 = vld [vmem:[%s4632_s10 + $0xd9] sm:$0xff] }
  0x3d   : > { %4021 = vrot.lane.b32.xlu0 %v4020_v39, %s4565_s20  ;;  %4026 = vrot.lane.b32.xlu1 %v4025_v40, %s4564_s15  ;;  %v3554_v39 = vld [vmem:[%s4632_s10 + $0xc8] sm:$0xff]  ;;  %v4140_v54 = vpack.i.bf16 %v3553_v27, %v3587_v52  ;;  %v5026_v27 = vld [vmem:[%s4632_s10 + $0x13a] sm:$0xff] }
  0x3e   : > { %3812 = vmatprep.subr.bf16.mxu0 %v4563_v3  ;;  %v3586_v40 = vld [vmem:[%s4632_s10 + $0xc9] sm:$0xff]  ;;  %v4120_v42 = vpack.i.bf16 %v3520_v5, %v3554_v39 }
  0x3f   : > { %v4125_v43 = vpack.i.bf16 %v3552_v21, %v3586_v40  ;;  %v3526_v5 = vld [vmem:[%s4632_s10 + $0xe2] sm:$0xff] }
  0x40   : > { %3814 = vmatpush1.bf16.msra.mxu0 %v3813_v60  ;;  %v3525_v60 = vld [vmem:[%s4632_s10 + $0xda] sm:$0xff]  ;;  %v4175_v7 = vpack.i.bf16 %v3586_v40, %v3526_v5 }
  0x41   : > { %4031 = vrot.lane.b32.xlu0 %v4030_v48, %s4566_s23  ;;  %4036 = vrot.lane.b32.xlu1 %v4035_v49, %s4565_s20  ;;  %v3620_v48 = vld [vmem:[%s4632_s10 + $0xe2] sm:$0xff]  ;;  %v4130_v49 = vpack.i.bf16 %v3583_v17, %v3523_v46  ;;  %v5000_v17 = vld [vmem:[%s4632_s10 + $0x112] sm:$0xff] }
  0x42   : > { %3815 = vmatprep.subr.bf16.mxu0 %v4563_v3  ;;  %3744 = vmatmul.mubr.msk.f32.gmra.mrb[14].mxu1 %vm1283_vm0, %v3620_v48  ;;  %v5058_v40 = vld [vmem:[%s4632_s10 + $0x120] sm:$0xff] }
  0x43   : > { %3746 = vmatprep.mubr.msk.f32.mxu1 %vm1283_vm0, %v3621_v62 }
  0x44   : > { %3817 = vmatpush1.bf16.msra.mxu0 %v3816_v6  ;;  %v4170_v6 = vpack.i.bf16 %v3555_v45, %v4979_v4 }
  0x45   : > { %4041 = vrot.lane.b32.xlu0 %v4040_v56, %s4564_s15  ;;  %4046 = vrot.lane.b32.xlu1 %v4045_v57, %s4566_s23  ;;  %v3556_v56 = vld [vmem:[%s4632_s10 + $0xe0] sm:$0xff] }
  0x46   : > { %3826 = vmatprep.subr.bf16.mxu0 %v4563_v3  ;;  %v3588_v57 = vld [vmem:[%s4632_s10 + $0xe1] sm:$0xff]  ;;  %v4150_v58 = vpack.i.bf16 %v3522_v36, %v3556_v56  ;;  %3747 = vmatmul.mubr.msk.f32.gmra.mrb[16].mxu1 %vm1283_vm0, %v3622_v0  ;;  %v5046_v36 = vld [vmem:[%s4632_s10 + $0x152] sm:$0xff] }
  0x47   : > { %v4155_v59 = vpack.i.bf16 %v3554_v39, %v3588_v57 }
  0x49   : > { %4051 = vrot.lane.b32.xlu0 %v4050_v1, %s4565_s20  ;;  %4056 = vrot.lane.b32.xlu1 %v4055_v2, %s4564_s15  ;;  %v4160_v1 = vpack.i.bf16 %v3585_v35, %v3525_v60  ;;  %v4165_v2 = vpack.i.bf16 %v3523_v46, %v3557_v61  ;;  %v4210_v35 = vpack.i.bf16 %v3526_v5, %v5033_v31  ;;  %v5064_v46 = vld [vmem:[%s4632_s10 + $0x15a] sm:$0xff] }
  0x4d   : > { %4061 = vrot.lane.b32.xlu0 %v4060_v8, %s4566_s23  ;;  %4066 = vrot.lane.b32.xlu1 %v4065_v9, %s4565_s20  ;;  %v3558_v8 = vld [vmem:[%s4632_s10 + $0xf8] sm:$0xff] }
  0x4e   : > { %v4987_v9 = vld [vmem:[%s4632_s10 + $0xf9] sm:$0xff]  ;;  %v4180_v10 = vpack.i.bf16 %v3524_v53, %v3558_v8 }
  0x4f   : > { %v4185_v11 = vpack.i.bf16 %v3556_v56, %v4987_v9 }
  0x51   : > { %4071 = vrot.lane.b32.xlu0 %v4070_v14, %s4564_s15  ;;  %4076 = vrot.lane.b32.xlu1 %v4075_v15, %s4566_s23  ;;  %v4996_v14 = vld [vmem:[%s4632_s10 + $0x108] sm:$0xff] }
  0x52   : > { %v3623_v15 = vld [vmem:[%s4632_s10 + $0x10a] sm:$0xff]  ;;  %v4195_v21 = vpack.i.bf16 %v3525_v60, %v4996_v14  ;;  %v5083_v60 = vld [vmem:[%s4632_s10 + $0x172] sm:$0xff] }
  0x53   : > { %3749 = vmatprep.mubr.msk.f32.mxu1 %vm1283_vm0, %v3623_v15 }
  0x54   : > { %3750 = vmatmul.mubr.msk.f32.gmra.mrb[18].mxu1 %vm1283_vm0, %v5000_v17 }
  0x55   : > { %4081 = vrot.lane.b32.xlu0 %v4080_v19, %s4565_s20  ;;  %4086 = vrot.lane.b32.xlu1 %v4085_v20, %s4564_s15  ;;  %v4190_v19 = vpack.i.bf16 %v3587_v52, %v4993_v12  ;;  %v5006_v20 = vld [vmem:[%s4632_s10 + $0x122] sm:$0xff] }
  0x56   : > { %3752 = vmatprep.mubr.msk.f32.mxu1 %vm1283_vm0, %v5006_v20  ;;  %v225_v52 = vld [vmem:[%s4632_s10] sm:$0xff] }
  0x59   : > { %4091 = vrot.lane.b32.xlu0 %v4090_v23, %s4566_s23  ;;  %4096 = vrot.lane.b32.xlu1 %v4095_v24, %s4565_s20  ;;  %v5018_v23 = vld [vmem:[%s4632_s10 + $0xfa] sm:$0xff]  ;;  %v5021_v24 = vld [vmem:[%s4632_s10 + $0x12a] sm:$0xff] }
  0x5a   : > { %3753 = vmatmul.mubr.msk.f32.gmra.mrb[20].mxu1 %vm1283_vm0, %v5021_v24  ;;  %v4205_v28 = vpack.i.bf16 %v3588_v57, %v5018_v23 }
  0x5b   : > { %3755 = vmatprep.mubr.msk.f32.mxu1 %vm1283_vm0, %v5026_v27 }
  0x5d   : > { %4101 = vrot.lane.b32.xlu0 %v4100_v32, %s4564_s15  ;;  %4106 = vrot.lane.b32.xlu1 %v4105_v33, %s4566_s23  ;;  %v5038_v32 = vld [vmem:[%s4632_s10 + $0x111] sm:$0xff]  ;;  %v5041_v33 = vld [vmem:[%s4632_s10 + $0x142] sm:$0xff] }
  0x5e   : > { %3756 = vmatmul.mubr.msk.f32.gmra.mrb[22].mxu1 %vm1283_vm0, %v5041_v33 }
  0x5f   : > { %3758 = vmatprep.mubr.msk.f32.mxu1 %vm1283_vm0, %v5046_v36 }
  0x61   : > { %4111 = vrot.lane.b32.xlu0 %v4110_v37, %s4565_s20  ;;  %4116 = vrot.lane.b32.xlu1 %v4115_v38, %s4564_s15  ;;  %v4215_v37 = vpack.i.bf16 %v3558_v8, %v5038_v32  ;;  %v5053_v38 = vld [vmem:[%s4632_s10 + $0x10a] sm:$0xff] }
  0x62   : > { %v4220_v48 = vpack.i.bf16 %v4979_v4, %v5053_v38  ;;  %3759 = vmatmul.mubr.msk.f32.gmra.mrb[24].mxu1 %vm1283_vm0, %v5064_v46  ;;  %v5093_v4 = vld [vmem:[%s4632_s10 + $0x182] sm:$0xff] }
  0x63   : > { %v226_v8 = vld [vmem:[%s4632_s10 + $0x8] sm:$0xff] }
  0x65   : > { %4121 = vrot.lane.b32.xlu0 %v4120_v42, %s4566_s23  ;;  %4126 = vrot.lane.b32.xlu1 %v4125_v43, %s4565_s20  ;;  %v5061_v43 = vld [vmem:[%s4632_s10 + $0x121] sm:$0xff] }
  0x69   : > { %4131 = vrot.lane.b32.xlu0 %v4130_v49, %s4564_s15  ;;  %4136 = vrot.lane.b32.xlu1 %v4135_v50, %s4566_s23  ;;  %v5070_v49 = vld [vmem:[%s4632_s10 + $0x16a] sm:$0xff]  ;;  %v4225_v50 = vpack.i.bf16 %v4993_v12, %v5058_v40 }
  0x6a   : > { %3761 = vmatprep.mubr.msk.f32.mxu1 %vm1283_vm0, %v5070_v49  ;;  %v5108_v12 = vld [vmem:[%s4632_s10 + $0x129] sm:$0xff] }
  0x6b   : > { %3762 = vmatmul.mubr.msk.f32.gmra.mrb[26].mxu1 %vm1283_vm0, %v5083_v60 }
  0x6c   : > { %3764 = vmatprep.mubr.msk.f32.mxu1 %vm1283_vm0, %v5093_v4 }
  0x6d   : > { %4141 = vrot.lane.b32.xlu0 %v4140_v54, %s4565_s20  ;;  %4146 = vrot.lane.b32.xlu1 %v4145_v55, %s4564_s15  ;;  %v4230_v54 = vpack.i.bf16 %v4996_v14, %v5061_v43 }
  0x71   : > { %4151 = vrot.lane.b32.xlu0 %v4150_v58, %s4566_s23  ;;  %4156 = vrot.lane.b32.xlu1 %v4155_v59, %s4565_s20 }
  0x75   : > { %4161 = vrot.lane.b32.xlu0 %v4160_v1, %s4564_s15  ;;  %4166 = vrot.lane.b32.xlu1 %v4165_v2, %s4566_s23  ;;  %v5090_v2 = vld [vmem:[%s4632_s10 + $0x128] sm:$0xff] }
  0x79   : > { %4171 = vrot.lane.b32.xlu0 %v4170_v6, %s4565_s20  ;;  %4176 = vrot.lane.b32.xlu1 %v4175_v7, %s4564_s15  ;;  %v4235_v7 = vpack.i.bf16 %v4987_v9, %v5000_v17 }
  0x7d   : > { %4181 = vrot.lane.b32.xlu0 %v4180_v10, %s4566_s23  ;;  %4186 = vrot.lane.b32.xlu1 %v4185_v11, %s4565_s20 }
  0x81   : > { %4191 = vrot.lane.b32.xlu0 %v4190_v19, %s4564_s15  ;;  %4196 = vrot.lane.b32.xlu1 %v4195_v21, %s4566_s23  ;;  %v4240_v21 = vpack.i.bf16 %v5018_v23, %v5090_v2  ;;  %v4245_v23 = vpack.i.bf16 %v5033_v31, %v5108_v12  ;;  %v4250_v31 = vpack.i.bf16 %v5013_v22, %v5006_v20 }
  0x85   : > { %4201 = vrot.lane.b32.xlu0 %v4200_v25, %s4565_s20  ;;  %4206 = vrot.lane.b32.xlu1 %v4205_v28, %s4564_s15 }
  0x87   : > { %v3922_v39 = vpop.permute.xlu0 %3921  ;;  %v3932_v42 = vpop.permute.xlu1 %3931 }
  0x88   : > { %v3924_v45 = vunpack.i.h.bf16 %v3922_v39  ;;  %v3923_v47 = vunpack.i.l.bf16 %v3922_v39  ;;  %v3934_v55 = vunpack.i.h.bf16 %v3932_v42  ;;  %v3933_v56 = vunpack.i.l.bf16 %v3932_v42 }
  0x89   : > { %4211 = vrot.lane.b32.xlu0 %v4210_v35, %s4566_s23  ;;  %4216 = vrot.lane.b32.xlu1 %v4215_v37, %s4565_s20  ;;  %v5117_v37 = vld [vmem:[%s4632_s10 + $0x18a] sm:$0xff] }
  0x8a   : > { %v1382_v0 = vsel %vm1283_vm0, %v4691_v34, %v3923_v47  ;;  %v1284_v1 = vsel %vm1283_vm0, %v225_v52, %v3924_v45  ;;  %3765 = vmatmul.mubr.msk.f32.gmra.mrb[28].mxu1 %vm1283_vm0, %v5117_v37 }
  0x8b   : > { %v3927_v53 = vpop.permute.xlu0 %3926  ;;  %v3937_v59 = vpop.permute.xlu1 %3936 }
  0x8c   : > { %v3929_v57 = vunpack.i.h.bf16 %v3927_v53  ;;  %v3928_v58 = vunpack.i.l.bf16 %v3927_v53  ;;  %v3939_v61 = vunpack.i.h.bf16 %v3937_v59  ;;  %v3938_v62 = vunpack.i.l.bf16 %v3937_v59 }
  0x8d   : > { %4221 = vrot.lane.b32.xlu0 %v4220_v48, %s4564_s15  ;;  %4226 = vrot.lane.b32.xlu1 %v4225_v50, %s4566_s23  ;;  %v5129_v48 = vld [vmem:[%s4632_s10 + $0x138] sm:$0xff] }
  0x8e   : > { %v1414_v5 = vsel %vm1316_vm1, %v1382_v0, %v3928_v58  ;;  %v1317_v6 = vsel %vm1316_vm1, %v1284_v1, %v3929_v57  ;;  %v1383_v28 = vsel %vm1283_vm0, %v4715_v44, %v3938_v62  ;;  %v1285_v35 = vsel %vm1283_vm0, %v226_v8, %v3939_v61 }
  0x8f   : > { %v3942_v34 = vpop.permute.xlu0 %3941  ;;  %v1446_v10 = vsel %vm1349_vm2, %v1414_v5, %v3933_v56  ;;  %v1350_v11 = vsel %vm1349_vm2, %v1317_v6, %v3934_v55  ;;  %v3947_v19 = vpop.permute.xlu1 %3946  ;;  %v5135_v56 = vld [vmem:[%s4632_s10 + $0x139] sm:$0xff]  ;;  %v4255_v57 = vpack.i.bf16 %v5053_v38, %v5129_v48 }
  0x90   : > { %v3944_v14 = vunpack.i.h.bf16 %v3942_v34  ;;  %v3943_v15 = vunpack.i.l.bf16 %v3942_v34  ;;  %1681 = vmatprep.mubr.f32.mxu0 %v1446_v10  ;;  %v3949_v9 = vunpack.i.h.bf16 %v3947_v19  ;;  %v3948_v25 = vunpack.i.l.bf16 %v3947_v19  ;;  %v5158_v10 = vld [vmem:[%s4632_s10 + $0x141] sm:$0xff] }
  0x91   : > { %4231 = vrot.lane.b32.xlu0 %v4230_v54, %s4565_s20  ;;  %1682 = vmatmul.mubr.f32.vlgmr.msra.gmra.mrb[0].mxu0 %v1350_v11  ;;  %v4260_v22 = vpack.i.bf16 %v5058_v40, %v5135_v56  ;;  %v4265_v34 = vpack.i.bf16 %v5038_v32, %v5021_v24 }
  0x92   : > { %4236 = vrot.lane.b32.xlu1 %v4235_v7, %s4564_s15  ;;  %v1415_v39 = vsel %vm1316_vm1, %v1383_v28, %v3943_v15  ;;  %v1318_v42 = vsel %vm1316_vm1, %v1285_v35, %v3944_v14 }
  0x93   : > { %v3952_v45 = vpop.permute.xlu0 %3951  ;;  %v1447_v44 = vsel %vm1349_vm2, %v1415_v39, %v3948_v25  ;;  %v1351_v47 = vsel %vm1349_vm2, %v1318_v42, %v3949_v9  ;;  %v3957_v53 = vpop.permute.xlu1 %3956 }
  0x94   : > { %v3954_v50 = vunpack.i.h.bf16 %v3952_v45  ;;  %v3953_v52 = vunpack.i.l.bf16 %v3952_v45  ;;  %1686 = vmatprep.mubr.f32.mxu0 %v1447_v44  ;;  %v3959_v54 = vunpack.i.h.bf16 %v3957_v53  ;;  %v3958_v55 = vunpack.i.l.bf16 %v3957_v53  ;;  %v5175_v45 = vld [vmem:[%s4632_s10 + $0x150] sm:$0xff] }
  0x95   : > { %4241 = vrot.lane.b32.xlu0 %v4240_v21, %s4566_s23  ;;  %1687 = vmatmul.mubr.f32.gmra.mrb[2].mxu0 %v1351_v47  ;;  %v4285_v53 = vpack.i.bf16 %v5006_v20, %v5175_v45 }
  0x96   : > { %4246 = vrot.lane.b32.xlu1 %v4245_v23, %s4565_s20  ;;  %v1384_v58 = vsel %vm1283_vm0, %v4646_v16, %v3953_v52  ;;  %v1286_v59 = vsel %vm1283_vm0, %v4643_v13, %v3954_v50  ;;  %v5150_v16 = vld [vmem:[%s4632_s10 + $0x140] sm:$0xff]  ;;  %v4280_v52 = vpack.i.bf16 %v5061_v43, %v5026_v27 }
  0x97   : > { %v3962_v61 = vpop.permute.xlu0 %3961  ;;  %v3967_v1 = vpop.permute.xlu1 %3966  ;;  %v1416_v38 = vsel %vm1316_vm1, %v1384_v58, %v3958_v55  ;;  %v1319_v7 = vsel %vm1316_vm1, %v1286_v59, %v3959_v54  ;;  %v4270_v19 = vpack.i.bf16 %v5000_v17, %v5150_v16  ;;  %v4275_v17 = vpack.i.bf16 %v5090_v2, %v5158_v10  ;;  %v5181_v2 = vld [vmem:[%s4632_s10 + $0x151] sm:$0xff] }
  0x98   : > { %v3964_v62 = vunpack.i.h.bf16 %v3962_v61  ;;  %v3963_v0 = vunpack.i.l.bf16 %v3962_v61  ;;  %v3969_v5 = vunpack.i.h.bf16 %v3967_v1  ;;  %v3968_v6 = vunpack.i.l.bf16 %v3967_v1 }
  0x99   : > { %4251 = vrot.lane.b32.xlu0 %v4250_v31, %s4564_s15  ;;  %v4290_v43 = vpack.i.bf16 %v5129_v48, %v5181_v2 }
  0x9a   : > { %4256 = vrot.lane.b32.xlu1 %v4255_v57, %s4566_s23  ;;  %v1448_v13 = vsel %vm1349_vm2, %v1416_v38, %v3963_v0  ;;  %v1352_v8 = vsel %vm1349_vm2, %v1319_v7, %v3964_v62  ;;  %v1385_v25 = vsel %vm1283_vm0, %v4677_v30, %v3968_v6  ;;  %v1287_v32 = vsel %vm1283_vm0, %v4674_v29, %v3969_v5  ;;  %v5204_v5 = vld [vmem:[%s4632_s10 + $0x159] sm:$0xff] }
  0x9b   : > { %v3972_v40 = vpop.permute.xlu0 %3971  ;;  %1691 = vmatprep.mubr.f32.mxu0 %v1448_v13  ;;  %v3977_v15 = vpop.permute.xlu1 %3976 }
  0x9c   : > { %v3974_v11 = vunpack.i.h.bf16 %v3972_v40  ;;  %v3973_v14 = vunpack.i.l.bf16 %v3972_v40  ;;  %1692 = vmatmul.mubr.f32.gmra.mrb[4].mxu0 %v1352_v8  ;;  %v3979_v21 = vunpack.i.h.bf16 %v3977_v15  ;;  %v3978_v9 = vunpack.i.l.bf16 %v3977_v15 }
  0x9d   : > { %4261 = vrot.lane.b32.xlu0 %v4260_v22, %s4565_s20  ;;  %v4295_v22 = vpack.i.bf16 %v5108_v12, %v5041_v33 }
  0x9e   : > { %4266 = vrot.lane.b32.xlu1 %v4265_v34, %s4564_s15  ;;  %v1417_v28 = vsel %vm1316_vm1, %v1385_v25, %v3973_v14  ;;  %v1320_v35 = vsel %vm1316_vm1, %v1287_v32, %v3974_v11 }
  0x9f   : > { %v3982_v39 = vpop.permute.xlu0 %3981  ;;  %v1449_v42 = vsel %vm1349_vm2, %v1417_v28, %v3978_v9  ;;  %v1353_v23 = vsel %vm1349_vm2, %v1320_v35, %v3979_v21  ;;  %v3987_v29 = vpop.permute.xlu1 %3986  ;;  %v5221_v9 = vld [vmem:[%s4632_s10 + $0x168] sm:$0xff] }
  0xa0   : > { %v3984_v30 = vunpack.i.h.bf16 %v3982_v39  ;;  %v3983_v44 = vunpack.i.l.bf16 %v3982_v39  ;;  %1696 = vmatprep.mubr.f32.mxu0 %v1449_v42  ;;  %v3989_v47 = vunpack.i.h.bf16 %v3987_v29  ;;  %v3988_v50 = vunpack.i.l.bf16 %v3987_v29 }
  0xa1   : > { %4271 = vrot.lane.b32.xlu0 %v4270_v19, %s4566_s23  ;;  %1697 = vmatmul.mubr.f32.gmra.mrb[6].mxu0 %v1353_v23  ;;  %v4315_v39 = vpack.i.bf16 %v5026_v27, %v5221_v9 }
  0xa2   : > { %4276 = vrot.lane.b32.xlu1 %v4275_v17, %s4565_s20  ;;  %v1386_v54 = vsel %vm1283_vm0, %v4709_v41, %v3983_v44  ;;  %v1288_v55 = vsel %vm1283_vm0, %v4650_v18, %v3984_v30  ;;  %v5196_v41 = vld [vmem:[%s4632_s10 + $0x158] sm:$0xff]  ;;  %v5228_v17 = vld [vmem:[%s4632_s10 + $0x169] sm:$0xff] }
  0xa3   : > { %v3992_v31 = vpop.permute.xlu0 %3991  ;;  %v3997_v59 = vpop.permute.xlu1 %3996  ;;  %v1418_v20 = vsel %vm1316_vm1, %v1386_v54, %v3988_v50  ;;  %v1321_v0 = vsel %vm1316_vm1, %v1288_v55, %v3989_v47  ;;  %v4300_v13 = vpack.i.bf16 %v5021_v24, %v5196_v41  ;;  %v4305_v24 = vpack.i.bf16 %v5150_v16, %v5204_v5 }
  0xa4   : > { %v3994_v57 = vunpack.i.h.bf16 %v3992_v31  ;;  %v3993_v58 = vunpack.i.l.bf16 %v3992_v31  ;;  %v3999_v61 = vunpack.i.h.bf16 %v3997_v59  ;;  %v3998_v62 = vunpack.i.l.bf16 %v3997_v59  ;;  %v5252_v59 = vld [vmem:[%s4632_s10 + $0x171] sm:$0xff] }
  0xa5   : > { %4281 = vrot.lane.b32.xlu0 %v4280_v52, %s4564_s15  ;;  %v4310_v16 = vpack.i.bf16 %v5135_v56, %v5046_v36  ;;  %v4320_v56 = vpack.i.bf16 %v5175_v45, %v5228_v17  ;;  %v4325_v31 = vpack.i.bf16 %v5158_v10, %v5064_v46  ;;  %v3484_v45 = vld [vmem:[%s4632_s10 + $0x69] sm:$0xff] }
  0xa6   : > { %4286 = vrot.lane.b32.xlu1 %v4285_v53, %s4566_s23  ;;  %v1450_v18 = vsel %vm1349_vm2, %v1418_v20, %v3993_v58  ;;  %v1354_v1 = vsel %vm1349_vm2, %v1321_v0, %v3994_v57  ;;  %v1387_v12 = vsel %vm1283_vm0, %v4734_v51, %v3998_v62  ;;  %v1289_v40 = vsel %vm1283_vm0, %v4668_v26, %v3999_v61  ;;  %v231_v51 = vld [vmem:[%s4632_s10 + $0x48] sm:$0xff]  ;;  %v5242_v53 = vld [vmem:[%s4632_s10 + $0x170] sm:$0xff] }
  0xa7   : > { %v4002_v48 = vpop.permute.xlu0 %4001  ;;  %1701 = vmatprep.mubr.f32.mxu0 %v1450_v18  ;;  %v4007_v7 = vpop.permute.xlu1 %4006  ;;  %v232_v57 = vld [vmem:[%s4632_s10 + $0x50] sm:$0xff]  ;;  %v4330_v20 = vpack.i.bf16 %v5041_v33, %v5242_v53 }
  0xa8   : > { %v4004_v6 = vunpack.i.h.bf16 %v4002_v48  ;;  %v4003_v38 = vunpack.i.l.bf16 %v4002_v48  ;;  %1702 = vmatmul.mubr.f32.gmra.mrb[8].mxu0 %v1354_v1  ;;  %v4009_v8 = vunpack.i.h.bf16 %v4007_v7  ;;  %v4008_v34 = vunpack.i.l.bf16 %v4007_v7 }
  0xa9   : > { %4291 = vrot.lane.b32.xlu0 %v4290_v43, %s4565_s20 }
  0xaa   : > { %4296 = vrot.lane.b32.xlu1 %v4295_v22, %s4564_s15  ;;  %v1419_v11 = vsel %vm1316_vm1, %v1387_v12, %v4003_v38  ;;  %v1322_v14 = vsel %vm1316_vm1, %v1289_v40, %v4004_v6  ;;  %v4335_v6 = vpack.i.bf16 %v5196_v41, %v5252_v59  ;;  %v4340_v41 = vpack.i.bf16 %v5181_v2, %v5070_v49 }
  0xab   : > { %v4012_v15 = vpop.permute.xlu0 %4011  ;;  %v1451_v19 = vsel %vm1349_vm2, %v1419_v11, %v4008_v34  ;;  %v1355_v21 = vsel %vm1349_vm2, %v1322_v14, %v4009_v8  ;;  %v4017_v32 = vpop.permute.xlu1 %4016  ;;  %v3485_v8 = vld [vmem:[%s4632_s10 + $0x79] sm:$0xff] }
  0xac   : > { %v4014_v25 = vunpack.i.h.bf16 %v4012_v15  ;;  %v4013_v26 = vunpack.i.l.bf16 %v4012_v15  ;;  %1706 = vmatprep.mubr.f32.mxu0 %v1451_v19  ;;  %v4019_v28 = vunpack.i.h.bf16 %v4017_v32  ;;  %v4018_v35 = vunpack.i.l.bf16 %v4017_v32  ;;  %v233_v34 = vld [vmem:[%s4632_s10 + $0x60] sm:$0xff] }
  0xad   : > { %4301 = vrot.lane.b32.xlu0 %v4300_v13, %s4566_s23  ;;  %1707 = vmatmul.mubr.f32.gmra.mrb[10].mxu0 %v1355_v21  ;;  %v5267_v13 = vld [vmem:[%s4632_s10 + $0x180] sm:$0xff] }
  0xae   : > { %4306 = vrot.lane.b32.xlu1 %v4305_v24, %s4565_s20  ;;  %v1388_v42 = vsel %vm1283_vm0, %v4769_v63, %v4013_v26  ;;  %v1290_v23 = vsel %vm1283_vm0, %v231_v51, %v4014_v25  ;;  %v5275_v15 = vld [vmem:[%s4632_s10 + $0x181] sm:$0xff]  ;;  %v4345_v19 = vpack.i.bf16 %v5046_v36, %v5267_v13 }
  0xaf   : > { %v4022_v30 = vpop.permute.xlu0 %4021  ;;  %v4027_v47 = vpop.permute.xlu1 %4026  ;;  %v1420_v27 = vsel %vm1316_vm1, %v1388_v42, %v4018_v35  ;;  %v1323_v63 = vsel %vm1316_vm1, %v1290_v23, %v4019_v28  ;;  %v4350_v2 = vpack.i.bf16 %v5221_v9, %v5275_v15  ;;  %v5288_v42 = vld [vmem:[%s4632_s10 + $0x188] sm:$0xff] }
  0xb0   : > { %v4024_v44 = vunpack.i.h.bf16 %v4022_v30  ;;  %v4023_v29 = vunpack.i.l.bf16 %v4022_v30  ;;  %v4029_v50 = vunpack.i.h.bf16 %v4027_v47  ;;  %v4028_v52 = vunpack.i.l.bf16 %v4027_v47  ;;  %v3486_v9 = vld [vmem:[%s4632_s10 + $0x81] sm:$0xff] }
  0xb1   : > { %4311 = vrot.lane.b32.xlu0 %v4310_v16, %s4564_s15 }
  0xb2   : > { %4316 = vrot.lane.b32.xlu1 %v4315_v39, %s4566_s23  ;;  %v1452_v54 = vsel %vm1349_vm2, %v1420_v27, %v4023_v29  ;;  %v1356_v55 = vsel %vm1349_vm2, %v1323_v63, %v4024_v44  ;;  %v1389_v10 = vsel %vm1283_vm0, %v3484_v45, %v4028_v52  ;;  %v1291_v1 = vsel %vm1283_vm0, %v232_v57, %v4029_v50  ;;  %v234_v29 = vld [vmem:[%s4632_s10 + $0x68] sm:$0xff]  ;;  %v3635_v45 = vld [vmem:[%s4632_s10 + $0x19a] sm:$0xff] }
  0xb3   : > { %v4032_v58 = vpop.permute.xlu0 %4031  ;;  %1711 = vmatprep.mubr.f32.mxu0 %v1452_v54  ;;  %v4037_v62 = vpop.permute.xlu1 %4036  ;;  %v4355_v44 = vpack.i.bf16 %v5204_v5, %v5083_v60  ;;  %v4360_v63 = vpack.i.bf16 %v5064_v46, %v5288_v42  ;;  %3767 = vmatprep.mubr.msk.f32.mxu1 %vm1283_vm0, %v3635_v45 }
  0xb4   : > { %v4034_v43 = vunpack.i.h.bf16 %v4032_v58  ;;  %v4033_v61 = vunpack.i.l.bf16 %v4032_v58  ;;  %1712 = vmatmul.mubr.f32.gmra.mrb[12].mxu0 %v1356_v55  ;;  %v4039_v0 = vunpack.i.h.bf16 %v4037_v62  ;;  %v4038_v18 = vunpack.i.l.bf16 %v4037_v62 }
  0xb5   : > { %4321 = vrot.lane.b32.xlu0 %v4320_v56, %s4565_s20  ;;  %v5298_v56 = vld [vmem:[%s4632_s10 + $0x189] sm:$0xff] }
  0xb6   : > { %4326 = vrot.lane.b32.xlu1 %v4325_v31, %s4564_s15  ;;  %v1421_v22 = vsel %vm1316_vm1, %v1389_v10, %v4033_v61  ;;  %v1324_v48 = vsel %vm1316_vm1, %v1291_v1, %v4034_v43  ;;  %v4365_v46 = vpack.i.bf16 %v5242_v53, %v5298_v56  ;;  %v3487_v43 = vld [vmem:[%s4632_s10 + $0x91] sm:$0xff]  ;;  %v3636_v10 = vld [vmem:[%s4632_s10 + $0x1a2] sm:$0xff] }
  0xb7   : > { %v4042_v38 = vpop.permute.xlu0 %4041  ;;  %v1453_v33 = vsel %vm1349_vm2, %v1421_v22, %v4038_v18  ;;  %v1357_v7 = vsel %vm1349_vm2, %v1324_v48, %v4039_v0  ;;  %v4047_v11 = vpop.permute.xlu1 %4046  ;;  %v3571_v0 = vld [vmem:[%s4632_s10 + $0x198] sm:$0xff]  ;;  %3768 = vmatmul.mubr.msk.f32.gmra.mrb[30].mxu1 %vm1283_vm0, %v3636_v10 }
  0xb8   : > { %v4044_v12 = vunpack.i.h.bf16 %v4042_v38  ;;  %v4043_v40 = vunpack.i.l.bf16 %v4042_v38  ;;  %1716 = vmatprep.mubr.f32.mxu0 %v1453_v33  ;;  %v4049_v14 = vunpack.i.h.bf16 %v4047_v11  ;;  %v4048_v24 = vunpack.i.l.bf16 %v4047_v11  ;;  %v235_v18 = vld [vmem:[%s4632_s10 + $0x78] sm:$0xff] }
  0xb9   : > { %4331 = vrot.lane.b32.xlu0 %v4330_v20, %s4566_s23  ;;  %1717 = vmatmul.mubr.f32.gmra.mrb[14].mxu0 %v1357_v7  ;;  %v4370_v38 = vpack.i.bf16 %v5228_v17, %v5093_v4  ;;  %v3603_v33 = vld [vmem:[%s4632_s10 + $0x199] sm:$0xff]  ;;  %v4375_v7 = vpack.i.bf16 %v5070_v49, %v3571_v0 }
  0xba   : > { %4336 = vrot.lane.b32.xlu1 %v4335_v6, %s4565_s20  ;;  %v1390_v21 = vsel %vm1283_vm0, %v3485_v8, %v4043_v40  ;;  %v1292_v51 = vsel %vm1283_vm0, %v233_v34, %v4044_v12 }
  0xbb   : > { %v4052_v25 = vpop.permute.xlu0 %4051  ;;  %v4057_v28 = vpop.permute.xlu1 %4056  ;;  %v1422_v36 = vsel %vm1316_vm1, %v1390_v21, %v4048_v24  ;;  %v1325_v39 = vsel %vm1316_vm1, %v1292_v51, %v4049_v14  ;;  %v4380_v24 = vpack.i.bf16 %v5267_v13, %v3603_v33  ;;  %v3572_v21 = vld [vmem:[%s4632_s10 + $0x1a0] sm:$0xff] }
  0xbc   : > { %v4054_v26 = vunpack.i.h.bf16 %v4052_v25  ;;  %v4053_v32 = vunpack.i.l.bf16 %v4052_v25  ;;  %v4059_v35 = vunpack.i.h.bf16 %v4057_v28  ;;  %v4058_v16 = vunpack.i.l.bf16 %v4057_v28  ;;  %v236_v13 = vld [vmem:[%s4632_s10 + $0x80] sm:$0xff] }
  0xbd   : > { %4341 = vrot.lane.b32.xlu0 %v4340_v41, %s4564_s15 }
  0xbe   : > { %4346 = vrot.lane.b32.xlu1 %v4345_v19, %s4566_s23  ;;  %v1454_v23 = vsel %vm1349_vm2, %v1422_v36, %v4053_v32  ;;  %v1358_v30 = vsel %vm1349_vm2, %v1325_v39, %v4054_v26  ;;  %v1391_v5 = vsel %vm1283_vm0, %v3486_v9, %v4058_v16  ;;  %v1293_v31 = vsel %vm1283_vm0, %v234_v29, %v4059_v35  ;;  %v3488_v32 = vld [vmem:[%s4632_s10 + $0x99] sm:$0xff] }
  0xbf   : > { %v4062_v47 = vpop.permute.xlu0 %4061  ;;  %1721 = vmatprep.mubr.f32.mxu0 %v1454_v23  ;;  %v4067_v27 = vpop.permute.xlu1 %4066  ;;  %v4385_v26 = vpack.i.bf16 %v5252_v59, %v5117_v37  ;;  %v4390_v39 = vpack.i.bf16 %v5083_v60, %v3572_v21 }
  0xc0   : > { %v4064_v50 = vunpack.i.h.bf16 %v4062_v47  ;;  %v4063_v52 = vunpack.i.l.bf16 %v4062_v47  ;;  %1722 = vmatmul.mubr.f32.gmra.mrb[16].mxu0 %v1358_v30  ;;  %v4069_v54 = vunpack.i.h.bf16 %v4067_v27  ;;  %v4068_v55 = vunpack.i.l.bf16 %v4067_v27  ;;  %v3489_v27 = vld [vmem:[%s4632_s10 + $0xa9] sm:$0xff] }
  0xc1   : > { %4351 = vrot.lane.b32.xlu0 %v4350_v2, %s4565_s20  ;;  %v3604_v2 = vld [vmem:[%s4632_s10 + $0x1a1] sm:$0xff] }
  0xc2   : > { %4356 = vrot.lane.b32.xlu1 %v4355_v44, %s4564_s15  ;;  %v1423_v57 = vsel %vm1316_vm1, %v1391_v5, %v4063_v52  ;;  %v1326_v58 = vsel %vm1316_vm1, %v1293_v31, %v4064_v50  ;;  %v4395_v47 = vpack.i.bf16 %v5288_v42, %v3604_v2 }
  0xc3   : > { %v4072_v61 = vpop.permute.xlu0 %4071  ;;  %v1455_v62 = vsel %vm1349_vm2, %v1423_v57, %v4068_v55  ;;  %v1359_v20 = vsel %vm1349_vm2, %v1326_v58, %v4069_v54  ;;  %v4077_v48 = vpop.permute.xlu1 %4076 }
  0xc4   : > { %v4074_v1 = vunpack.i.h.bf16 %v4072_v61  ;;  %v4073_v22 = vunpack.i.l.bf16 %v4072_v61  ;;  %1726 = vmatprep.mubr.f32.mxu0 %v1455_v62  ;;  %v4079_v6 = vunpack.i.h.bf16 %v4077_v48  ;;  %v4078_v53 = vunpack.i.l.bf16 %v4077_v48  ;;  %v238_v48 = vld [vmem:[%s4632_s10 + $0x98] sm:$0xff] }
  0xc5   : > { %4361 = vrot.lane.b32.xlu0 %v4360_v63, %s4566_s23  ;;  %1727 = vmatmul.mubr.f32.gmra.mrb[18].mxu0 %v1359_v20  ;;  %v237_v63 = vld [vmem:[%s4632_s10 + $0x90] sm:$0xff] }
  0xc6   : > { %4366 = vrot.lane.b32.xlu1 %v4365_v46, %s4565_s20  ;;  %v1392_v8 = vsel %vm1283_vm0, %v3487_v43, %v4073_v22  ;;  %v1294_v34 = vsel %vm1283_vm0, %v235_v18, %v4074_v1  ;;  %v3490_v22 = vld [vmem:[%s4632_s10 + $0xb1] sm:$0xff] }
  0xc7   : > { %v4082_v12 = vpop.permute.xlu0 %4081  ;;  %v4087_v14 = vpop.permute.xlu1 %4086  ;;  %v1424_v19 = vsel %vm1316_vm1, %v1392_v8, %v4078_v53  ;;  %v1327_v49 = vsel %vm1316_vm1, %v1294_v34, %v4079_v6 }
  0xc8   : > { %v4084_v40 = vunpack.i.h.bf16 %v4082_v12  ;;  %v4083_v11 = vunpack.i.l.bf16 %v4082_v12  ;;  %v4089_v4 = vunpack.i.h.bf16 %v4087_v14  ;;  %v4088_v41 = vunpack.i.l.bf16 %v4087_v14 }
  0xc9   : > { %4371 = vrot.lane.b32.xlu0 %v4370_v38, %s4564_s15 }
  0xca   : > { %4376 = vrot.lane.b32.xlu1 %v4375_v7, %s4566_s23  ;;  %v1456_v51 = vsel %vm1349_vm2, %v1424_v19, %v4083_v11  ;;  %v1360_v25 = vsel %vm1349_vm2, %v1327_v49, %v4084_v40  ;;  %v1393_v44 = vsel %vm1283_vm0, %v3488_v32, %v4088_v41  ;;  %v1295_v37 = vsel %vm1283_vm0, %v236_v13, %v4089_v4  ;;  %v3491_v41 = vld [vmem:[%s4632_s10 + $0xc1] sm:$0xff] }
  0xcb   : > { %v4092_v28 = vpop.permute.xlu0 %4091  ;;  %1731 = vmatprep.mubr.f32.mxu0 %v1456_v51  ;;  %v4097_v36 = vpop.permute.xlu1 %4096  ;;  %v239_v19 = vld [vmem:[%s4632_s10 + $0xa8] sm:$0xff] }
  0xcc   : > { %v4094_v35 = vunpack.i.h.bf16 %v4092_v28  ;;  %v4093_v16 = vunpack.i.l.bf16 %v4092_v28  ;;  %1732 = vmatmul.mubr.f32.gmra.mrb[20].mxu0 %v1360_v25  ;;  %v4099_v23 = vunpack.i.h.bf16 %v4097_v36  ;;  %v4098_v30 = vunpack.i.l.bf16 %v4097_v36 }
  0xcd   : > { %4381 = vrot.lane.b32.xlu0 %v4380_v24, %s4565_s20 }
  0xce   : > { %4386 = vrot.lane.b32.xlu1 %v4385_v26, %s4564_s15  ;;  %v1425_v9 = vsel %vm1316_vm1, %v1393_v44, %v4093_v16  ;;  %v1328_v29 = vsel %vm1316_vm1, %v1295_v37, %v4094_v35 }
  0xcf   : > { %v4102_v50 = vpop.permute.xlu0 %4101  ;;  %v1457_v52 = vsel %vm1349_vm2, %v1425_v9, %v4098_v30  ;;  %v1361_v60 = vsel %vm1349_vm2, %v1328_v29, %v4099_v23  ;;  %v4107_v5 = vpop.permute.xlu1 %4106  ;;  %v3492_v9 = vld [vmem:[%s4632_s10 + $0xc9] sm:$0xff] }
  0xd0   : > { %v4104_v54 = vunpack.i.h.bf16 %v4102_v50  ;;  %v4103_v55 = vunpack.i.l.bf16 %v4102_v50  ;;  %1736 = vmatprep.mubr.f32.mxu0 %v1457_v52  ;;  %v4109_v31 = vunpack.i.h.bf16 %v4107_v5  ;;  %v4108_v45 = vunpack.i.l.bf16 %v4107_v5  ;;  %v240_v29 = vld [vmem:[%s4632_s10 + $0xb0] sm:$0xff] }
  0xd1   : > { %4391 = vrot.lane.b32.xlu0 %v4390_v39, %s4566_s23  ;;  %1737 = vmatmul.mubr.f32.gmra.mrb[22].mxu0 %v1361_v60 }
  0xd2   : > { %4396 = vrot.lane.b32.xlu1 %v4395_v47, %s4565_s20  ;;  %v1394_v42 = vsel %vm1283_vm0, %v3489_v27, %v4103_v55  ;;  %v1296_v57 = vsel %vm1283_vm0, %v237_v63, %v4104_v54  ;;  %s3677_s20 = sshll.u32 %s6175_s19, 8 }
  0xd3   : > { %v4112_v58 = vpop.permute.xlu0 %4111  ;;  %v4117_v61 = vpop.permute.xlu1 %4116  ;;  %v1426_v0 = vsel %vm1316_vm1, %v1394_v42, %v4108_v45  ;;  %v1329_v18 = vsel %vm1316_vm1, %v1296_v57, %v4109_v31  ;;  %s6100_s17 = scalar_lea.vmem %s6173_s5, %s3677_s20 }
  0xd4   : > { %v4114_v46 = vunpack.i.h.bf16 %v4112_v58  ;;  %v4113_v43 = vunpack.i.l.bf16 %v4112_v58  ;;  %v4119_v62 = vunpack.i.h.bf16 %v4117_v61  ;;  %v4118_v20 = vunpack.i.l.bf16 %v4117_v61  ;;  %v3493_v58 = vld [vmem:[%s4632_s10 + $0xd9] sm:$0xff] }
  0xd6   : > { %v1458_v10 = vsel %vm1349_vm2, %v1426_v0, %v4113_v43  ;;  %v1362_v1 = vsel %vm1349_vm2, %v1329_v18, %v4114_v46  ;;  %v1395_v34 = vsel %vm1283_vm0, %v3490_v22, %v4118_v20  ;;  %v1297_v12 = vsel %vm1283_vm0, %v238_v48, %v4119_v62  ;;  %v241_v46 = vld [vmem:[%s4632_s10 + $0xc0] sm:$0xff] }
  0xd7   : > { %v4122_v6 = vpop.permute.xlu0 %4121  ;;  %1741 = vmatprep.mubr.f32.mxu0 %v1458_v10  ;;  %v4127_v33 = vpop.permute.xlu1 %4126 }
  0xd8   : > { %v4124_v53 = vunpack.i.h.bf16 %v4122_v6  ;;  %v4123_v38 = vunpack.i.l.bf16 %v4122_v6  ;;  %1742 = vmatmul.mubr.f32.gmra.mrb[24].mxu0 %v1362_v1  ;;  %v4129_v7 = vunpack.i.h.bf16 %v4127_v33  ;;  %v4128_v8 = vunpack.i.l.bf16 %v4127_v33 }
  0xda   : > { %v1427_v40 = vsel %vm1316_vm1, %v1395_v34, %v4123_v38  ;;  %v1330_v11 = vsel %vm1316_vm1, %v1297_v12, %v4124_v53  ;;  %v3494_v12 = vld [vmem:[%s4632_s10 + $0xe1] sm:$0xff] }
  0xdb   : > { %v4132_v14 = vpop.permute.xlu0 %4131  ;;  %v1459_v24 = vsel %vm1349_vm2, %v1427_v40, %v4128_v8  ;;  %v1363_v4 = vsel %vm1349_vm2, %v1330_v11, %v4129_v7  ;;  %v4137_v51 = vpop.permute.xlu1 %4136  ;;  %v242_v40 = vld [vmem:[%s4632_s10 + $0xc8] sm:$0xff] }
  0xdc   : > { %v4134_v49 = vunpack.i.h.bf16 %v4132_v14  ;;  %v4133_v21 = vunpack.i.l.bf16 %v4132_v14  ;;  %1746 = vmatprep.mubr.f32.mxu0 %v1459_v24  ;;  %v4139_v25 = vunpack.i.h.bf16 %v4137_v51  ;;  %v4138_v26 = vunpack.i.l.bf16 %v4137_v51 }
  0xdd   : > { %1747 = vmatmul.mubr.f32.gmra.mrb[26].mxu0 %v1363_v4 }
  0xde   : > { %v1396_v32 = vsel %vm1283_vm0, %v3491_v41, %v4133_v21  ;;  %v1298_v13 = vsel %vm1283_vm0, %v239_v19, %v4134_v49 }
  0xdf   : > { %v4142_v28 = vpop.permute.xlu0 %4141  ;;  %v4147_v16 = vpop.permute.xlu1 %4146  ;;  %v1428_v23 = vsel %vm1316_vm1, %v1396_v32, %v4138_v26  ;;  %v1331_v30 = vsel %vm1316_vm1, %v1298_v13, %v4139_v25 }
  0xe0   : > { %v4144_v2 = vunpack.i.h.bf16 %v4142_v28  ;;  %v4143_v35 = vunpack.i.l.bf16 %v4142_v28  ;;  %v4149_v36 = vunpack.i.h.bf16 %v4147_v16  ;;  %v4148_v39 = vunpack.i.l.bf16 %v4147_v16  ;;  %v3495_v28 = vld [vmem:[%s4632_s10 + $0xf1] sm:$0xff] }
  0xe2   : > { %v1460_v44 = vsel %vm1349_vm2, %v1428_v23, %v4143_v35  ;;  %v1364_v37 = vsel %vm1349_vm2, %v1331_v30, %v4144_v2  ;;  %v1397_v54 = vsel %vm1283_vm0, %v3492_v9, %v4148_v39  ;;  %v1299_v55 = vsel %vm1283_vm0, %v240_v29, %v4149_v36  ;;  %v243_v2 = vld [vmem:[%s4632_s10 + $0xd8] sm:$0xff] }
  0xe3   : > { %v4152_v47 = vpop.permute.xlu0 %4151  ;;  %1751 = vmatprep.mubr.f32.mxu0 %v1460_v44  ;;  %v4157_v60 = vpop.permute.xlu1 %4156 }
  0xe4   : > { %v4154_v50 = vunpack.i.h.bf16 %v4152_v47  ;;  %v4153_v52 = vunpack.i.l.bf16 %v4152_v47  ;;  %1752 = vmatmul.mubr.f32.gmra.mrb[28].mxu0 %v1364_v37  ;;  %v4159_v27 = vunpack.i.h.bf16 %v4157_v60  ;;  %v4158_v63 = vunpack.i.l.bf16 %v4157_v60 }
  0xe6   : > { %v1429_v5 = vsel %vm1316_vm1, %v1397_v54, %v4153_v52  ;;  %v1332_v31 = vsel %vm1316_vm1, %v1299_v55, %v4154_v50  ;;  %v3496_v55 = vld [vmem:[%s4632_s10 + $0xf9] sm:$0xff] }
  0xe7   : > { %v4162_v45 = vpop.permute.xlu0 %4161  ;;  %v1461_v42 = vsel %vm1349_vm2, %v1429_v5, %v4158_v63  ;;  %v1365_v57 = vsel %vm1349_vm2, %v1332_v31, %v4159_v27  ;;  %v4167_v62 = vpop.permute.xlu1 %4166  ;;  %v244_v5 = vld [vmem:[%s4632_s10 + $0xe0] sm:$0xff] }
  0xe8   : > { %v4164_v43 = vunpack.i.h.bf16 %v4162_v45  ;;  %v4163_v61 = vunpack.i.l.bf16 %v4162_v45  ;;  %1756 = vmatprep.mubr.f32.mxu0 %v1461_v42  ;;  %v4169_v20 = vunpack.i.h.bf16 %v4167_v62  ;;  %v4168_v0 = vunpack.i.l.bf16 %v4167_v62 }
  0xe9   : > { %1757 = vmatmul.mubr.f32.gmra.mrb[30].mxu0 %v1365_v57 }
  0xea   : > { %v1398_v18 = vsel %vm1283_vm0, %v3493_v58, %v4163_v61  ;;  %v1300_v10 = vsel %vm1283_vm0, %v241_v46, %v4164_v43 }
  0xeb   : > { %v4172_v1 = vpop.permute.xlu0 %4171  ;;  %v4177_v6 = vpop.permute.xlu1 %4176  ;;  %v1430_v33 = vsel %vm1316_vm1, %v1398_v18, %v4168_v0  ;;  %v1333_v7 = vsel %vm1316_vm1, %v1300_v10, %v4169_v20 }
  0xec   : > { %v4174_v22 = vunpack.i.h.bf16 %v4172_v1  ;;  %v4173_v48 = vunpack.i.l.bf16 %v4172_v1  ;;  %v4179_v53 = vunpack.i.h.bf16 %v4177_v6  ;;  %v4178_v38 = vunpack.i.l.bf16 %v4177_v6  ;;  %v3497_v1 = vld [vmem:[%s4632_s10 + $0x109] sm:$0xff] }
  0xee   : > { %v1462_v8 = vsel %vm1349_vm2, %v1430_v33, %v4173_v48  ;;  %v1366_v34 = vsel %vm1349_vm2, %v1333_v7, %v4174_v22  ;;  %v1399_v49 = vsel %vm1283_vm0, %v3494_v12, %v4178_v38  ;;  %v1301_v21 = vsel %vm1283_vm0, %v242_v40, %v4179_v53  ;;  %v245_v22 = vld [vmem:[%s4632_s10 + $0xf0] sm:$0xff] }
  0xef   : > { %v4182_v11 = vpop.permute.xlu0 %4181  ;;  %1761 = vmatprep.mubr.f32.mxu0 %v1462_v8  ;;  %v4187_v4 = vpop.permute.xlu1 %4186 }
  0xf0   : > { %v4184_v14 = vunpack.i.h.bf16 %v4182_v11  ;;  %v4183_v24 = vunpack.i.l.bf16 %v4182_v11  ;;  %1762 = vmatmul.mubr.f32.gmra.mrb[32].mxu0 %v1366_v34  ;;  %v4189_v41 = vunpack.i.h.bf16 %v4187_v4  ;;  %v4188_v19 = vunpack.i.l.bf16 %v4187_v4 }
  0xf2   : > { %v1431_v51 = vsel %vm1316_vm1, %v1399_v49, %v4183_v24  ;;  %v1334_v25 = vsel %vm1316_vm1, %v1301_v21, %v4184_v14  ;;  %v3498_v21 = vld [vmem:[%s4632_s10 + $0x111] sm:$0xff] }
  0xf3   : > { %v4192_v26 = vpop.permute.xlu0 %4191  ;;  %v1463_v32 = vsel %vm1349_vm2, %v1431_v51, %v4188_v19  ;;  %v1367_v13 = vsel %vm1349_vm2, %v1334_v25, %v4189_v41  ;;  %v4197_v36 = vpop.permute.xlu1 %4196  ;;  %v246_v51 = vld [vmem:[%s4632_s10 + $0xf8] sm:$0xff] }
  0xf4   : > { %v4194_v35 = vunpack.i.h.bf16 %v4192_v26  ;;  %v4193_v16 = vunpack.i.l.bf16 %v4192_v26  ;;  %1766 = vmatprep.mubr.f32.mxu0 %v1463_v32  ;;  %v4199_v39 = vunpack.i.h.bf16 %v4197_v36  ;;  %v4198_v23 = vunpack.i.l.bf16 %v4197_v36 }
  0xf5   : > { %1767 = vmatmul.mubr.f32.gmra.mrb[34].mxu0 %v1367_v13 }
  0xf6   : > { %v1400_v30 = vsel %vm1283_vm0, %v3495_v28, %v4193_v16  ;;  %v1302_v44 = vsel %vm1283_vm0, %v243_v2, %v4194_v35 }
  0xf7   : > { %v4202_v37 = vpop.permute.xlu0 %4201  ;;  %v4207_v47 = vpop.permute.xlu1 %4206  ;;  %v1432_v60 = vsel %vm1316_vm1, %v1400_v30, %v4198_v23  ;;  %v1335_v27 = vsel %vm1316_vm1, %v1302_v44, %v4199_v39 }
  0xf8   : > { %v4204_v9 = vunpack.i.h.bf16 %v4202_v37  ;;  %v4203_v29 = vunpack.i.l.bf16 %v4202_v37  ;;  %v4209_v50 = vunpack.i.h.bf16 %v4207_v47  ;;  %v4208_v52 = vunpack.i.l.bf16 %v4207_v47  ;;  %v5430_v23 = vpop.f32.mrb[0].mxu1 }
  0xf9   : > { %v5436_v47 = vpop.f32.mrb[1].mxu1 }
  0xfa   : > { %v1464_v63 = vsel %vm1349_vm2, %v1432_v60, %v4203_v29  ;;  %v1368_v54 = vsel %vm1349_vm2, %v1335_v27, %v4204_v9  ;;  %v1401_v43 = vsel %vm1283_vm0, %v3496_v55, %v4208_v52  ;;  %v1303_v61 = vsel %vm1283_vm0, %v244_v5, %v4209_v50  ;;  %v3499_v9 = vld [vmem:[%s4632_s10 + $0x121] sm:$0xff]  ;;  %v5440_v5 = vpop.f32.mrb[2].mxu1 }
  0xfb   : > { %v4212_v31 = vpop.permute.xlu0 %4211  ;;  %1771 = vmatprep.mubr.f32.mxu0 %v1464_v63  ;;  %v4217_v57 = vpop.permute.xlu1 %4216  ;;  %v247_v29 = vld [vmem:[%s4632_s10 + $0x108] sm:$0xff] }
  0xfc   : > { %v4214_v45 = vunpack.i.h.bf16 %v4212_v31  ;;  %v4213_v42 = vunpack.i.l.bf16 %v4212_v31  ;;  %1772 = vmatmul.mubr.f32.gmra.mrb[36].mxu0 %v1368_v54  ;;  %v4219_v58 = vunpack.i.h.bf16 %v4217_v57  ;;  %v4218_v46 = vunpack.i.l.bf16 %v4217_v57 }
  0xfe   : > { %v1433_v62 = vsel %vm1316_vm1, %v1401_v43, %v4213_v42  ;;  %v1336_v20 = vsel %vm1316_vm1, %v1303_v61, %v4214_v45  ;;  %v5442_v45 = vpop.f32.mrb[3].mxu1 }
  0xff   : > { %v4222_v0 = vpop.permute.xlu0 %4221  ;;  %v1465_v18 = vsel %vm1349_vm2, %v1433_v62, %v4218_v46  ;;  %v1369_v10 = vsel %vm1349_vm2, %v1336_v20, %v4219_v58  ;;  %v4227_v53 = vpop.permute.xlu1 %4226 }
 0x100   : > { %v4224_v48 = vunpack.i.h.bf16 %v4222_v0  ;;  %v4223_v6 = vunpack.i.l.bf16 %v4222_v0  ;;  %1776 = vmatprep.mubr.f32.mxu0 %v1465_v18  ;;  %v4229_v38 = vunpack.i.h.bf16 %v4227_v53  ;;  %v4228_v33 = vunpack.i.l.bf16 %v4227_v53  ;;  %v3500_v18 = vld [vmem:[%s4632_s10 + $0x129] sm:$0xff] }
 0x101   : > { %1777 = vmatmul.mubr.f32.gmra.mrb[38].mxu0 %v1369_v10  ;;  %v248_v10 = vld [vmem:[%s4632_s10 + $0x110] sm:$0xff] }
 0x102   : > { %v1402_v7 = vsel %vm1283_vm0, %v3497_v1, %v4223_v6  ;;  %v1304_v8 = vsel %vm1283_vm0, %v245_v22, %v4224_v48  ;;  %v5450_v1 = vpop.f32.mrb[4].mxu1 }
 0x103   : > { %v4232_v34 = vpop.permute.xlu0 %4231  ;;  %v1434_v4 = vsel %vm1316_vm1, %v1402_v7, %v4228_v33  ;;  %v1337_v41 = vsel %vm1316_vm1, %v1304_v8, %v4229_v38  ;;  %v5452_v48 = vpop.f32.mrb[5].mxu1 }
 0x104   : > { %v4234_v12 = vunpack.i.h.bf16 %v4232_v34  ;;  %v4233_v40 = vunpack.i.l.bf16 %v4232_v34  ;;  %v4237_v11 = vpop.permute.xlu1 %4236 }
 0x105   : > { %v4239_v14 = vunpack.i.h.bf16 %v4237_v11  ;;  %v4238_v24 = vunpack.i.l.bf16 %v4237_v11  ;;  %v5458_v11 = vpop.f32.mrb[6].mxu1 }
 0x106   : > { %v1466_v19 = vsel %vm1349_vm2, %v1434_v4, %v4233_v40  ;;  %v1370_v49 = vsel %vm1349_vm2, %v1337_v41, %v4234_v12  ;;  %v3501_v41 = vld [vmem:[%s4632_s10 + $0x139] sm:$0xff] }
 0x107   : > { %v4242_v25 = vpop.permute.xlu0 %4241  ;;  %1781 = vmatprep.mubr.f32.mxu0 %v1466_v19  ;;  %v1403_v35 = vsel %vm1283_vm0, %v3498_v21, %v4238_v24  ;;  %v1305_v16 = vsel %vm1283_vm0, %v246_v51, %v4239_v14  ;;  %v249_v19 = vld [vmem:[%s4632_s10 + $0x120] sm:$0xff] }
 0x108   : > { %v4244_v26 = vunpack.i.h.bf16 %v4242_v25  ;;  %v4243_v32 = vunpack.i.l.bf16 %v4242_v25  ;;  %v4247_v13 = vpop.permute.xlu1 %4246  ;;  %1782 = vmatmul.mubr.f32.gmra.mrb[40].mxu0 %v1370_v49  ;;  %v5464_v49 = vpop.f32.mrb[7].mxu1 }
 0x109   : > { %v4249_v28 = vunpack.i.h.bf16 %v4247_v13  ;;  %v4248_v2 = vunpack.i.l.bf16 %v4247_v13 }
 0x10a   : > { %v1435_v36 = vsel %vm1316_vm1, %v1403_v35, %v4243_v32  ;;  %v1338_v39 = vsel %vm1316_vm1, %v1305_v16, %v4244_v26 }
 0x10b   : > { %v4252_v30 = vpop.permute.xlu0 %4251  ;;  %v1467_v44 = vsel %vm1349_vm2, %v1435_v36, %v4248_v2  ;;  %v1371_v37 = vsel %vm1349_vm2, %v1338_v39, %v4249_v28  ;;  %v5468_v2 = vpop.f32.mrb[8].mxu1 }
 0x10c   : > { %v4254_v50 = vunpack.i.h.bf16 %v4252_v30  ;;  %v4253_v52 = vunpack.i.l.bf16 %v4252_v30  ;;  %v4257_v60 = vpop.permute.xlu1 %4256  ;;  %1786 = vmatprep.mubr.f32.mxu0 %v1467_v44  ;;  %v5470_v16 = vpop.f32.mrb[9].mxu1 }
 0x10d   : > { %v4259_v27 = vunpack.i.h.bf16 %v4257_v60  ;;  %v4258_v63 = vunpack.i.l.bf16 %v4257_v60  ;;  %1787 = vmatmul.mubr.f32.gmra.mrb[42].mxu0 %v1371_v37  ;;  %v3502_v60 = vld [vmem:[%s4632_s10 + $0x141] sm:$0xff] }
 0x10e   : > { %v1404_v54 = vsel %vm1283_vm0, %v3499_v9, %v4253_v52  ;;  %v1306_v55 = vsel %vm1283_vm0, %v247_v29, %v4254_v50 }
 0x10f   : > { %v4262_v31 = vpop.permute.xlu0 %4261  ;;  %v1436_v61 = vsel %vm1316_vm1, %v1404_v54, %v4258_v63  ;;  %v1339_v62 = vsel %vm1316_vm1, %v1306_v55, %v4259_v27  ;;  %v250_v27 = vld [vmem:[%s4632_s10 + $0x128] sm:$0xff] }
 0x110   : > { %v4264_v42 = vunpack.i.h.bf16 %v4262_v31  ;;  %v4263_v57 = vunpack.i.l.bf16 %v4262_v31  ;;  %v4267_v58 = vpop.permute.xlu1 %4266 }
 0x111   : > { %v4269_v46 = vunpack.i.h.bf16 %v4267_v58  ;;  %v4268_v43 = vunpack.i.l.bf16 %v4267_v58 }
 0x112   : > { %v1468_v20 = vsel %vm1349_vm2, %v1436_v61, %v4263_v57  ;;  %v1372_v0 = vsel %vm1349_vm2, %v1339_v62, %v4264_v42  ;;  %v5478_v42 = vpop.f32.mrb[10].mxu1 }
 0x113   : > { %v4272_v22 = vpop.permute.xlu0 %4271  ;;  %1791 = vmatprep.mubr.f32.mxu0 %v1468_v20  ;;  %v1405_v8 = vsel %vm1283_vm0, %v3500_v18, %v4268_v43  ;;  %v1307_v34 = vsel %vm1283_vm0, %v248_v10, %v4269_v46  ;;  %v5482_v61 = vpop.f32.mrb[11].mxu1 }
 0x114   : > { %v4274_v6 = vunpack.i.h.bf16 %v4272_v22  ;;  %v4273_v53 = vunpack.i.l.bf16 %v4272_v22  ;;  %v4277_v38 = vpop.permute.xlu1 %4276  ;;  %1792 = vmatmul.mubr.f32.gmra.mrb[44].mxu0 %v1372_v0  ;;  %v3503_v22 = vld [vmem:[%s4632_s10 + $0x151] sm:$0xff] }
 0x115   : > { %v4279_v33 = vunpack.i.h.bf16 %v4277_v38  ;;  %v4278_v7 = vunpack.i.l.bf16 %v4277_v38 }
 0x116   : > { %v1437_v12 = vsel %vm1316_vm1, %v1405_v8, %v4273_v53  ;;  %v1340_v40 = vsel %vm1316_vm1, %v1307_v34, %v4274_v6  ;;  %v251_v6 = vld [vmem:[%s4632_s10 + $0x138] sm:$0xff] }
 0x117   : > { %v4282_v14 = vpop.permute.xlu0 %4281  ;;  %v1469_v24 = vsel %vm1349_vm2, %v1437_v12, %v4278_v7  ;;  %v1373_v4 = vsel %vm1349_vm2, %v1340_v40, %v4279_v33 }
 0x118   : > { %v4284_v21 = vunpack.i.h.bf16 %v4282_v14  ;;  %v4283_v51 = vunpack.i.l.bf16 %v4282_v14  ;;  %v4287_v25 = vpop.permute.xlu1 %4286  ;;  %1796 = vmatprep.mubr.f32.mxu0 %v1469_v24 }
 0x119   : > { %v4289_v26 = vunpack.i.h.bf16 %v4287_v25  ;;  %v4288_v32 = vunpack.i.l.bf16 %v4287_v25  ;;  %1797 = vmatmul.mubr.f32.gmra.mrb[46].mxu0 %v1373_v4 }
 0x11a   : > { %v1406_v13 = vsel %vm1283_vm0, %v3501_v41, %v4283_v51  ;;  %v1308_v28 = vsel %vm1283_vm0, %v249_v19, %v4284_v21 }
 0x11b   : > { %v4292_v35 = vpop.permute.xlu0 %4291  ;;  %v1438_v9 = vsel %vm1316_vm1, %v1406_v13, %v4288_v32  ;;  %v1341_v29 = vsel %vm1316_vm1, %v1308_v28, %v4289_v26  ;;  %v3504_v32 = vld [vmem:[%s4632_s10 + $0x159] sm:$0xff] }
 0x11c   : > { %v4294_v36 = vunpack.i.h.bf16 %v4292_v35  ;;  %v4293_v39 = vunpack.i.l.bf16 %v4292_v35  ;;  %v4297_v30 = vpop.permute.xlu1 %4296  ;;  %v252_v13 = vld [vmem:[%s4632_s10 + $0x140] sm:$0xff] }
 0x11d   : > { %v4299_v44 = vunpack.i.h.bf16 %v4297_v30  ;;  %v4298_v37 = vunpack.i.l.bf16 %v4297_v30  ;;  %v5498_v30 = vpop.f32.mrb[12].mxu1 }
 0x11e   : > { %v1470_v50 = vsel %vm1349_vm2, %v1438_v9, %v4293_v39  ;;  %v1374_v52 = vsel %vm1349_vm2, %v1341_v29, %v4294_v36 }
 0x11f   : > { %v4302_v63 = vpop.permute.xlu0 %4301  ;;  %1801 = vmatprep.mubr.f32.mxu0 %v1470_v50  ;;  %v1407_v46 = vsel %vm1283_vm0, %v3502_v60, %v4298_v37  ;;  %v1309_v43 = vsel %vm1283_vm0, %v250_v27, %v4299_v44  ;;  %v5502_v50 = vpop.f32.mrb[13].mxu1 }
 0x120   : > { %v4304_v54 = vunpack.i.h.bf16 %v4302_v63  ;;  %v4303_v55 = vunpack.i.l.bf16 %v4302_v63  ;;  %v4307_v31 = vpop.permute.xlu1 %4306  ;;  %1802 = vmatmul.mubr.f32.gmra.mrb[48].mxu0 %v1374_v52 }
 0x121   : > { %v4309_v57 = vunpack.i.h.bf16 %v4307_v31  ;;  %v4308_v58 = vunpack.i.l.bf16 %v4307_v31 }
 0x122   : > { %v1439_v62 = vsel %vm1316_vm1, %v1407_v46, %v4303_v55  ;;  %v1342_v20 = vsel %vm1316_vm1, %v1309_v43, %v4304_v54  ;;  %v253_v55 = vld [vmem:[%s4632_s10 + $0x150] sm:$0xff] }
 0x123   : > { %v4312_v0 = vpop.permute.xlu0 %4311  ;;  %v1471_v18 = vsel %vm1349_vm2, %v1439_v62, %v4308_v58  ;;  %v1375_v10 = vsel %vm1349_vm2, %v1342_v20, %v4309_v57 }
 0x124   : > { %v4314_v53 = vunpack.i.h.bf16 %v4312_v0  ;;  %v4313_v38 = vunpack.i.l.bf16 %v4312_v0  ;;  %v4317_v33 = vpop.permute.xlu1 %4316  ;;  %1806 = vmatprep.mubr.f32.mxu0 %v1471_v18 }
 0x125   : > { %v4319_v7 = vunpack.i.h.bf16 %v4317_v33  ;;  %v4318_v8 = vunpack.i.l.bf16 %v4317_v33  ;;  %1807 = vmatmul.mubr.f32.gmra.mrb[50].mxu0 %v1375_v10 }
 0x126   : > { %v1408_v34 = vsel %vm1283_vm0, %v3503_v22, %v4313_v38  ;;  %v1310_v12 = vsel %vm1283_vm0, %v251_v6, %v4314_v53 }
 0x127   : > { %v4322_v40 = vpop.permute.xlu0 %4321  ;;  %v1440_v21 = vsel %vm1316_vm1, %v1408_v34, %v4318_v8  ;;  %v1343_v51 = vsel %vm1316_vm1, %v1310_v12, %v4319_v7  ;;  %v254_v34 = vld [vmem:[%s4632_s10 + $0x158] sm:$0xff] }
 0x128   : > { %v4324_v14 = vunpack.i.h.bf16 %v4322_v40  ;;  %v4323_v24 = vunpack.i.l.bf16 %v4322_v40  ;;  %v4327_v4 = vpop.permute.xlu1 %4326 }
 0x129   : > { %v4329_v41 = vunpack.i.h.bf16 %v4327_v4  ;;  %v4328_v19 = vunpack.i.l.bf16 %v4327_v4 }
 0x12a   : > { %v1472_v25 = vsel %vm1349_vm2, %v1440_v21, %v4323_v24  ;;  %v1376_v26 = vsel %vm1349_vm2, %v1343_v51, %v4324_v14  ;;  %v5517_v24 = vpop.f32.mrb[14].mxu1 }
 0x12b   : > { %v4332_v28 = vpop.permute.xlu0 %4331  ;;  %1811 = vmatprep.mubr.f32.mxu0 %v1472_v25  ;;  %v1409_v9 = vsel %vm1283_vm0, %v3504_v32, %v4328_v19  ;;  %v1311_v29 = vsel %vm1283_vm0, %v252_v13, %v4329_v41  ;;  %v5522_v51 = vpop.f32.mrb[15].mxu1 }
 0x12c   : > { %v4334_v35 = vunpack.i.h.bf16 %v4332_v28  ;;  %v4333_v36 = vunpack.i.l.bf16 %v4332_v28  ;;  %v4337_v39 = vpop.permute.xlu1 %4336  ;;  %1812 = vmatmul.mubr.f32.gmra.mrb[52].mxu0 %v1376_v26 }
 0x12d   : > { %v4339_v44 = vunpack.i.h.bf16 %v4337_v39  ;;  %v4338_v37 = vunpack.i.l.bf16 %v4337_v39 }
 0x12e   : > { %v1441_v52 = vsel %vm1316_vm1, %v1409_v9, %v4333_v36  ;;  %v1344_v60 = vsel %vm1316_vm1, %v1311_v29, %v4334_v35  ;;  %v255_v35 = vld [vmem:[%s4632_s10 + $0x168] sm:$0xff]  ;;  %v3054_v9 = vld [vmem:[%s6171_s3] sm:$0xff] }
 0x12f   : > { %v4342_v27 = vpop.permute.xlu0 %4341  ;;  %v1473_v63 = vsel %vm1349_vm2, %v1441_v52, %v4338_v37  ;;  %v1377_v54 = vsel %vm1349_vm2, %v1344_v60, %v4339_v44  ;;  %v3055_v29 = vld [vmem:[%s6171_s3 + $0x8] sm:$0xff] }
 0x130   : > { %v4344_v31 = vunpack.i.h.bf16 %v4342_v27  ;;  %v4343_v57 = vunpack.i.l.bf16 %v4342_v27  ;;  %v4347_v58 = vpop.permute.xlu1 %4346  ;;  %1816 = vmatprep.mubr.f32.mxu0 %v1473_v63  ;;  %v3827_v27 = vpack.c.bf16 %v3055_v29, %v3054_v9  ;;  %v3066_v9 = vld [vmem:[%s6171_s3 + $0x60] sm:$0xff]  ;;  %v3067_v29 = vld [vmem:[%s6171_s3 + $0x68] sm:$0xff] }
 0x131   : > { %v4349_v46 = vunpack.i.h.bf16 %v4347_v58  ;;  %v4348_v43 = vunpack.i.l.bf16 %v4347_v58  ;;  %1817 = vmatmul.mubr.f32.gmra.mrb[54].mxu0 %v1377_v54 }
 0x132   : > { %v1410_v62 = vsel %vm1283_vm0, %v5228_v17, %v4343_v57  ;;  %v1312_v20 = vsel %vm1283_vm0, %v253_v55, %v4344_v31  ;;  %3890 = vmatpush1.bf16.msra.mxu1 %v3827_v27  ;;  %3828 = vmatpush1.bf16.msra.mxu0 %v3827_v27  ;;  %v3069_v27 = vld [vmem:[%s6171_s3 + $0x78] sm:$0xff] }
 0x133   : > { %v4352_v0 = vpop.permute.xlu0 %4351  ;;  %v1442_v38 = vsel %vm1316_vm1, %v1410_v62, %v4348_v43  ;;  %v1345_v33 = vsel %vm1316_vm1, %v1312_v20, %v4349_v46  ;;  %3875 = vmatprep.subr.bf16.mxu1 %v4563_v3  ;;  %v3057_v62 = vld [vmem:[%s6171_s3 + $0x18] sm:$0xff]  ;;  %3829 = vmatprep.subr.bf16.mxu0 %v4563_v3 }
 0x134   : > { %v4354_v18 = vunpack.i.h.bf16 %v4352_v0  ;;  %v4353_v10 = vunpack.i.l.bf16 %v4352_v0  ;;  %v4357_v22 = vpop.permute.xlu1 %4356 }
 0x135   : > { %v4359_v6 = vunpack.i.h.bf16 %v4357_v22  ;;  %v4358_v53 = vunpack.i.l.bf16 %v4357_v22 }
 0x136   : > { %v1474_v7 = vsel %vm1349_vm2, %v1442_v38, %v4353_v10  ;;  %v1378_v8 = vsel %vm1349_vm2, %v1345_v33, %v4354_v18  ;;  %v256_v18 = vld [vmem:[%s4632_s10 + $0x170] sm:$0xff]  ;;  %v5551_v33 = vpop.f32.mrb[16].mxu1 }
 0x137   : > { %v4362_v12 = vpop.permute.xlu0 %4361  ;;  %1821 = vmatprep.mubr.f32.mxu0 %v1474_v7  ;;  %v1411_v19 = vsel %vm1283_vm0, %v5252_v59, %v4358_v53  ;;  %v1313_v21 = vsel %vm1283_vm0, %v254_v34, %v4359_v6 }
 0x138   : > { %v4364_v17 = vunpack.i.h.bf16 %v4362_v12  ;;  %v4363_v40 = vunpack.i.l.bf16 %v4362_v12  ;;  %v4367_v14 = vpop.permute.xlu1 %4366  ;;  %1822 = vmatmul.mubr.f32.gmra.mrb[56].mxu0 %v1378_v8 }
 0x139   : > { %v4369_v4 = vunpack.i.h.bf16 %v4367_v14  ;;  %v4368_v41 = vunpack.i.l.bf16 %v4367_v14  ;;  %v3059_v14 = vld [vmem:[%s6171_s3 + $0x28] sm:$0xff] }
 0x13a   : > { %v1443_v25 = vsel %vm1316_vm1, %v1411_v19, %v4363_v40  ;;  %v1346_v26 = vsel %vm1316_vm1, %v1313_v21, %v4364_v17  ;;  %v5556_v17 = vpop.f32.mrb[17].mxu1  ;;  %v3058_v40 = vld [vmem:[%s6171_s3 + $0x20] sm:$0xff] }
 0x13b   : > { %v4372_v32 = vpop.permute.xlu0 %4371  ;;  %v1475_v13 = vsel %vm1349_vm2, %v1443_v25, %v4368_v41  ;;  %v1379_v28 = vsel %vm1349_vm2, %v1346_v26, %v4369_v4  ;;  %v3060_v25 = vld [vmem:[%s6171_s3 + $0x30] sm:$0xff]  ;;  %v3061_v26 = vld [vmem:[%s6171_s3 + $0x38] sm:$0xff] }
 0x13c   : > { %v4374_v36 = vunpack.i.h.bf16 %v4372_v32  ;;  %v4373_v39 = vunpack.i.l.bf16 %v4372_v32  ;;  %v4377_v44 = vpop.permute.xlu1 %4376  ;;  %1826 = vmatprep.mubr.f32.mxu0 %v1475_v13  ;;  %v3836_v32 = vpack.c.bf16 %v3061_v26, %v3060_v25  ;;  %v3062_v13 = vld [vmem:[%s6171_s3 + $0x40] sm:$0xff]  ;;  %v3080_v26 = vld [vmem:[%s6171_s3 + $0xd0] sm:$0xff] }
 0x13d   : > { %v4379_v37 = vunpack.i.h.bf16 %v4377_v44  ;;  %v4378_v59 = vunpack.i.l.bf16 %v4377_v44  ;;  %1827 = vmatmul.mubr.f32.gmra.mrb[58].mxu0 %v1379_v28  ;;  %v3063_v28 = vld [vmem:[%s6171_s3 + $0x48] sm:$0xff]  ;;  %v3064_v44 = vld [vmem:[%s6171_s3 + $0x50] sm:$0xff] }
 0x13e   : > { %v1412_v52 = vsel %vm1283_vm0, %v5275_v15, %v4373_v39  ;;  %v1314_v60 = vsel %vm1283_vm0, %v255_v35, %v4374_v36  ;;  %v3056_v15 = vld [vmem:[%s6171_s3 + $0x10] sm:$0xff]  ;;  %v3839_v35 = vpack.c.bf16 %v3063_v28, %v3062_v13  ;;  %v5586_v36 = vpop.f32.mrb[18].mxu1  ;;  %v2228_v28 = vlaneseq }
 0x13f   : > { %v4382_v63 = vpop.permute.xlu0 %4381  ;;  %v1444_v46 = vsel %vm1316_vm1, %v1412_v52, %v4378_v59  ;;  %v1347_v43 = vsel %vm1316_vm1, %v1314_v60, %v4379_v37  ;;  %v3830_v10 = vpack.c.bf16 %v3057_v62, %v3056_v15  ;;  %v5588_v39 = vpop.f32.mrb[19].mxu1  ;;  %v3065_v37 = vld [vmem:[%s6171_s3 + $0x58] sm:$0xff]  ;;  %v3845_v52 = vpack.c.bf16 %v3067_v29, %v3066_v9  ;;  %v3068_v60 = vld [vmem:[%s6171_s3 + $0x70] sm:$0xff]  ;;  %v5636_v15 = vld [vmem:[%s6170_s2] ss:$0 sm:$0xff] }
 0x140   : > { %v4384_v54 = vunpack.i.h.bf16 %v4382_v63  ;;  %v4383_v55 = vunpack.i.l.bf16 %v4382_v63  ;;  %v4387_v31 = vpop.permute.xlu1 %4386  ;;  %v3842_v59 = vpack.c.bf16 %v3065_v37, %v3064_v44  ;;  %v3848_v63 = vpack.c.bf16 %v3069_v27, %v3068_v60  ;;  %v3083_v60 = vld [vmem:[%s6171_s3 + $0xe8] sm:$0xff] }
 0x141   : > { %v4389_v57 = vunpack.i.h.bf16 %v4387_v31  ;;  %v4388_v58 = vunpack.i.l.bf16 %v4387_v31  ;;  %3891 = vmatpush1.bf16.msra.mxu1 %v3830_v10  ;;  %3831 = vmatpush1.bf16.msra.mxu0 %v3830_v10  ;;  %v3070_v31 = vld [vmem:[%s6171_s3 + $0x80] sm:$0xff]  ;;  %v5698_v27 = vshrl.u32 %v2228_v28, 7 }
 0x142   : > { %v1476_v20 = vsel %vm1349_vm2, %v1444_v46, %v4383_v55  ;;  %v1380_v0 = vsel %vm1349_vm2, %v1347_v43, %v4384_v54  ;;  %3876 = vmatprep.subr.bf16.mxu1 %v4563_v3  ;;  %3832 = vmatprep.subr.bf16.mxu0 %v4563_v3  ;;  %v5614_v54 = vpop.f32.mrb[20].mxu1  ;;  %v3072_v46 = vld [vmem:[%s6171_s3 + $0x90] sm:$0xff]  ;;  %v3073_v43 = vld [vmem:[%s6171_s3 + $0x98] sm:$0xff]  ;;  %v3074_v10 = vld [vmem:[%s6171_s3 + $0xa0] sm:$0xff] }
 0x143   : > { %v4392_v22 = vpop.permute.xlu0 %4391  ;;  %1831 = vmatprep.mubr.f32.mxu0 %v1476_v20  ;;  %v1413_v34 = vsel %vm1283_vm0, %v5298_v56, %v4388_v58  ;;  %v1315_v12 = vsel %vm1283_vm0, %v256_v18, %v4389_v57  ;;  %v3833_v56 = vpack.c.bf16 %v3059_v14, %v3058_v40  ;;  %v5616_v55 = vpop.f32.mrb[21].mxu1  ;;  %v3071_v57 = vld [vmem:[%s6171_s3 + $0x88] sm:$0xff]  ;;  %v3854_v62 = vpack.c.bf16 %v3073_v43, %v3072_v46  ;;  %v3076_v40 = vld [vmem:[%s6171_s3 + $0xb0] sm:$0xff] }
 0x144   : > { %v4394_v6 = vunpack.i.h.bf16 %v4392_v22  ;;  %v4393_v53 = vunpack.i.l.bf16 %v4392_v22  ;;  %v4397_v38 = vpop.permute.xlu1 %4396  ;;  %1832 = vmatmul.mubr.f32.gmra.mrb[60].mxu0 %v1380_v0  ;;  %v3851_v58 = vpack.c.bf16 %v3071_v57, %v3070_v31  ;;  %v3075_v22 = vld [vmem:[%s6171_s3 + $0xa8] sm:$0xff] }
 0x145   : > { %v4399_v7 = vunpack.i.h.bf16 %v4397_v38  ;;  %v4398_v8 = vunpack.i.l.bf16 %v4397_v38  ;;  %3892 = vmatpush1.bf16.msra.mxu1 %v3833_v56  ;;  %3834 = vmatpush1.bf16.msra.mxu0 %v3833_v56  ;;  %v3079_v56 = vld [vmem:[%s6171_s3 + $0xc8] sm:$0xff] }
 0x146   : > { %v1445_v4 = vsel %vm1316_vm1, %v1413_v34, %v4393_v53  ;;  %v1348_v41 = vsel %vm1316_vm1, %v1315_v12, %v4394_v6  ;;  %3877 = vmatprep.subr.bf16.mxu1 %v4563_v3  ;;  %3835 = vmatprep.subr.bf16.mxu0 %v4563_v3  ;;  %v3857_v6 = vpack.c.bf16 %v3075_v22, %v3074_v10 }
 0x147   : > { %v1477_v19 = vsel %vm1349_vm2, %v1445_v4, %v4398_v8  ;;  %v1381_v21 = vsel %vm1349_vm2, %v1348_v41, %v4399_v7  ;;  %v5651_v7 = vpop.f32.mrb[22].mxu1  ;;  %v3078_v41 = vld [vmem:[%s6171_s3 + $0xc0] sm:$0xff] }
 0x148   : > { %1836 = vmatprep.mubr.f32.mxu0 %v1477_v19  ;;  %v5654_v12 = vpop.f32.mrb[23].mxu1  ;;  %v3863_v19 = vpack.c.bf16 %v3079_v56, %v3078_v41 }
 0x149   : > { %1837 = vmatmul.mubr.f32.gmra.mrb[62].mxu0 %v1381_v21  ;;  %3893 = vmatpush1.bf16.msra.mxu1 %v3836_v32  ;;  %v5685_v37 = vpop.f32.mrb[24].mxu1 }
 0x14a   : > { %3878 = vmatprep.subr.bf16.mxu1 %v4563_v3  ;;  %3837 = vmatpush1.bf16.msra.mxu0 %v3836_v32  ;;  %v3081_v32 = vld [vmem:[%s6171_s3 + $0xd8] sm:$0xff] }
 0x14b   : > { %3838 = vmatprep.subr.bf16.mxu0 %v4563_v3 }
 0x14d   : > { %3894 = vmatpush1.bf16.msra.mxu1 %v3839_v35 }
 0x14e   : > { %3879 = vmatprep.subr.bf16.mxu1 %v4563_v3  ;;  %3840 = vmatpush1.bf16.msra.mxu0 %v3839_v35  ;;  %v3866_v35 = vpack.c.bf16 %v3081_v32, %v3080_v26 }
 0x14f   : > { %3841 = vmatprep.subr.bf16.mxu0 %v4563_v3 }
 0x151   : > { %3895 = vmatpush1.bf16.msra.mxu1 %v3842_v59 }
 0x152   : > { %3880 = vmatprep.subr.bf16.mxu1 %v4563_v3  ;;  %3843 = vmatpush1.bf16.msra.mxu0 %v3842_v59 }
 0x153   : > { %3844 = vmatprep.subr.bf16.mxu0 %v4563_v3 }
 0x155   : > { %3896 = vmatpush1.bf16.msra.mxu1 %v3845_v52 }
 0x156   : > { %3881 = vmatprep.subr.bf16.mxu1 %v4563_v3  ;;  %3846 = vmatpush1.bf16.msra.mxu0 %v3845_v52  ;;  %v5689_v52 = vpop.f32.mrb[25].mxu1 }
 0x157   : > { %3847 = vmatprep.subr.bf16.mxu0 %v4563_v3 }
 0x159   : > { %3897 = vmatpush1.bf16.msra.mxu1 %v3848_v63 }
 0x15a   : > { %3882 = vmatprep.subr.bf16.mxu1 %v4563_v3  ;;  %3849 = vmatpush1.bf16.msra.mxu0 %v3848_v63 }
 0x15b   : > { %3850 = vmatprep.subr.bf16.mxu0 %v4563_v3 }
 0x15d   : > { %3898 = vmatpush1.bf16.msra.mxu1 %v3851_v58 }
 0x15e   : > { %3883 = vmatprep.subr.bf16.mxu1 %v4563_v3  ;;  %3852 = vmatpush1.bf16.msra.mxu0 %v3851_v58 }
 0x15f   : > { %3853 = vmatprep.subr.bf16.mxu0 %v4563_v3 }
 0x161   : > { %3899 = vmatpush1.bf16.msra.mxu1 %v3854_v62 }
 0x162   : > { %3884 = vmatprep.subr.bf16.mxu1 %v4563_v3  ;;  %3855 = vmatpush1.bf16.msra.mxu0 %v3854_v62  ;;  %v3084_v62 = vld [vmem:[%s6171_s3 + $0xf0] sm:$0xff] }
 0x163   : > { %3856 = vmatprep.subr.bf16.mxu0 %v4563_v3 }
 0x164   : > { %v1683_v20 = vpop.f32.mrb[0].mxu0 }
 0x165   : > { %v1684_v0 = vadd.f32 %v5636_v15, %v1683_v20  ;;  %v1685_v18 = vpop.f32.mrb[1].mxu0  ;;  %3900 = vmatpush1.bf16.msra.mxu1 %v3857_v6  ;;  %v3085_v20 = vld [vmem:[%s6171_s3 + $0xf8] sm:$0xff] }
 0x166   : > { %3885 = vmatprep.subr.bf16.mxu1 %v4563_v3  ;;  %3858 = vmatpush1.bf16.msra.mxu0 %v3857_v6 }
 0x167   : > { %v5648_v53 = vadd.f32 %v5436_v47, %v1684_v0  ;;  %v3077_v47 = vld [vmem:[%s6171_s3 + $0xb8] sm:$0xff]  ;;  %3859 = vmatprep.subr.bf16.mxu0 %v4563_v3  ;;  %v3872_v0 = vpack.c.bf16 %v3085_v20, %v3084_v62 }
 0x168   : > { %v1688_v38 = vpop.f32.mrb[2].mxu0  ;;  %v3860_v14 = vpack.c.bf16 %v3077_v47, %v3076_v40 }
 0x169   : > { %v1689_v8 = vadd.f32 %v5636_v15, %v1688_v38  ;;  %v1690_v34 = vpop.f32.mrb[3].mxu0  ;;  %v2067_v31 = vmax.f32 %v5648_v53, 0.0  ;;  %v6093_v53 = vld [vmem:[%s6172_s4] ss:$0 sm:$0xff] }
 0x16a   : > { %3901 = vmatpush1.bf16.msra.mxu1 %v3860_v14  ;;  %3861 = vmatpush1.bf16.msra.mxu0 %v3860_v14 }
 0x16b   : > { %v5664_v4 = vadd.f32 %v5430_v23, %v1689_v8  ;;  %3886 = vmatprep.subr.bf16.mxu1 %v4563_v3  ;;  %3862 = vmatprep.subr.bf16.mxu0 %v4563_v3  ;;  %v2132_v18 = vrot.slane %v2067_v31, 1 }
 0x16d   : > { %v2068_v59 = vmax.f32 %v5664_v4, 0.0 }
 0x16e   : > { %3902 = vmatpush1.bf16.msra.mxu1 %v3863_v19  ;;  %3864 = vmatpush1.bf16.msra.mxu0 %v3863_v19  ;;  %v5734_v19 = vpop.f32.mrb[26].mxu1 }
 0x16f   : > { %v1693_v21 = vpop.f32.mrb[4].mxu0  ;;  %3887 = vmatprep.subr.bf16.mxu1 %v4563_v3  ;;  %3865 = vmatprep.subr.bf16.mxu0 %v4563_v3  ;;  %v2133_v46 = vrot.slane %v2068_v59, 1 }
 0x170   : > { %v1694_v23 = vadd.f32 %v5636_v15, %v1693_v21  ;;  %v1695_v25 = vpop.f32.mrb[5].mxu0 }
 0x171   : > { %v5727_v40 = vsel %vm2131_vm3, %v2132_v18, %v2133_v46  ;;  %v5737_v25 = vpop.f32.mrb[27].mxu1 }
 0x172   : > { %v1919_v13 = vadd.f32 %v5442_v45, %v1694_v23  ;;  %3903 = vmatpush1.bf16.msra.mxu1 %v3866_v35  ;;  %v3082_v45 = vld [vmem:[%s6171_s3 + $0xe0] sm:$0xff]  ;;  %3867 = vmatpush1.bf16.msra.mxu0 %v3866_v35  ;;  %v5755_v18 = vpop.f32.mrb[28].mxu1 }
 0x173   : > { %3888 = vmatprep.subr.bf16.mxu1 %v4563_v3  ;;  %v3869_v63 = vpack.c.bf16 %v3083_v60, %v3082_v45  ;;  %3868 = vmatprep.subr.bf16.mxu0 %v4563_v3 }
 0x174   : > { %v1698_v44 = vpop.f32.mrb[6].mxu0  ;;  %v5701_v57 = vmax.f32 %v1919_v13, 0.0 }
 0x175   : > { %v1699_v9 = vadd.f32 %v5636_v15, %v1698_v44  ;;  %v1700_v29 = vpop.f32.mrb[7].mxu0 }
 0x176   : > { %3904 = vmatpush1.bf16.msra.mxu1 %v3869_v63  ;;  %3870 = vmatpush1.bf16.msra.mxu0 %v3869_v63  ;;  %v2135_v10 = vrot.slane %v5701_v57, 1 }
 0x177   : > { %v1924_v58 = vadd.f32 %v5440_v5, %v1699_v9  ;;  %3889 = vmatprep.subr.bf16.mxu1 %v4563_v3  ;;  %v2230_v5 = vadd.s32 8, %v5698_v27  ;;  %3871 = vmatprep.subr.bf16.mxu0 %v4563_v3  ;;  %v2232_v9 = vadd.s32 24, %v5698_v27 }
 0x178   : > { %v2136_v32 = vsel %vm2131_vm3, %v2133_v46, %v2135_v10 }
 0x179   : > { %v5707_v43 = vmax.f32 %v1924_v58, 0.0  ;;  %v2272_v14 = vand.u32 15, %v2230_v5 }
 0x17a   : > { %3905 = vmatpush1.bf16.msra.mxu1 %v3872_v0  ;;  %3873 = vmatpush1.bf16.msra.mxu0 %v3872_v0 }
 0x17b   : > { %v2137_v22 = vrot.slane %v5707_v43, 1  ;;  %v1703_v6 = vpop.f32.mrb[8].mxu0  ;;  %vm2646_vm4 = vcmp.ne.s32.totalorder %v2272_v14, 15 }
 0x17c   : > { %v1704_v38 = vadd.f32 %v5636_v15, %v1703_v6  ;;  %v1705_v8 = vpop.f32.mrb[9].mxu0  ;;  %v2678_v35 = vsel %vm2646_vm4, %v2136_v32, 0.0  ;;  %v5758_v6 = vpop.f32.mrb[29].mxu1 }
 0x17d   : > { %v5724_v34 = vsel %vm2131_vm3, %v2135_v10, %v2137_v22 }
 0x17e   : > { %v1929_v47 = vadd.f32 %v5452_v48, %v1704_v38  ;;  %v4550_v41 = vpack.i.bf16 %v5727_v40, %v5724_v34 }
 0x180   : > { %v5732_v56 = vmax.f32 %v1929_v47, 0.0  ;;  %v1708_v3 = vpop.f32.mrb[10].mxu0 }
 0x181   : > { %v1709_v21 = vadd.f32 %v5636_v15, %v1708_v3  ;;  %v1710_v23 = vpop.f32.mrb[11].mxu0 }
 0x182   : > { %v2139_v26 = vrot.slane %v5732_v56, 1  ;;  %v2234_v23 = vadd.s32 40, %v5698_v27 }
 0x183   : > { %v1934_v48 = vadd.f32 %v5450_v1, %v1709_v21  ;;  %v2286_v1 = vand.u32 15, %v2232_v9 }
 0x184   : > { %v2140_v13 = vsel %vm2131_vm3, %v2137_v22, %v2139_v26 }
 0x185   : > { %v5743_v28 = vmax.f32 %v1934_v48, 0.0  ;;  %v2710_v44 = vsel %vm2646_vm4, %v2140_v13, 0.0  ;;  %vm2648_vm5 = vcmp.ne.s32.totalorder %v2286_v1, 15 }
 0x186   : > { %v4400_v29 = vpack.i.bf16 %v2678_v35, %v2710_v44  ;;  %v2680_v47 = vsel %vm2648_vm5, %v2140_v13, 0.0  ;;  %v2300_v13 = vand.u32 15, %v2234_v23 }
 0x187   : > { %v2141_v45 = vrot.slane %v5743_v28, 1  ;;  %v1713_v60 = vpop.f32.mrb[12].mxu0 }
 0x188   : > { %v1714_v63 = vadd.f32 %v5636_v15, %v1713_v60  ;;  %v1715_v58 = vpop.f32.mrb[13].mxu0  ;;  %4401 = vrot.lane.b32.xlu0 %v4400_v29, %s4566_s23  ;;  %vm2650_vm6 = vcmp.ne.s32.totalorder %v2300_v13, 15 }
 0x189   : > { %v2142_v46 = vsel %vm2131_vm3, %v2139_v26, %v2141_v45 }
 0x18a   : > { %v1939_v62 = vadd.f32 %v5464_v49, %v1714_v63  ;;  %v4405_v20 = vpack.i.bf16 %v5724_v34, %v2142_v46  ;;  %v5774_v60 = vpop.f32.mrb[30].mxu1 }
 0x18b   : > { %v5777_v1 = vpop.f32.mrb[31].mxu1 }
 0x18c   : > { %v5752_v5 = vmax.f32 %v1939_v62, 0.0  ;;  %v1718_v0 = vpop.f32.mrb[14].mxu0  ;;  %4406 = vrot.lane.b32.xlu1 %v4405_v20, %s4566_s23 }
 0x18d   : > { %v1719_v10 = vadd.f32 %v5636_v15, %v1718_v0  ;;  %v1720_v22 = vpop.f32.mrb[15].mxu0 }
 0x18e   : > { %v2143_v38 = vrot.slane %v5752_v5, 1 }
 0x18f   : > { %v1944_v8 = vadd.f32 %v5458_v11, %v1719_v10 }
 0x190   : > { %v2144_v49 = vsel %vm2131_vm3, %v2141_v45, %v2143_v38 }
 0x191   : > { %v5763_v14 = vmax.f32 %v1944_v8, 0.0  ;;  %v2712_v3 = vsel %vm2648_vm5, %v2144_v49, 0.0  ;;  %v2682_v0 = vsel %vm2650_vm6, %v2144_v49, 0.0 }
 0x192   : > { %v4410_v21 = vpack.i.bf16 %v2680_v47, %v2712_v3 }
 0x193   : > { %v2145_v26 = vrot.slane %v5763_v14, 1  ;;  %v1723_v32 = vpop.f32.mrb[16].mxu0 }
 0x194   : > { %v1724_v48 = vadd.f32 %v5636_v15, %v1723_v32  ;;  %v1725_v35 = vpop.f32.mrb[17].mxu0  ;;  %4411 = vrot.lane.b32.xlu0 %v4410_v21, %s4566_s23 }
 0x195   : > { %v2146_v44 = vsel %vm2131_vm3, %v2143_v38, %v2145_v26  ;;  %v2236_v38 = vadd.s32 56, %v5698_v27 }
 0x196   : > { %v4415_v11 = vpack.i.bf16 %v2142_v46, %v2146_v44  ;;  %v1949_v9 = vadd.f32 %v5470_v16, %v1724_v48 }
 0x197   : > { %v2314_v32 = vand.u32 15, %v2236_v38 }
 0x198   : > { %v5771_v29 = vmax.f32 %v1949_v9, 0.0  ;;  %v1728_v45 = vpop.f32.mrb[18].mxu0  ;;  %4416 = vrot.lane.b32.xlu1 %v4415_v11, %s4566_s23 }
 0x199   : > { %v1729_v63 = vadd.f32 %v5636_v15, %v1728_v45  ;;  %v1730_v58 = vpop.f32.mrb[19].mxu0  ;;  %vm2652_vm7 = vcmp.ne.s32.totalorder %v2314_v32, 15 }
 0x19a   : > { %v2147_v62 = vrot.slane %v5771_v29, 1 }
 0x19b   : > { %v1954_v46 = vadd.f32 %v5468_v2, %v1729_v63 }
 0x19c   : > { %v2148_v16 = vsel %vm2131_vm3, %v2145_v26, %v2147_v62 }
 0x19d   : > { %v5782_v20 = vmax.f32 %v1954_v46, 0.0  ;;  %v2714_v10 = vsel %vm2650_vm6, %v2148_v16, 0.0 }
 0x19e   : > { %v4420_v22 = vpack.i.bf16 %v2682_v0, %v2714_v10 }
 0x19f   : > { %v2149_v8 = vrot.slane %v5782_v20, 1  ;;  %v1733_v47 = vpop.f32.mrb[20].mxu0 }
 0x1a0   : > { %v1734_v3 = vadd.f32 %v5636_v15, %v1733_v47  ;;  %v1735_v21 = vpop.f32.mrb[21].mxu0  ;;  %4421 = vrot.lane.b32.xlu0 %v4420_v22, %s4566_s23 }
 0x1a1   : > { %v2150_v23 = vsel %vm2131_vm3, %v2147_v62, %v2149_v8  ;;  %v2238_v62 = vadd.s32 72, %v5698_v27 }
 0x1a2   : > { %v1959_v2 = vadd.f32 %v5482_v61, %v1734_v3  ;;  %v4425_v26 = vpack.i.bf16 %v2146_v44, %v2150_v23  ;;  %v2684_v61 = vsel %vm2652_vm7, %v2148_v16, 0.0 }
 0x1a3   : > { %v2328_v47 = vand.u32 15, %v2238_v62 }
 0x1a4   : > { %v5790_v48 = vmax.f32 %v1959_v2, 0.0  ;;  %v1738_v49 = vpop.f32.mrb[22].mxu0  ;;  %4426 = vrot.lane.b32.xlu1 %v4425_v26, %s4566_s23 }
 0x1a5   : > { %v1739_v35 = vadd.f32 %v5636_v15, %v1738_v49  ;;  %v1740_v11 = vpop.f32.mrb[23].mxu0  ;;  %vm2654_vm8 = vcmp.ne.s32.totalorder %v2328_v47, 15 }
 0x1a6   : > { %v2151_v9 = vrot.slane %v5790_v48, 1 }
 0x1a7   : > { %v1964_v13 = vadd.f32 %v5478_v42, %v1739_v35 }
 0x1a8   : > { %v2152_v45 = vsel %vm2131_vm3, %v2149_v8, %v2151_v9 }
 0x1a9   : > { %v5797_v63 = vmax.f32 %v1964_v13, 0.0  ;;  %v2716_v44 = vsel %vm2652_vm7, %v2152_v45, 0.0 }
 0x1aa   : > { %v4430_v58 = vpack.i.bf16 %v2684_v61, %v2716_v44 }
 0x1ab   : > { %v2153_v46 = vrot.slane %v5797_v63, 1  ;;  %v1743_v0 = vpop.f32.mrb[24].mxu0 }
 0x1ac   : > { %v1744_v10 = vadd.f32 %v5636_v15, %v1743_v0  ;;  %v1745_v22 = vpop.f32.mrb[25].mxu0  ;;  %4431 = vrot.lane.b32.xlu0 %v4430_v58, %s4566_s23 }
 0x1ad   : > { %v2154_v38 = vsel %vm2131_vm3, %v2151_v9, %v2153_v46  ;;  %v2240_v9 = vadd.s32 88, %v5698_v27 }
 0x1ae   : > { %v1969_v42 = vadd.f32 %v5502_v50, %v1744_v10  ;;  %v4435_v8 = vpack.i.bf16 %v2150_v23, %v2154_v38  ;;  %v2686_v50 = vsel %vm2654_vm8, %v2152_v45, 0.0 }
 0x1af   : > { %v2342_v0 = vand.u32 15, %v2240_v9 }
 0x1b0   : > { %v5805_v3 = vmax.f32 %v1969_v42, 0.0  ;;  %v1748_v16 = vpop.f32.mrb[26].mxu0  ;;  %4436 = vrot.lane.b32.xlu1 %v4435_v8, %s4566_s23 }
 0x1b1   : > { %v1749_v21 = vadd.f32 %v5636_v15, %v1748_v16  ;;  %v1750_v2 = vpop.f32.mrb[27].mxu0  ;;  %vm2656_vm9 = vcmp.ne.s32.totalorder %v2342_v0, 15 }
 0x1b2   : > { %v2155_v26 = vrot.slane %v5805_v3, 1 }
 0x1b3   : > { %v1974_v32 = vadd.f32 %v5498_v30, %v1749_v21 }
 0x1b4   : > { %v2156_v49 = vsel %vm2131_vm3, %v2153_v46, %v2155_v26 }
 0x1b5   : > { %v5812_v35 = vmax.f32 %v1974_v32, 0.0  ;;  %v2718_v23 = vsel %vm2654_vm8, %v2156_v49, 0.0 }
 0x1b6   : > { %v4440_v11 = vpack.i.bf16 %v2686_v50, %v2718_v23 }
 0x1b7   : > { %v2157_v13 = vrot.slane %v5812_v35, 1  ;;  %v1753_v61 = vpop.f32.mrb[28].mxu0 }
 0x1b8   : > { %v1754_v44 = vadd.f32 %v5636_v15, %v1753_v61  ;;  %v1755_v58 = vpop.f32.mrb[29].mxu0  ;;  %4441 = vrot.lane.b32.xlu0 %v4440_v11, %s4566_s23 }
 0x1b9   : > { %v2158_v62 = vsel %vm2131_vm3, %v2155_v26, %v2157_v13  ;;  %v2242_v26 = vadd.s32 104, %v5698_v27 }
 0x1ba   : > { %v1979_v30 = vadd.f32 %v5522_v51, %v1754_v44  ;;  %v4445_v46 = vpack.i.bf16 %v2154_v38, %v2158_v62  ;;  %v2688_v51 = vsel %vm2656_vm9, %v2156_v49, 0.0 }
 0x1bb   : > { %v2356_v61 = vand.u32 15, %v2242_v26 }
 0x1bc   : > { %v5820_v10 = vmax.f32 %v1979_v30, 0.0  ;;  %v1758_v45 = vpop.f32.mrb[30].mxu0  ;;  %4446 = vrot.lane.b32.xlu1 %v4445_v46, %s4566_s23 }
 0x1bd   : > { %v1759_v22 = vadd.f32 %v5636_v15, %v1758_v45  ;;  %v1760_v42 = vpop.f32.mrb[31].mxu0  ;;  %vm2658_vm10 = vcmp.ne.s32.totalorder %v2356_v61, 15 }
 0x1be   : > { %v2159_v8 = vrot.slane %v5820_v10, 1 }
 0x1bf   : > { %v1984_v47 = vadd.f32 %v5517_v24, %v1759_v22 }
 0x1c0   : > { %v2160_v16 = vsel %vm2131_vm3, %v2157_v13, %v2159_v8 }
 0x1c1   : > { %v5827_v21 = vmax.f32 %v1984_v47, 0.0  ;;  %v2720_v38 = vsel %vm2656_vm9, %v2160_v16, 0.0 }
 0x1c2   : > { %v4450_v2 = vpack.i.bf16 %v2688_v51, %v2720_v38 }
 0x1c3   : > { %v2161_v32 = vrot.slane %v5827_v21, 1  ;;  %v1763_v50 = vpop.f32.mrb[32].mxu0 }
 0x1c4   : > { %v1764_v23 = vadd.f32 %v5636_v15, %v1763_v50  ;;  %v1765_v11 = vpop.f32.mrb[33].mxu0  ;;  %4451 = vrot.lane.b32.xlu0 %v4450_v2, %s4566_s23 }
 0x1c5   : > { %v2162_v9 = vsel %vm2131_vm3, %v2159_v8, %v2161_v32  ;;  %v2244_v8 = vadd.s32 120, %v5698_v27 }
 0x1c6   : > { %v1989_v24 = vadd.f32 %v5556_v17, %v1764_v23  ;;  %v4455_v13 = vpack.i.bf16 %v2158_v62, %v2162_v9  ;;  %v2690_v17 = vsel %vm2658_vm10, %v2160_v16, 0.0 }
 0x1c7   : > { %v2370_v50 = vand.u32 15, %v2244_v8 }
 0x1c8   : > { %v5835_v44 = vmax.f32 %v1989_v24, 0.0  ;;  %v1768_v49 = vpop.f32.mrb[34].mxu0  ;;  %4456 = vrot.lane.b32.xlu1 %v4455_v13, %s4566_s23 }
 0x1c9   : > { %v1769_v58 = vadd.f32 %v5636_v15, %v1768_v49  ;;  %v1770_v30 = vpop.f32.mrb[35].mxu0  ;;  %vm2660_vm11 = vcmp.ne.s32.totalorder %v2370_v50, 15 }
 0x1ca   : > { %v2163_v46 = vrot.slane %v5835_v44, 1 }
 0x1cb   : > { %v1994_v0 = vadd.f32 %v5551_v33, %v1769_v58 }
 0x1cc   : > { %v2164_v45 = vsel %vm2131_vm3, %v2161_v32, %v2163_v46 }
 0x1cd   : > { %v5842_v22 = vmax.f32 %v1994_v0, 0.0  ;;  %v2722_v62 = vsel %vm2658_vm10, %v2164_v45, 0.0 }
 0x1ce   : > { %v4460_v42 = vpack.i.bf16 %v2690_v17, %v2722_v62 }
 0x1cf   : > { %v2165_v47 = vrot.slane %v5842_v22, 1  ;;  %v1773_v51 = vpop.f32.mrb[36].mxu0 }
 0x1d0   : > { %v1774_v38 = vadd.f32 %v5636_v15, %v1773_v51  ;;  %v1775_v2 = vpop.f32.mrb[37].mxu0  ;;  %4461 = vrot.lane.b32.xlu0 %v4460_v42, %s4566_s23 }
 0x1d1   : > { %v2166_v26 = vsel %vm2131_vm3, %v2163_v46, %v2165_v47  ;;  %v2246_v46 = vadd.s32 136, %v5698_v27 }
 0x1d2   : > { %v1999_v33 = vadd.f32 %v5588_v39, %v1774_v38  ;;  %v4465_v32 = vpack.i.bf16 %v2162_v9, %v2166_v26  ;;  %v2692_v39 = vsel %vm2660_vm11, %v2164_v45, 0.0 }
 0x1d3   : > { %v2384_v51 = vand.u32 15, %v2246_v46 }
 0x1d4   : > { %v5850_v23 = vmax.f32 %v1999_v33, 0.0  ;;  %v1778_v16 = vpop.f32.mrb[38].mxu0  ;;  %4466 = vrot.lane.b32.xlu1 %v4465_v32, %s4566_s23 }
 0x1d5   : > { %v1779_v11 = vadd.f32 %v5636_v15, %v1778_v16  ;;  %v1780_v24 = vpop.f32.mrb[39].mxu0  ;;  %vm2662_vm12 = vcmp.ne.s32.totalorder %v2384_v51, 15 }
 0x1d6   : > { %v2167_v13 = vrot.slane %v5850_v23, 1 }
 0x1d7   : > { %v2004_v61 = vadd.f32 %v5586_v36, %v1779_v11 }
 0x1d8   : > { %v2168_v49 = vsel %vm2131_vm3, %v2165_v47, %v2167_v13 }
 0x1d9   : > { %v5857_v58 = vmax.f32 %v2004_v61, 0.0  ;;  %v2724_v9 = vsel %vm2660_vm11, %v2168_v49, 0.0 }
 0x1da   : > { %v4470_v30 = vpack.i.bf16 %v2692_v39, %v2724_v9 }
 0x1db   : > { %v2169_v0 = vrot.slane %v5857_v58, 1  ;;  %v1783_v17 = vpop.f32.mrb[40].mxu0 }
 0x1dc   : > { %v1784_v62 = vadd.f32 %v5636_v15, %v1783_v17  ;;  %v1785_v42 = vpop.f32.mrb[41].mxu0  ;;  %4471 = vrot.lane.b32.xlu0 %v4470_v30, %s4566_s23 }
 0x1dd   : > { %v2170_v8 = vsel %vm2131_vm3, %v2167_v13, %v2169_v0  ;;  %v2248_v13 = vadd.s32 152, %v5698_v27 }
 0x1de   : > { %v2009_v36 = vadd.f32 %v5616_v55, %v1784_v62  ;;  %v4475_v47 = vpack.i.bf16 %v2166_v26, %v2170_v8  ;;  %v2694_v55 = vsel %vm2662_vm12, %v2168_v49, 0.0 }
 0x1df   : > { %v2398_v17 = vand.u32 15, %v2248_v13 }
 0x1e0   : > { %v5865_v38 = vmax.f32 %v2009_v36, 0.0  ;;  %v1788_v45 = vpop.f32.mrb[42].mxu0  ;;  %4476 = vrot.lane.b32.xlu1 %v4475_v47, %s4566_s23 }
 0x1e1   : > { %v1789_v2 = vadd.f32 %v5636_v15, %v1788_v45  ;;  %v1790_v33 = vpop.f32.mrb[43].mxu0  ;;  %vm2664_vm13 = vcmp.ne.s32.totalorder %v2398_v17, 15 }
 0x1e2   : > { %v2171_v32 = vrot.slane %v5865_v38, 1  ;;  %v2250_v33 = vadd.s32 168, %v5698_v27 }
 0x1e3   : > { %v2014_v50 = vadd.f32 %v5614_v54, %v1789_v2 }
 0x1e4   : > { %v2172_v16 = vsel %vm2131_vm3, %v2169_v0, %v2171_v32 }
 0x1e5   : > { %v5872_v11 = vmax.f32 %v2014_v50, 0.0  ;;  %v2726_v26 = vsel %vm2662_vm12, %v2172_v16, 0.0 }
 0x1e6   : > { %v4480_v24 = vpack.i.bf16 %v2694_v55, %v2726_v26 }
 0x1e7   : > { %v2173_v61 = vrot.slane %v5872_v11, 1  ;;  %v1793_v39 = vpop.f32.mrb[44].mxu0 }
 0x1e8   : > { %v1794_v9 = vadd.f32 %v5636_v15, %v1793_v39  ;;  %v1795_v30 = vpop.f32.mrb[45].mxu0  ;;  %4481 = vrot.lane.b32.xlu0 %v4480_v24, %s4566_s23 }
 0x1e9   : > { %v2174_v46 = vsel %vm2131_vm3, %v2171_v32, %v2173_v61 }
 0x1ea   : > { %v2019_v54 = vadd.f32 %v5654_v12, %v1794_v9  ;;  %v4485_v0 = vpack.i.bf16 %v2170_v8, %v2174_v46  ;;  %v2696_v12 = vsel %vm2664_vm13, %v2172_v16, 0.0 }
 0x1ec   : > { %v5880_v62 = vmax.f32 %v2019_v54, 0.0  ;;  %v1798_v49 = vpop.f32.mrb[46].mxu0  ;;  %4486 = vrot.lane.b32.xlu1 %v4485_v0, %s4566_s23 }
 0x1ed   : > { %v1799_v42 = vadd.f32 %v5636_v15, %v1798_v49  ;;  %v1800_v36 = vpop.f32.mrb[47].mxu0 }
 0x1ee   : > { %v2175_v47 = vrot.slane %v5880_v62, 1 }
 0x1ef   : > { %v2024_v51 = vadd.f32 %v5651_v7, %v1799_v42  ;;  %v2412_v7 = vand.u32 15, %v2250_v33 }
 0x1f0   : > { %v2176_v45 = vsel %vm2131_vm3, %v2173_v61, %v2175_v47 }
 0x1f1   : > { %v5887_v2 = vmax.f32 %v2024_v51, 0.0  ;;  %v2728_v8 = vsel %vm2664_vm13, %v2176_v45, 0.0  ;;  %vm2666_vm14 = vcmp.ne.s32.totalorder %v2412_v7, 15 }
 0x1f2   : > { %v4490_v32 = vpack.i.bf16 %v2696_v12, %v2728_v8 }
 0x1f3   : > { %v2177_v50 = vrot.slane %v5887_v2, 1  ;;  %v1803_v55 = vpop.f32.mrb[48].mxu0 }
 0x1f4   : > { %v1804_v26 = vadd.f32 %v5636_v15, %v1803_v55  ;;  %v1805_v24 = vpop.f32.mrb[49].mxu0  ;;  %4491 = vrot.lane.b32.xlu0 %v4490_v32, %s4566_s23 }
 0x1f5   : > { %v2178_v13 = vsel %vm2131_vm3, %v2175_v47, %v2177_v50 }
 0x1f6   : > { %v2029_v61 = vadd.f32 %v5689_v52, %v1804_v26  ;;  %v4495_v39 = vpack.i.bf16 %v2174_v46, %v2178_v13  ;;  %v2698_v52 = vsel %vm2666_vm14, %v2176_v45, 0.0  ;;  %v2252_v46 = vadd.s32 184, %v5698_v27 }
 0x1f8   : > { %v5895_v9 = vmax.f32 %v2029_v61, 0.0  ;;  %v1808_v16 = vpop.f32.mrb[50].mxu0  ;;  %4496 = vrot.lane.b32.xlu1 %v4495_v39, %s4566_s23  ;;  %v2426_v39 = vand.u32 15, %v2252_v46 }
 0x1f9   : > { %v1809_v30 = vadd.f32 %v5636_v15, %v1808_v16  ;;  %v1810_v54 = vpop.f32.mrb[51].mxu0 }
 0x1fa   : > { %v2179_v0 = vrot.slane %v5895_v9, 1  ;;  %v4402_v17 = vpop.permute.xlu0 %4401  ;;  %vm2668_vm15 = vcmp.ne.s32.totalorder %v2426_v39, 15 }
 0x1fb   : > { %v2034_v49 = vadd.f32 %v5685_v37, %v1809_v30  ;;  %v4404_v42 = vunpack.i.h.bf16 %v4402_v17  ;;  %v4403_v36 = vunpack.i.l.bf16 %v4402_v17 }
 0x1fc   : > { %v2180_v47 = vsel %vm2131_vm3, %v2177_v50, %v2179_v0 }
 0x1fd   : > { %v5903_v51 = vmax.f32 %v2034_v49, 0.0  ;;  %v3024_v12 = vsel %vm1316_vm1, %v5707_v43, %v4403_v36  ;;  %v2992_v8 = vsel %vm1316_vm1, %v2068_v59, %v4404_v42  ;;  %v2730_v33 = vsel %vm2666_vm14, %v2180_v47, 0.0 }
 0x1fe   : > { %v4407_v32 = vpop.permute.xlu1 %4406  ;;  %3162 = vmatprep.mubr.f32.mxu1 %v3024_v12  ;;  %v4500_v37 = vpack.i.bf16 %v2698_v52, %v2730_v33 }
 0x1ff   : > { %v2181_v55 = vrot.slane %v5903_v51, 1  ;;  %v4409_v26 = vunpack.i.h.bf16 %v4407_v32  ;;  %v4408_v50 = vunpack.i.l.bf16 %v4407_v32  ;;  %v1813_v45 = vpop.f32.mrb[52].mxu0  ;;  %3163 = vmatmul.mubr.f32.vlgmr.msra.gmra.mrb[32].mxu1 %v2992_v8  ;;  %v2254_v8 = vadd.s32 200, %v5698_v27 }
 0x200   : > { %v1814_v24 = vadd.f32 %v5636_v15, %v1813_v45  ;;  %v1815_v7 = vpop.f32.mrb[53].mxu0  ;;  %4501 = vrot.lane.b32.xlu0 %v4500_v37, %s4566_s23 }
 0x201   : > { %v3025_v4 = vsel %vm1316_vm1, %v5732_v56, %v4408_v50  ;;  %v2993_v59 = vsel %vm1316_vm1, %v5701_v57, %v4409_v26  ;;  %v2182_v61 = vsel %vm2131_vm3, %v2179_v0, %v2181_v55 }
 0x202   : > { %v2039_v16 = vadd.f32 %v5737_v25, %v1814_v24  ;;  %3167 = vmatprep.mubr.f32.mxu1 %v3025_v4  ;;  %v4505_v30 = vpack.i.bf16 %v2178_v13, %v2182_v61  ;;  %v2700_v13 = vsel %vm2668_vm15, %v2180_v47, 0.0 }
 0x203   : > { %3168 = vmatmul.mubr.f32.gmra.mrb[34].mxu1 %v2993_v59 }
 0x204   : > { %v5919_v54 = vmax.f32 %v2039_v16, 0.0  ;;  %v1818_v17 = vpop.f32.mrb[54].mxu0  ;;  %4506 = vrot.lane.b32.xlu1 %v4505_v30, %s4566_s23  ;;  %v2440_v16 = vand.u32 15, %v2254_v8  ;;  %v2256_v8 = vadd.s32 216, %v5698_v27 }
 0x205   : > { %v1819_v49 = vadd.f32 %v5636_v15, %v1818_v17  ;;  %v1820_v42 = vpop.f32.mrb[55].mxu0 }
 0x206   : > { %v2183_v36 = vrot.slane %v5919_v54, 1  ;;  %v4412_v52 = vpop.permute.xlu0 %4411  ;;  %vm2670_vm0 = vcmp.ne.s32.totalorder %v2440_v16, 15 }
 0x207   : > { %v2044_v0 = vadd.f32 %v5734_v19, %v1819_v49  ;;  %v4414_v46 = vunpack.i.h.bf16 %v4412_v52  ;;  %v4413_v12 = vunpack.i.l.bf16 %v4412_v52 }
 0x208   : > { %v2184_v25 = vsel %vm2131_vm3, %v2181_v55, %v2183_v36 }
 0x209   : > { %v5927_v33 = vmax.f32 %v2044_v0, 0.0  ;;  %v3026_v32 = vsel %vm1316_vm1, %v5743_v28, %v4413_v12  ;;  %v2994_v37 = vsel %vm1316_vm1, %v5707_v43, %v4414_v46  ;;  %v2732_v26 = vsel %vm2668_vm15, %v2184_v25, 0.0 }
 0x20a   : > { %v4417_v50 = vpop.permute.xlu1 %4416  ;;  %3172 = vmatprep.mubr.f32.mxu1 %v3026_v32  ;;  %v4510_v45 = vpack.i.bf16 %v2700_v13, %v2732_v26 }
 0x20b   : > { %v2185_v19 = vrot.slane %v5927_v33, 1  ;;  %v4419_v24 = vunpack.i.h.bf16 %v4417_v50  ;;  %v4418_v7 = vunpack.i.l.bf16 %v4417_v50  ;;  %v1823_v55 = vpop.f32.mrb[56].mxu0  ;;  %3173 = vmatmul.mubr.f32.gmra.mrb[36].mxu1 %v2994_v37 }
 0x20c   : > { %v1824_v47 = vadd.f32 %v5636_v15, %v1823_v55  ;;  %v1825_v4 = vpop.f32.mrb[57].mxu0  ;;  %4511 = vrot.lane.b32.xlu0 %v4510_v45, %s4566_s23 }
 0x20d   : > { %v3027_v59 = vsel %vm1316_vm1, %v5752_v5, %v4418_v7  ;;  %v2995_v43 = vsel %vm1316_vm1, %v5732_v56, %v4419_v24  ;;  %v2186_v39 = vsel %vm2131_vm3, %v2183_v36, %v2185_v19 }
 0x20e   : > { %v2049_v30 = vadd.f32 %v5758_v6, %v1824_v47  ;;  %3177 = vmatprep.mubr.f32.mxu1 %v3027_v59  ;;  %v4515_v17 = vpack.i.bf16 %v2182_v61, %v2186_v39  ;;  %v2702_v61 = vsel %vm2670_vm0, %v2184_v25, 0.0 }
 0x20f   : > { %3178 = vmatmul.mubr.f32.gmra.mrb[38].mxu1 %v2995_v43  ;;  %v2454_v43 = vand.u32 15, %v2256_v8 }
 0x210   : > { %v5942_v49 = vmax.f32 %v2049_v30, 0.0  ;;  %v1828_v42 = vpop.f32.mrb[58].mxu0  ;;  %4516 = vrot.lane.b32.xlu1 %v4515_v17, %s4566_s23  ;;  %v2258_v17 = vadd.s32 232, %v5698_v27 }
 0x211   : > { %v1829_v52 = vadd.f32 %v5636_v15, %v1828_v42  ;;  %v1830_v0 = vpop.f32.mrb[59].mxu0  ;;  %vm2672_vm2 = vcmp.ne.s32.totalorder %v2454_v43, 15 }
 0x212   : > { %v2187_v46 = vrot.slane %v5942_v49, 1  ;;  %v4422_v56 = vpop.permute.xlu0 %4421 }
 0x213   : > { %v2054_v36 = vadd.f32 %v5755_v18, %v1829_v52  ;;  %v4424_v12 = vunpack.i.h.bf16 %v4422_v56  ;;  %v4423_v13 = vunpack.i.l.bf16 %v4422_v56 }
 0x214   : > { %v2188_v6 = vsel %vm2131_vm3, %v2185_v19, %v2187_v46 }
 0x215   : > { %v5950_v32 = vmax.f32 %v2054_v36, 0.0  ;;  %v3028_v37 = vsel %vm1316_vm1, %v5763_v14, %v4423_v13  ;;  %v2996_v26 = vsel %vm1316_vm1, %v5743_v28, %v4424_v12  ;;  %v2734_v50 = vsel %vm2670_vm0, %v2188_v6, 0.0 }
 0x216   : > { %v4427_v45 = vpop.permute.xlu1 %4426  ;;  %3182 = vmatprep.mubr.f32.mxu1 %v3028_v37  ;;  %v4520_v24 = vpack.i.bf16 %v2702_v61, %v2734_v50  ;;  %v2704_v61 = vsel %vm2672_vm2, %v2188_v6, 0.0  ;;  %v2260_v6 = vadd.s32 248, %v5698_v27 }
 0x217   : > { %v2189_v18 = vrot.slane %v5950_v32, 1  ;;  %v4429_v7 = vunpack.i.h.bf16 %v4427_v45  ;;  %v4428_v55 = vunpack.i.l.bf16 %v4427_v45  ;;  %v1833_v19 = vpop.f32.mrb[60].mxu0  ;;  %3183 = vmatmul.mubr.f32.gmra.mrb[40].mxu1 %v2996_v26 }
 0x218   : > { %v1834_v25 = vadd.f32 %v5636_v15, %v1833_v19  ;;  %v1835_v47 = vpop.f32.mrb[61].mxu0  ;;  %4521 = vrot.lane.b32.xlu0 %v4520_v24, %s4566_s23  ;;  %v2482_v43 = vand.u32 15, %v2260_v6 }
 0x219   : > { %v3029_v4 = vsel %vm1316_vm1, %v5771_v29, %v4428_v55  ;;  %v2997_v28 = vsel %vm1316_vm1, %v5752_v5, %v4429_v7  ;;  %v2190_v59 = vsel %vm2131_vm3, %v2187_v46, %v2189_v18 }
 0x21a   : > { %v2059_v16 = vadd.f32 %v5777_v1, %v1834_v25  ;;  %3187 = vmatprep.mubr.f32.mxu1 %v3029_v4  ;;  %v4525_v30 = vpack.i.bf16 %v2186_v39, %v2190_v59  ;;  %v2468_v39 = vand.u32 15, %v2258_v17  ;;  %vm2676_vm5 = vcmp.ne.s32.totalorder %v2482_v43, 15 }
 0x21b   : > { %3188 = vmatmul.mubr.f32.gmra.mrb[42].mxu1 %v2997_v28 }
 0x21c   : > { %v5966_v42 = vmax.f32 %v2059_v16, 0.0  ;;  %v1838_v52 = vpop.f32.mrb[62].mxu0  ;;  %4526 = vrot.lane.b32.xlu1 %v4525_v30, %s4566_s23  ;;  %vm2674_vm4 = vcmp.ne.s32.totalorder %v2468_v39, 15  ;;  %v4567_v16 = vmov 0.0  }
 0x21d   : > { %v1839_v0 = vadd.f32 %v5636_v15, %v1838_v52  ;;  %v1840_v56 = vpop.f32.mrb[63].mxu0 }
 0x21e   : > { %v2191_v5 = vrot.slane %v5966_v42, 1  ;;  %v4432_v46 = vpop.permute.xlu0 %4431 }
 0x21f   : > { %v2064_v36 = vadd.f32 %v5774_v60, %v1839_v0  ;;  %v4434_v1 = vunpack.i.h.bf16 %v4432_v46  ;;  %v4433_v12 = vunpack.i.l.bf16 %v4432_v46 }
 0x220   : > { %v2192_v13 = vsel %vm2131_vm3, %v2189_v18, %v2191_v5 }
 0x221   : > { %v5973_v8 = vmax.f32 %v2064_v36, 0.0  ;;  %v3030_v37 = vsel %vm1316_vm1, %v5782_v20, %v4433_v12  ;;  %v2998_v15 = vsel %vm1316_vm1, %v5763_v14, %v4434_v1  ;;  %v2736_v26 = vsel %vm2672_vm2, %v2192_v13, 0.0 }
 0x222   : > { %v4437_v50 = vpop.permute.xlu1 %4436  ;;  %3192 = vmatprep.mubr.f32.mxu1 %v3030_v37  ;;  %v4530_v45 = vpack.i.bf16 %v2704_v61, %v2736_v26  ;;  %v2706_v47 = vsel %vm2674_vm4, %v2192_v13, 0.0 }
 0x223   : > { %v2193_v60 = vrot.slane %v5973_v8, 1  ;;  %v4439_v24 = vunpack.i.h.bf16 %v4437_v50  ;;  %v4438_v7 = vunpack.i.l.bf16 %v4437_v50  ;;  %3193 = vmatmul.mubr.f32.gmra.mrb[44].mxu1 %v2998_v15 }
 0x224   : > { %4531 = vrot.lane.b32.xlu0 %v4530_v45, %s4566_s23 }
 0x225   : > { %v3031_v18 = vsel %vm1316_vm1, %v5790_v48, %v4438_v7  ;;  %v2999_v14 = vsel %vm1316_vm1, %v5771_v29, %v4439_v24  ;;  %v2194_v55 = vsel %vm2131_vm3, %v2191_v5, %v2193_v60  ;;  %v2227_v19 = vsel %vm2131_vm3, %v2193_v60, 0.0  ;;  %vm3671_vm3 = vmneg %vm1316_vm1 }
 0x226   : > { %3197 = vmatprep.mubr.f32.mxu1 %v3031_v18  ;;  %v4535_v25 = vpack.i.bf16 %v2190_v59, %v2194_v55  ;;  %v2738_v4 = vsel %vm2674_vm4, %v2227_v19, 0.0  ;;  %v4545_v30 = vpack.i.bf16 %v4567_v16, %v2194_v55  ;;  %v2708_v46 = vsel %vm2676_vm5, %v2227_v19, 0.0 }
 0x227   : > { %3198 = vmatmul.mubr.f32.gmra.mrb[46].mxu1 %v2999_v14  ;;  %v4540_v28 = vpack.i.bf16 %v2706_v47, %v2738_v4 }
 0x228   : > { %4536 = vrot.lane.b32.xlu1 %v4535_v25, %s4566_s23 }
 0x229   : > { %4541 = vrot.lane.b32.xlu0 %v4540_v28, %s4566_s23 }
 0x22a   : > { %v4442_v27 = vpop.permute.xlu0 %4441 }
 0x22b   : > { %v4444_v17 = vunpack.i.h.bf16 %v4442_v27  ;;  %v4443_v29 = vunpack.i.l.bf16 %v4442_v27 }
 0x22c   : > { %4546 = vrot.lane.b32.xlu1 %v4545_v30, %s4566_s23 }
 0x22d   : > { %4551 = vrot.lane.b32.xlu0 %v4550_v41, %s4566_s23  ;;  %v3032_v59 = vsel %vm1316_vm1, %v5797_v63, %v4443_v29  ;;  %v3000_v52 = vsel %vm1316_vm1, %v5782_v20, %v4444_v17 }
 0x22e   : > { %v4447_v0 = vpop.permute.xlu1 %4446  ;;  %3202 = vmatprep.mubr.f32.mxu1 %v3032_v59 }
 0x22f   : > { %v4449_v56 = vunpack.i.h.bf16 %v4447_v0  ;;  %v4448_v5 = vunpack.i.l.bf16 %v4447_v0  ;;  %3203 = vmatmul.mubr.f32.gmra.mrb[48].mxu1 %v3000_v52 }
 0x230   : > { %2833 = vrot.lane.b32.xlu1 %v2708_v46, %s4566_s23 }
 0x231   : > { %v3033_v36 = vsel %vm1316_vm1, %v5805_v3, %v4448_v5  ;;  %v3001_v34 = vsel %vm1316_vm1, %v5790_v48, %v4449_v56 }
 0x232   : > { %3207 = vmatprep.mubr.f32.mxu1 %v3033_v36 }
 0x233   : > { %3208 = vmatmul.mubr.f32.gmra.mrb[50].mxu1 %v3001_v34 }
 0x236   : > { %v4452_v40 = vpop.permute.xlu0 %4451 }
 0x237   : > { %v4454_v41 = vunpack.i.h.bf16 %v4452_v40  ;;  %v4453_v1 = vunpack.i.l.bf16 %v4452_v40 }
 0x239   : > { %v3034_v20 = vsel %vm1316_vm1, %v5812_v35, %v4453_v1  ;;  %v3002_v12 = vsel %vm1316_vm1, %v5797_v63, %v4454_v41 }
 0x23a   : > { %v4457_v39 = vpop.permute.xlu1 %4456  ;;  %3212 = vmatprep.mubr.f32.mxu1 %v3034_v20 }
 0x23b   : > { %v4459_v13 = vunpack.i.h.bf16 %v4457_v39  ;;  %v4458_v61 = vunpack.i.l.bf16 %v4457_v39  ;;  %3213 = vmatmul.mubr.f32.gmra.mrb[52].mxu1 %v3002_v12 }
 0x23d   : > { %v3035_v37 = vsel %vm1316_vm1, %v5820_v10, %v4458_v61  ;;  %v3003_v48 = vsel %vm1316_vm1, %v5805_v3, %v4459_v13 }
 0x23e   : > { %3217 = vmatprep.mubr.f32.mxu1 %v3035_v37 }
 0x23f   : > { %3218 = vmatmul.mubr.f32.gmra.mrb[54].mxu1 %v3003_v48 }
 0x242   : > { %v4462_v15 = vpop.permute.xlu0 %4461 }
 0x243   : > { %v4464_v26 = vunpack.i.h.bf16 %v4462_v15  ;;  %v4463_v50 = vunpack.i.l.bf16 %v4462_v15 }
 0x245   : > { %v3036_v45 = vsel %vm1316_vm1, %v5827_v21, %v4463_v50  ;;  %v3004_v63 = vsel %vm1316_vm1, %v5812_v35, %v4464_v26 }
 0x246   : > { %v4467_v60 = vpop.permute.xlu1 %4466  ;;  %3222 = vmatprep.mubr.f32.mxu1 %v3036_v45 }
 0x247   : > { %v4469_v24 = vunpack.i.h.bf16 %v4467_v60  ;;  %v4468_v7 = vunpack.i.l.bf16 %v4467_v60  ;;  %3223 = vmatmul.mubr.f32.gmra.mrb[56].mxu1 %v3004_v63 }
 0x249   : > { %v3037_v6 = vsel %vm1316_vm1, %v5835_v44, %v4468_v7  ;;  %v3005_v3 = vsel %vm1316_vm1, %v5820_v10, %v4469_v24 }
 0x24a   : > { %3227 = vmatprep.mubr.f32.mxu1 %v3037_v6 }
 0x24b   : > { %3228 = vmatmul.mubr.f32.gmra.mrb[58].mxu1 %v3005_v3 }
 0x24e   : > { %v4472_v18 = vpop.permute.xlu0 %4471 }
 0x24f   : > { %v4474_v14 = vunpack.i.h.bf16 %v4472_v18  ;;  %v4473_v55 = vunpack.i.l.bf16 %v4472_v18 }
 0x251   : > { %v3038_v19 = vsel %vm1316_vm1, %v5842_v22, %v4473_v55  ;;  %v3006_v35 = vsel %vm1316_vm1, %v5827_v21, %v4474_v14 }
 0x252   : > { %v4477_v25 = vpop.permute.xlu1 %4476  ;;  %3232 = vmatprep.mubr.f32.mxu1 %v3038_v19 }
 0x253   : > { %v4479_v47 = vunpack.i.h.bf16 %v4477_v25  ;;  %v4478_v4 = vunpack.i.l.bf16 %v4477_v25  ;;  %3233 = vmatmul.mubr.f32.gmra.mrb[60].mxu1 %v3006_v35 }
 0x255   : > { %v3039_v28 = vsel %vm1316_vm1, %v5850_v23, %v4478_v4  ;;  %v3007_v10 = vsel %vm1316_vm1, %v5835_v44, %v4479_v47 }
 0x256   : > { %3237 = vmatprep.mubr.f32.mxu1 %v3039_v28 }
 0x257   : > { %3238 = vmatmul.mubr.f32.gmra.mrb[62].mxu1 %v3007_v10 }
 0x25a   : > { %v4482_v43 = vpop.permute.xlu0 %4481 }
 0x25b   : > { %v4484_v27 = vunpack.i.h.bf16 %v4482_v43  ;;  %v4483_v16 = vunpack.i.l.bf16 %v4482_v43 }
 0x25d   : > { %v3040_v30 = vsel %vm1316_vm1, %v5857_v58, %v4483_v16  ;;  %v3008_v21 = vsel %vm1316_vm1, %v5842_v22, %v4484_v27 }
 0x25e   : > { %v4487_v17 = vpop.permute.xlu1 %4486  ;;  %3242 = vmatprep.mubr.f32.mxu1 %v3040_v30 }
 0x25f   : > { %v4489_v29 = vunpack.i.h.bf16 %v4487_v17  ;;  %v4488_v59 = vunpack.i.l.bf16 %v4487_v17  ;;  %3243 = vmatmul.mubr.f32.gmra.mrb[64].mxu1 %v3008_v21 }
 0x261   : > { %v3041_v52 = vsel %vm1316_vm1, %v5865_v38, %v4488_v59  ;;  %v3009_v44 = vsel %vm1316_vm1, %v5850_v23, %v4489_v29 }
 0x262   : > { %3247 = vmatprep.mubr.f32.mxu1 %v3041_v52 }
 0x263   : > { %3248 = vmatmul.mubr.f32.gmra.mrb[66].mxu1 %v3009_v44 }
 0x266   : > { %v4492_v0 = vpop.permute.xlu0 %4491 }
 0x267   : > { %v4494_v56 = vunpack.i.h.bf16 %v4492_v0  ;;  %v4493_v5 = vunpack.i.l.bf16 %v4492_v0 }
 0x269   : > { %v3042_v46 = vsel %vm1316_vm1, %v5872_v11, %v4493_v5  ;;  %v3010_v22 = vsel %vm1316_vm1, %v5857_v58, %v4494_v56 }
 0x26a   : > { %v4497_v36 = vpop.permute.xlu1 %4496  ;;  %3252 = vmatprep.mubr.f32.mxu1 %v3042_v46 }
 0x26b   : > { %v4499_v34 = vunpack.i.h.bf16 %v4497_v36  ;;  %v4498_v40 = vunpack.i.l.bf16 %v4497_v36  ;;  %3253 = vmatmul.mubr.f32.gmra.mrb[68].mxu1 %v3010_v22 }
 0x26d   : > { %v3043_v41 = vsel %vm1316_vm1, %v5880_v62, %v4498_v40  ;;  %v3011_v23 = vsel %vm1316_vm1, %v5865_v38, %v4499_v34 }
 0x26e   : > { %3257 = vmatprep.mubr.f32.mxu1 %v3043_v41 }
 0x26f   : > { %3258 = vmatmul.mubr.f32.gmra.mrb[70].mxu1 %v3011_v23 }
 0x272   : > { %v4502_v1 = vpop.permute.xlu0 %4501 }
 0x273   : > { %v4504_v20 = vunpack.i.h.bf16 %v4502_v1  ;;  %v4503_v12 = vunpack.i.l.bf16 %v4502_v1 }
 0x275   : > { %v3044_v39 = vsel %vm1316_vm1, %v5887_v2, %v4503_v12  ;;  %v3012_v58 = vsel %vm1316_vm1, %v5872_v11, %v4504_v20 }
 0x276   : > { %v4507_v13 = vpop.permute.xlu1 %4506  ;;  %3262 = vmatprep.mubr.f32.mxu1 %v3044_v39 }
 0x277   : > { %v4509_v61 = vunpack.i.h.bf16 %v4507_v13  ;;  %v4508_v37 = vunpack.i.l.bf16 %v4507_v13  ;;  %3263 = vmatmul.mubr.f32.gmra.mrb[72].mxu1 %v3012_v58 }
 0x279   : > { %v3045_v48 = vsel %vm1316_vm1, %v5895_v9, %v4508_v37  ;;  %v3013_v38 = vsel %vm1316_vm1, %v5880_v62, %v4509_v61 }
 0x27a   : > { %3267 = vmatprep.mubr.f32.mxu1 %v3045_v48 }
 0x27b   : > { %3268 = vmatmul.mubr.f32.gmra.mrb[74].mxu1 %v3013_v38 }
 0x27e   : > { %v4512_v15 = vpop.permute.xlu0 %4511 }
 0x27f   : > { %v4514_v26 = vunpack.i.h.bf16 %v4512_v15  ;;  %v4513_v50 = vunpack.i.l.bf16 %v4512_v15 }
 0x281   : > { %v3046_v45 = vsel %vm1316_vm1, %v5903_v51, %v4513_v50  ;;  %v3014_v11 = vsel %vm1316_vm1, %v5887_v2, %v4514_v26 }
 0x282   : > { %v4517_v63 = vpop.permute.xlu1 %4516  ;;  %3272 = vmatprep.mubr.f32.mxu1 %v3046_v45 }
 0x283   : > { %v4519_v60 = vunpack.i.h.bf16 %v4517_v63  ;;  %v4518_v24 = vunpack.i.l.bf16 %v4517_v63  ;;  %3273 = vmatmul.mubr.f32.gmra.mrb[76].mxu1 %v3014_v11 }
 0x285   : > { %v3047_v7 = vsel %vm1316_vm1, %v5919_v54, %v4518_v24  ;;  %v3015_v62 = vsel %vm1316_vm1, %v5895_v9, %v4519_v60 }
 0x286   : > { %3277 = vmatprep.mubr.f32.mxu1 %v3047_v7 }
 0x287   : > { %3278 = vmatmul.mubr.f32.gmra.mrb[78].mxu1 %v3015_v62 }
 0x28a   : > { %v4522_v6 = vpop.permute.xlu0 %4521 }
 0x28b   : > { %v4524_v3 = vunpack.i.h.bf16 %v4522_v6  ;;  %v4523_v18 = vunpack.i.l.bf16 %v4522_v6 }
 0x28d   : > { %v3048_v14 = vsel %vm1316_vm1, %v5927_v33, %v4523_v18  ;;  %v3016_v2 = vsel %vm1316_vm1, %v5903_v51, %v4524_v3 }
 0x28e   : > { %v4527_v55 = vpop.permute.xlu1 %4526  ;;  %3282 = vmatprep.mubr.f32.mxu1 %v3048_v14 }
 0x28f   : > { %v4529_v19 = vunpack.i.h.bf16 %v4527_v55  ;;  %v4528_v35 = vunpack.i.l.bf16 %v4527_v55  ;;  %3283 = vmatmul.mubr.f32.gmra.mrb[80].mxu1 %v3016_v2 }
 0x291   : > { %v3049_v25 = vsel %vm1316_vm1, %v5942_v49, %v4528_v35  ;;  %v3017_v9 = vsel %vm1316_vm1, %v5919_v54, %v4529_v19 }
 0x292   : > { %3287 = vmatprep.mubr.f32.mxu1 %v3049_v25 }
 0x293   : > { %3288 = vmatmul.mubr.f32.gmra.mrb[82].mxu1 %v3017_v9 }
 0x296   : > { %v4532_v47 = vpop.permute.xlu0 %4531 }
 0x297   : > { %v4534_v4 = vunpack.i.h.bf16 %v4532_v47  ;;  %v4533_v28 = vunpack.i.l.bf16 %v4532_v47 }
 0x299   : > { %v3050_v10 = vsel %vm1316_vm1, %v5950_v32, %v4533_v28  ;;  %v3018_v51 = vsel %vm1316_vm1, %v5927_v33, %v4534_v4 }
 0x29a   : > { %v4537_v43 = vpop.permute.xlu1 %4536  ;;  %3292 = vmatprep.mubr.f32.mxu1 %v3050_v10 }
 0x29b   : > { %v4539_v27 = vunpack.i.h.bf16 %v4537_v43  ;;  %v4538_v16 = vunpack.i.l.bf16 %v4537_v43  ;;  %v4542_v30 = vpop.permute.xlu0 %4541  ;;  %3293 = vmatmul.mubr.f32.gmra.mrb[84].mxu1 %v3018_v51 }
 0x29c   : > { %v4543_v21 = vunpack.i.l.bf16 %v4542_v30  ;;  %v4544_v17 = vunpack.i.h.bf16 %v4542_v30 }
 0x29d   : > { %v3051_v54 = vsel %vm1316_vm1, %v5966_v42, %v4538_v16  ;;  %v3019_v29 = vsel %vm1316_vm1, %v5942_v49, %v4539_v27 }
 0x29e   : > { %3297 = vmatprep.mubr.f32.mxu1 %v3051_v54  ;;  %v3052_v59 = vsel %vm1316_vm1, %v5973_v8, %v4543_v21  ;;  %v4547_v52 = vpop.permute.xlu1 %4546  ;;  %v3020_v56 = vsel %vm1316_vm1, %v5950_v32, %v4544_v17 }
 0x29f   : > { %3298 = vmatmul.mubr.f32.gmra.mrb[86].mxu1 %v3019_v29  ;;  %v4552_v33 = vpop.permute.xlu0 %4551  ;;  %v4549_v5 = vunpack.i.h.bf16 %v4547_v52  ;;  %v4548_v46 = vunpack.i.l.bf16 %v4547_v52 }
 0x2a0   : > { %v4554_v44 = vunpack.i.h.bf16 %v4552_v33  ;;  %v4553_v0 = vunpack.i.l.bf16 %v4552_v33  ;;  %3302 = vmatprep.mubr.f32.mxu1 %v3052_v59 }
 0x2a1   : > { %v3021_v36 = vsel %vm1316_vm1, %v5966_v42, %v4548_v46 }
 0x2a2   : > { %v2991_v49 = vsel %vm1316_vm1, %v2067_v31, %v4554_v44  ;;  %v3023_v22 = vsel %vm1316_vm1, %v5701_v57, %v4553_v0  ;;  %v2834_v32 = vpop.permute.xlu1 %2833 }
 0x2a3   : > { %3157 = vmatprep.mubr.f32.mxu0 %v3023_v22  ;;  %3303 = vmatmul.mubr.f32.gmra.mrb[88].mxu1 %v3020_v56  ;;  %v3022_v34 = vsel %vm1316_vm1, %v5973_v8, %v2834_v32 }
 0x2a4   : > { %3158 = vmatmul.mubr.f32.vlgmr.msra.gmra.mrb[64].mxu0 %v2991_v49  ;;  %3672 = vmatprep.mubr.msk.f32.mxu1 %vm3671_vm3, %v4549_v5 }
 0x2a7   : > { %3308 = vmatmul.mubr.f32.gmra.mrb[90].mxu1 %v3021_v36 }
 0x2a8   : > { %3674 = vmatprep.mubr.msk.f32.mxu1 %vm3671_vm3, %v4549_v5 }
 0x2ab   : > { %3313 = vmatmul.mubr.f32.gmra.mrb[92].mxu1 %v3022_v34 }
 0x2d2   : > { %v3164_v31 = vpop.f32.mrb[32].mxu1 }
 0x2d3   : > { %v3165_v57 = vadd.f32 %v6093_v53, %v3164_v31  ;;  %v3166_v40 = vpop.f32.mrb[33].mxu1 }
 0x2d5   : > { %v3319_v42 = vmax.f32 %v3165_v57, 0.0 }
 0x2d6   : > { %v3169_v8 = vpop.f32.mrb[34].mxu1 }
 0x2d7   : > { %3351 = vst [vmem:[%s6100_s17 + $0x8] sm:$0xff] %v3319_v42  ;;  %v3170_v41 = vadd.f32 %v6093_v53, %v3169_v8  ;;  %v3171_v23 = vpop.f32.mrb[35].mxu1 }
 0x2d9   : > { %v3320_v1 = vmax.f32 %v3170_v41, 0.0 }
 0x2db   : > { %3352 = vst [vmem:[%s6100_s17 + $0x10] sm:$0xff] %v3320_v1 }
 0x2de   : > { %v3174_v20 = vpop.f32.mrb[36].mxu1 }
 0x2df   : > { %v3175_v12 = vadd.f32 %v6093_v53, %v3174_v20  ;;  %v3176_v39 = vpop.f32.mrb[37].mxu1 }
 0x2e1   : > { %v3321_v58 = vmax.f32 %v3175_v12, 0.0 }
 0x2e2   : > { %v3179_v13 = vpop.f32.mrb[38].mxu1 }
 0x2e3   : > { %3353 = vst [vmem:[%s6100_s17 + $0x18] sm:$0xff] %v3321_v58  ;;  %v3180_v61 = vadd.f32 %v6093_v53, %v3179_v13  ;;  %v3181_v37 = vpop.f32.mrb[39].mxu1 }
 0x2e5   : > { %v3322_v48 = vmax.f32 %v3180_v61, 0.0 }
 0x2e7   : > { %3354 = vst [vmem:[%s6100_s17 + $0x20] sm:$0xff] %v3322_v48 }
 0x2ea   : > { %v3184_v38 = vpop.f32.mrb[40].mxu1 }
 0x2eb   : > { %v3185_v15 = vadd.f32 %v6093_v53, %v3184_v38  ;;  %v3186_v26 = vpop.f32.mrb[41].mxu1 }
 0x2ed   : > { %v3323_v50 = vmax.f32 %v3185_v15, 0.0 }
 0x2ee   : > { %v3189_v45 = vpop.f32.mrb[42].mxu1 }
 0x2ef   : > { %3355 = vst [vmem:[%s6100_s17 + $0x28] sm:$0xff] %v3323_v50  ;;  %v3190_v11 = vadd.f32 %v6093_v53, %v3189_v45  ;;  %v3191_v63 = vpop.f32.mrb[43].mxu1 }
 0x2f1   : > { %v3324_v60 = vmax.f32 %v3190_v11, 0.0 }
 0x2f3   : > { %3356 = vst [vmem:[%s6100_s17 + $0x30] sm:$0xff] %v3324_v60 }
 0x2f6   : > { %v3194_v24 = vpop.f32.mrb[44].mxu1 }
 0x2f7   : > { %v3195_v7 = vadd.f32 %v6093_v53, %v3194_v24  ;;  %v3196_v62 = vpop.f32.mrb[45].mxu1 }
 0x2f9   : > { %v3325_v6 = vmax.f32 %v3195_v7, 0.0 }
 0x2fa   : > { %v3199_v3 = vpop.f32.mrb[46].mxu1 }
 0x2fb   : > { %3357 = vst [vmem:[%s6100_s17 + $0x38] sm:$0xff] %v3325_v6  ;;  %v3200_v18 = vadd.f32 %v6093_v53, %v3199_v3  ;;  %v3201_v14 = vpop.f32.mrb[47].mxu1 }
 0x2fd   : > { %v3326_v2 = vmax.f32 %v3200_v18, 0.0 }
 0x2ff   : > { %3358 = vst [vmem:[%s6100_s17 + $0x40] sm:$0xff] %v3326_v2 }
 0x302   : > { %v3204_v55 = vpop.f32.mrb[48].mxu1 }
 0x303   : > { %v3205_v19 = vadd.f32 %v6093_v53, %v3204_v55  ;;  %v3206_v35 = vpop.f32.mrb[49].mxu1 }
 0x305   : > { %v3327_v25 = vmax.f32 %v3205_v19, 0.0 }
 0x306   : > { %v3209_v9 = vpop.f32.mrb[50].mxu1 }
 0x307   : > { %3359 = vst [vmem:[%s6100_s17 + $0x48] sm:$0xff] %v3327_v25  ;;  %v3210_v47 = vadd.f32 %v6093_v53, %v3209_v9  ;;  %v3211_v4 = vpop.f32.mrb[51].mxu1 }
 0x309   : > { %v3328_v28 = vmax.f32 %v3210_v47, 0.0 }
 0x30b   : > { %3360 = vst [vmem:[%s6100_s17 + $0x50] sm:$0xff] %v3328_v28 }
 0x30e   : > { %v3214_v10 = vpop.f32.mrb[52].mxu1 }
 0x30f   : > { %v3215_v51 = vadd.f32 %v6093_v53, %v3214_v10  ;;  %v3216_v43 = vpop.f32.mrb[53].mxu1 }
 0x311   : > { %v3329_v27 = vmax.f32 %v3215_v51, 0.0 }
 0x312   : > { %v3219_v16 = vpop.f32.mrb[54].mxu1 }
 0x313   : > { %3361 = vst [vmem:[%s6100_s17 + $0x58] sm:$0xff] %v3329_v27  ;;  %v3220_v30 = vadd.f32 %v6093_v53, %v3219_v16  ;;  %v3221_v21 = vpop.f32.mrb[55].mxu1 }
 0x315   : > { %v3330_v17 = vmax.f32 %v3220_v30, 0.0 }
 0x317   : > { %3362 = vst [vmem:[%s6100_s17 + $0x60] sm:$0xff] %v3330_v17 }
 0x31a   : > { %v3224_v54 = vpop.f32.mrb[56].mxu1 }
 0x31b   : > { %v3225_v29 = vadd.f32 %v6093_v53, %v3224_v54  ;;  %v3226_v59 = vpop.f32.mrb[57].mxu1 }
 0x31d   : > { %v3331_v52 = vmax.f32 %v3225_v29, 0.0 }
 0x31e   : > { %v3229_v33 = vpop.f32.mrb[58].mxu1 }
 0x31f   : > { %3363 = vst [vmem:[%s6100_s17 + $0x68] sm:$0xff] %v3331_v52  ;;  %v3230_v44 = vadd.f32 %v6093_v53, %v3229_v33  ;;  %v3231_v0 = vpop.f32.mrb[59].mxu1 }
 0x321   : > { %v3332_v56 = vmax.f32 %v3230_v44, 0.0 }
 0x323   : > { %3364 = vst [vmem:[%s6100_s17 + $0x70] sm:$0xff] %v3332_v56 }
 0x326   : > { %v3234_v5 = vpop.f32.mrb[60].mxu1 }
 0x327   : > { %v3235_v46 = vadd.f32 %v6093_v53, %v3234_v5  ;;  %v3236_v49 = vpop.f32.mrb[61].mxu1 }
 0x329   : > { %v3333_v22 = vmax.f32 %v3235_v46, 0.0 }
 0x32a   : > { %v3239_v36 = vpop.f32.mrb[62].mxu1 }
 0x32b   : > { %3365 = vst [vmem:[%s6100_s17 + $0x78] sm:$0xff] %v3333_v22  ;;  %v3240_v32 = vadd.f32 %v6093_v53, %v3239_v36  ;;  %v3241_v34 = vpop.f32.mrb[63].mxu1 }
 0x32d   : > { %v3334_v31 = vmax.f32 %v3240_v32, 0.0 }
 0x32f   : > { %3366 = vst [vmem:[%s6100_s17 + $0x80] sm:$0xff] %v3334_v31 }
 0x332   : > { %v3244_v57 = vpop.f32.mrb[64].mxu1 }
 0x333   : > { %v3245_v40 = vadd.f32 %v6093_v53, %v3244_v57  ;;  %v3246_v42 = vpop.f32.mrb[65].mxu1 }
 0x335   : > { %v3335_v8 = vmax.f32 %v3245_v40, 0.0 }
 0x336   : > { %v3249_v41 = vpop.f32.mrb[66].mxu1 }
 0x337   : > { %3367 = vst [vmem:[%s6100_s17 + $0x88] sm:$0xff] %v3335_v8  ;;  %v3250_v23 = vadd.f32 %v6093_v53, %v3249_v41  ;;  %v3251_v1 = vpop.f32.mrb[67].mxu1 }
 0x339   : > { %v3336_v20 = vmax.f32 %v3250_v23, 0.0 }
 0x33b   : > { %3368 = vst [vmem:[%s6100_s17 + $0x90] sm:$0xff] %v3336_v20 }
 0x33e   : > { %v3254_v12 = vpop.f32.mrb[68].mxu1 }
 0x33f   : > { %v3255_v39 = vadd.f32 %v6093_v53, %v3254_v12  ;;  %v3256_v58 = vpop.f32.mrb[69].mxu1 }
 0x341   : > { %v3337_v13 = vmax.f32 %v3255_v39, 0.0 }
 0x342   : > { %v3259_v61 = vpop.f32.mrb[70].mxu1 }
 0x343   : > { %3369 = vst [vmem:[%s6100_s17 + $0x98] sm:$0xff] %v3337_v13  ;;  %v3260_v37 = vadd.f32 %v6093_v53, %v3259_v61  ;;  %v3261_v48 = vpop.f32.mrb[71].mxu1 }
 0x345   : > { %v3338_v38 = vmax.f32 %v3260_v37, 0.0 }
 0x347   : > { %3370 = vst [vmem:[%s6100_s17 + $0xa0] sm:$0xff] %v3338_v38 }
 0x34a   : > { %v3264_v15 = vpop.f32.mrb[72].mxu1 }
 0x34b   : > { %v3265_v26 = vadd.f32 %v6093_v53, %v3264_v15  ;;  %v3266_v50 = vpop.f32.mrb[73].mxu1 }
 0x34d   : > { %v3339_v45 = vmax.f32 %v3265_v26, 0.0 }
 0x34e   : > { %v3269_v11 = vpop.f32.mrb[74].mxu1 }
 0x34f   : > { %3371 = vst [vmem:[%s6100_s17 + $0xa8] sm:$0xff] %v3339_v45  ;;  %v3270_v63 = vadd.f32 %v6093_v53, %v3269_v11  ;;  %v3271_v60 = vpop.f32.mrb[75].mxu1 }
 0x351   : > { %v3340_v24 = vmax.f32 %v3270_v63, 0.0 }
 0x353   : > { %3372 = vst [vmem:[%s6100_s17 + $0xb0] sm:$0xff] %v3340_v24 }
 0x356   : > { %v3274_v7 = vpop.f32.mrb[76].mxu1 }
 0x357   : > { %v3275_v62 = vadd.f32 %v6093_v53, %v3274_v7  ;;  %v3276_v6 = vpop.f32.mrb[77].mxu1 }
 0x359   : > { %v3341_v3 = vmax.f32 %v3275_v62, 0.0 }
 0x35a   : > { %v3279_v18 = vpop.f32.mrb[78].mxu1 }
 0x35b   : > { %3373 = vst [vmem:[%s6100_s17 + $0xb8] sm:$0xff] %v3341_v3  ;;  %v3280_v14 = vadd.f32 %v6093_v53, %v3279_v18  ;;  %v3281_v2 = vpop.f32.mrb[79].mxu1 }
 0x35d   : > { %v3342_v55 = vmax.f32 %v3280_v14, 0.0 }
 0x35f   : > { %3374 = vst [vmem:[%s6100_s17 + $0xc0] sm:$0xff] %v3342_v55 }
 0x362   : > { %v3284_v19 = vpop.f32.mrb[80].mxu1 }
 0x363   : > { %v3285_v35 = vadd.f32 %v6093_v53, %v3284_v19  ;;  %v3286_v25 = vpop.f32.mrb[81].mxu1 }
 0x365   : > { %v3343_v9 = vmax.f32 %v3285_v35, 0.0 }
 0x366   : > { %v3289_v47 = vpop.f32.mrb[82].mxu1 }
 0x367   : > { %3375 = vst [vmem:[%s6100_s17 + $0xc8] sm:$0xff] %v3343_v9  ;;  %v3290_v4 = vadd.f32 %v6093_v53, %v3289_v47  ;;  %v3291_v28 = vpop.f32.mrb[83].mxu1 }
 0x369   : > { %v3344_v10 = vmax.f32 %v3290_v4, 0.0 }
 0x36b   : > { %3376 = vst [vmem:[%s6100_s17 + $0xd0] sm:$0xff] %v3344_v10 }
 0x36e   : > { %v3294_v51 = vpop.f32.mrb[84].mxu1 }
 0x36f   : > { %v3295_v43 = vadd.f32 %v6093_v53, %v3294_v51  ;;  %v3296_v27 = vpop.f32.mrb[85].mxu1 }
 0x371   : > { %v3345_v16 = vmax.f32 %v3295_v43, 0.0 }
 0x372   : > { %v3299_v30 = vpop.f32.mrb[86].mxu1 }
 0x373   : > { %3377 = vst [vmem:[%s6100_s17 + $0xd8] sm:$0xff] %v3345_v16  ;;  %v3300_v21 = vadd.f32 %v6093_v53, %v3299_v30  ;;  %v3301_v17 = vpop.f32.mrb[87].mxu1 }
 0x375   : > { %v3346_v54 = vmax.f32 %v3300_v21, 0.0 }
 0x376   : > { %v3304_v29 = vpop.f32.mrb[88].mxu1 }
 0x377   : > { %3378 = vst [vmem:[%s6100_s17 + $0xe0] sm:$0xff] %v3346_v54  ;;  %v3305_v59 = vadd.f32 %v6093_v53, %v3304_v29  ;;  %v3159_v52 = vpop.f32.mrb[64].mxu0  ;;  %v3306_v33 = vpop.f32.mrb[89].mxu1 }
 0x378   : > { %v3160_v44 = vadd.f32 %v6093_v53, %v3159_v52  ;;  %v3161_v0 = vpop.f32.mrb[65].mxu0 }
 0x379   : > { %v3347_v56 = vmax.f32 %v3305_v59, 0.0 }
 0x37a   : > { %v3318_v5 = vmax.f32 %v3160_v44, 0.0  ;;  %v3309_v46 = vpop.f32.mrb[90].mxu1 }
 0x37b   : > { %3379 = vst [vmem:[%s6100_s17 + $0xe8] sm:$0xff] %v3347_v56  ;;  %v3310_v49 = vadd.f32 %v6093_v53, %v3309_v46  ;;  %v3311_v22 = vpop.f32.mrb[91].mxu1 }
 0x37c   : > { %3350 = vst [vmem:[%s6100_s17] sm:$0xff] %v3318_v5 }
 0x37d   : > { %v3348_v36 = vmax.f32 %v3310_v49, 0.0 }
 0x37e   : > { %v3314_v32 = vpop.f32.mrb[92].mxu1 }
 0x37f   : > { %3380 = vst [vmem:[%s6100_s17 + $0xf0] sm:$0xff] %v3348_v36  ;;  %v3315_v34 = vadd.f32 %v6093_v53, %v3314_v32  ;;  %v3316_v31 = vpop.f32.mrb[93].mxu1 }
 0x381   : > { %v3349_v57 = vmax.f32 %v3315_v34, 0.0 }
 0x383   : > { %3381 = vst [vmem:[%s6100_s17 + $0xf8] sm:$0xff] %v3349_v57 }
 0x384 PF: > { %s15_s18 = sadd.s32 1, %s4561_s18  }
 0x385   : > { %p12_p4 = scmp.ge.s32.totalorder %s15_s18, 4  }
 0x387   :  { %14 = sbr.rel (!%p12_p4) target bundleno = 1 (0x1), region = 72 }

</bundles_post_ra>
